<compile_context>
chip_gen: v7x
topology: tpu7x:2x2x1
jax: 0.10.0
libtpu: 0.0.40
codegen_flags: <defaults>
</compile_context>

<pallas_src>
import functools

import jax
import jax.numpy as jnp
from jax.experimental import pallas as pl
from jax.experimental.pallas import tpu as pltpu

# ---- small, self-consistent config (scaled-down SentimentLSTM defaults) ----
VOCAB = 50
EMBED = 64                            # embedding_dim (matches module default)
HIDDEN = 64                           # lstm_hidden_dim (scaled; 2H = 128 lanes)
NUM_LAYERS = 2                        # num_lstm_layers
HIDDEN_DIMS = [2 * HIDDEN, 64, 32]    # first == 2*H because bidirectional
OUTPUT_DIM = 2
MLP_PAD = 128                         # lane-dense padding for all MLP widths


# ----------------------------- fused forward kernel --------------------------
def _fused_forward_kernel(
        x_ref, mask_ref,
        wih1_ref, whh1f_ref, whh1b_ref, b1_ref,
        wih2_ref, whh2f_ref, whh2b_ref, b2_ref,
        mw1_ref, mb1_ref, mw2_ref, mb2_ref, mw3_ref, mb3_ref,
        o_ref,
        gx_scr, seq_scr,
        *, seq_len, batch, hidden):
    """Entire SentimentLSTM forward: 2 BiLSTM layers + 3-layer MLP.

    x_ref:    (T*B, E)   bf16, time-major rows (row = t*B + b)
    mask_ref: (T*B, H)   f32, 1.0 where t < length[b] else 0.0
    wih*_ref: (Din, 8H)  bf16, [fwd i,f,o,g | bwd i,f,o,g]
    whh*_ref: (H, 4H)    bf16, per-direction, gate order [i,f,o,g]
    b*_ref:   (1, 8H)    f32, b_ih + b_hh per direction, pre-summed
    mw/mb:    (128,128) bf16 / (1,128) f32, MLP weights padded to 128 lanes
    o_ref:    (B, 128)   f32, ReLU'd logits in columns [0:OUTPUT_DIM]
    gx_scr:   (T*B, 8H)  f32 scratch (input projections, reused per layer)
    seq_scr:  (T*B, 2H)  f32 scratch (layer-1 output sequence, stays in VMEM)
    """
    T, B, H = seq_len, batch, hidden

    def bilstm(x_bf16, wih_ref, whhf_ref, whhb_ref, b_ref, store_seq):
        # Input projection for BOTH directions hoisted out of the recurrence:
        # one (T*B, Din) @ (Din, 8H) bf16 MXU matmul; biases folded in here.
        gx_scr[...] = (jnp.dot(x_bf16, wih_ref[...],
                               preferred_element_type=jnp.float32) + b_ref[...])
        # Recurrent weights are loop-invariant: load once, keep them resident
        # instead of re-reading the ref every step.
        whh_f = whhf_ref[...]
        whh_b = whhb_ref[...]
        zeros = jnp.zeros((B, H), jnp.float32)

        def cell(h, c, gates, m):
            # Gate column order [i, f, o, g]: sigmoid over one contiguous 3H
            # block, tanh over the remaining H -> minimal EUP work per step.
            s = jax.nn.sigmoid(gates[:, 0:3 * H])
            g = jnp.tanh(gates[:, 3 * H:4 * H])
            i_g = s[:, 0:H]
            f_g = s[:, H:2 * H]
            o_g = s[:, 2 * H:3 * H]
            c_new = f_g * c + i_g * g
            h_new = o_g * jnp.tanh(c_new)
            # pack_padded semantics: state only updates while t < length[b].
            c = c + m * (c_new - c)
            h = h + m * (h_new - h)
            return h, c

        def step(i, carry):
            h_f, c_f, h_b, c_b = carry
            # Forward direction handles t = i, backward handles t = T-1-i.
            # Two independent chains interleaved: one direction's MXU push/pop
            # and EUP latency hides under the other's gate math.
            rf = pl.multiple_of(i * B, B)
            rb = pl.multiple_of((T - 1 - i) * B, B)
            m_f = mask_ref[pl.ds(rf, B), :]
            m_b = mask_ref[pl.ds(rb, B), :]
            gates_f = (gx_scr[pl.ds(rf, B), pl.ds(0, 4 * H)]
                       + jnp.dot(h_f.astype(jnp.bfloat16), whh_f,
                                 preferred_element_type=jnp.float32))
            gates_b = (gx_scr[pl.ds(rb, B), pl.ds(4 * H, 4 * H)]
                       + jnp.dot(h_b.astype(jnp.bfloat16), whh_b,
                                 preferred_element_type=jnp.float32))
            h_f, c_f = cell(h_f, c_f, gates_f, m_f)
            h_b, c_b = cell(h_b, c_b, gates_b, m_b)
            if store_seq:
                # Per-timestep layer output stays in VMEM scratch (f32); padded
                # timesteps write zeros (pad_packed_sequence semantics).
                seq_scr[pl.ds(rf, B), pl.ds(0, H)] = m_f * h_f
                seq_scr[pl.ds(rb, B), pl.ds(H, H)] = m_b * h_b
            return h_f, c_f, h_b, c_b

        return jax.lax.fori_loop(0, T, step, (zeros, zeros, zeros, zeros),
                                 unroll=True)

    # ---- LSTM layer 1 (full output sequence needed by layer 2) -------------
    bilstm(x_ref[...], wih1_ref, whh1f_ref, whh1b_ref, b1_ref, store_seq=True)

    # ---- LSTM layer 2 (only final hidden states feed the MLP) --------------
    h_f2, _, h_b2, _ = bilstm(seq_scr[...].astype(jnp.bfloat16),
                              wih2_ref, whh2f_ref, whh2b_ref, b2_ref,
                              store_seq=False)

    # hidden[-2] (last-layer fwd final) ++ hidden[-1] (last-layer bwd final)
    hcat = jnp.concatenate([h_f2, h_b2], axis=1)            # (B, 2H) f32

    def linear_relu(h, w_ref, b_ref):
        y = jnp.dot(h.astype(jnp.bfloat16), w_ref[...],
                    preferred_element_type=jnp.float32) + b_ref[...]
        return jnp.maximum(y, 0.0)

    # MLP widths padded to 128 lanes -> lane-dense matmuls and a single
    # lane-dense output store. The PyTorch module applies ReLU (and dropout)
    # after the final Linear too, so the logits are ReLU-clamped on purpose.
    h = linear_relu(hcat, mw1_ref, mb1_ref)
    h = linear_relu(h, mw2_ref, mb2_ref)
    o_ref[...] = linear_relu(h, mw3_ref, mb3_ref)


def _fused_forward(x, mask, l1, l2, mlp, *, seq_len, batch):
    """x: (T*B, E) bf16, mask: (T*B, H) f32 -> (B, MLP_PAD) f32 logits."""
    TB = x.shape[0]
    H = HIDDEN
    kernel = functools.partial(_fused_forward_kernel, seq_len=seq_len,
                               batch=batch, hidden=H)
    full = lambda i: (0, 0)
    args = (x, mask,
            l1['w_ih'], l1['w_hh_f'], l1['w_hh_b'], l1['b'],
            l2['w_ih'], l2['w_hh_f'], l2['w_hh_b'], l2['b'],
            mlp['w1'], mlp['b1'], mlp['w2'], mlp['b2'],
            mlp['w3'], mlp['b3'])
    # TODO(synk): for long sequences, chunk the time axis (grid over T chunks,
    # h/c carried in scratch) so gx_scr/seq_scr stay within v7x's 64 MiB VMEM.
    # TODO(synk): on v7x the two directions could be sharded across the two
    # TensorCores (grid over direction, "parallel"); kept single-core here
    # because layer 2 consumes both directions of layer 1 and the fused
    # footprint (<1 MiB) is tiny.
    return pl.pallas_call(
        kernel,
        out_shape=jax.ShapeDtypeStruct((batch, MLP_PAD), jnp.float32),
        grid=(1,),
        in_specs=[pl.BlockSpec(a.shape, full) for a in args],
        out_specs=pl.BlockSpec((batch, MLP_PAD), full),
        scratch_shapes=[pltpu.VMEM((TB, 8 * H), jnp.float32),
                        pltpu.VMEM((TB, 2 * H), jnp.float32)],
        compiler_params=pltpu.CompilerParams(
            dimension_semantics=("arbitrary",)),
    )(*args)


# --------------------------- parameters (synthetic) --------------------------
def _reorder_gates(w, h):
    """PyTorch LSTM gate order [i, f, g, o] (axis 0) -> kernel [i, f, o, g]."""
    return jnp.concatenate([w[0:h], w[h:2 * h], w[3 * h:4 * h], w[2 * h:3 * h]],
                           axis=0)


def init_params(key):
    keys = jax.random.split(key, 40)
    ki = iter(keys)
    params = {}
    params['embedding'] = 0.1 * jax.random.normal(
        next(ki), (VOCAB, EMBED), jnp.float32)

    lstm = []
    din = EMBED
    k = 1.0 / (HIDDEN ** 0.5)
    for _ in range(NUM_LAYERS):
        wih_parts, b_parts, whh_t = [], [], {}
        for d in ('f', 'b'):   # forward / backward directions
            w_ih = jax.random.uniform(next(ki), (4 * HIDDEN, din),
                                      jnp.float32, -k, k)
            w_hh = jax.random.uniform(next(ki), (4 * HIDDEN, HIDDEN),
                                      jnp.float32, -k, k)
            b_ih = jax.random.uniform(next(ki), (4 * HIDDEN,),
                                      jnp.float32, -k, k)
            b_hh = jax.random.uniform(next(ki), (4 * HIDDEN,),
                                      jnp.float32, -k, k)
            # Repack: gate order [i,f,g,o] -> [i,f,o,g], transpose, fold biases.
            w_ih = _reorder_gates(w_ih, HIDDEN)
            w_hh = _reorder_gates(w_hh, HIDDEN)
            bias = _reorder_gates(b_ih + b_hh, HIDDEN)
            wih_parts.append(w_ih.T)              # (din, 4H)
            b_parts.append(bias)                  # (4H,)
            whh_t[d] = w_hh.T                     # (H, 4H)
        lstm.append({
            'w_ih': jnp.concatenate(wih_parts, axis=1).astype(jnp.bfloat16),
            'w_hh_f': whh_t['f'].astype(jnp.bfloat16),
            'w_hh_b': whh_t['b'].astype(jnp.bfloat16),
            'b': jnp.concatenate(b_parts).reshape(1, -1),        # (1, 8H) f32
        })
        din = 2 * HIDDEN            # bidirectional concat feeds next layer
    params['lstm'] = lstm

    # MLP: weights transposed and zero-padded to lane-dense 128x128 blocks.
    mlp = {}
    dims = HIDDEN_DIMS + [OUTPUT_DIM]
    for idx in range(len(HIDDEN_DIMS)):
        d_in, d_out = dims[idx], dims[idx + 1]
        kk = 1.0 / (d_in ** 0.5)
        w = jax.random.uniform(next(ki), (d_out, d_in), jnp.float32, -kk, kk)
        b = jax.random.uniform(next(ki), (d_out,), jnp.float32, -kk, kk)
        w_pad = jnp.zeros((MLP_PAD, MLP_PAD), jnp.float32)
        w_pad = w_pad.at[:d_in, :d_out].set(w.T)
        b_pad = jnp.zeros((1, MLP_PAD), jnp.float32).at[0, :d_out].set(b)
        mlp[f'w{idx + 1}'] = w_pad.astype(jnp.bfloat16)
        mlp[f'b{idx + 1}'] = b_pad
    params['mlp'] = mlp
    return params


# ------------------------------ full forward ---------------------------------
def sentiment_lstm_forward(params, ids, lengths):
    """ids: (B, T) int32 token ids; lengths: (B,) int32 -> (B, OUTPUT_DIM)."""
    B, T = ids.shape
    B_pad = ((B + 7) // 8) * 8                        # f32 sublane multiple
    ids_p = jnp.pad(ids, ((0, B_pad - B), (0, 0)))
    len_p = jnp.pad(lengths.astype(jnp.int32), (0, B_pad - B))   # pad: len 0

    # Embedding lookup + time-major 2-D flatten (row = t*B_pad + b), bf16.
    emb = jnp.take(params['embedding'], ids_p, axis=0)            # (B_pad,T,E)
    x = (jnp.transpose(emb, (1, 0, 2))                            # (T,B_pad,E)
         .reshape(T * B_pad, EMBED).astype(jnp.bfloat16))

    # Validity mask (t < length[b]), pre-broadcast to H lanes: (T*B_pad, H).
    valid = jnp.arange(T, dtype=jnp.int32)[:, None] < len_p[None, :]
    mask = jnp.broadcast_to(valid.reshape(T * B_pad, 1),
                            (T * B_pad, HIDDEN)).astype(jnp.float32)

    l1, l2 = params['lstm']
    logits = _fused_forward(x, mask, l1, l2, params['mlp'],
                            seq_len=T, batch=B_pad)               # (B_pad,128)
    # TODO(synk): nn.Dropout / LSTM inter-layer dropout skipped (inference).
    return logits[:B, :OUTPUT_DIM]


# --------------------------- pure-JAX reference ------------------------------
def reference_forward(params, ids, lengths):
    """Pure-JAX reference mirroring the kernel's bf16 matmul casts."""
    B, T = ids.shape
    H = HIDDEN
    lengths = lengths.astype(jnp.int32)
    seq = jnp.take(params['embedding'], ids, axis=0)              # (B, T, E)

    def run_layer(x_seq, lp):
        din = x_seq.shape[-1]
        gx = (jnp.dot(x_seq.reshape(B * T, din).astype(jnp.bfloat16),
                      lp['w_ih'], preferred_element_type=jnp.float32)
              .reshape(B, T, 8 * H) + lp['b'][0])

        def scan_dir(whh, c0, reverse):
            h = jnp.zeros((B, H), jnp.float32)
            c = jnp.zeros((B, H), jnp.float32)
            outs = [None] * T
            order = range(T - 1, -1, -1) if reverse else range(T)
            for t in order:
                gates = gx[:, t, c0:c0 + 4 * H] + jnp.dot(
                    h.astype(jnp.bfloat16), whh,
                    preferred_element_type=jnp.float32)
                s = jax.nn.sigmoid(gates[:, 0:3 * H])
                g = jnp.tanh(gates[:, 3 * H:4 * H])
                c_new = s[:, H:2 * H] * c + s[:, 0:H] * g
                h_new = s[:, 2 * H:3 * H] * jnp.tanh(c_new)
                m = (t < lengths).astype(jnp.float32)[:, None]
                c = c + m * (c_new - c)
                h = h + m * (h_new - h)
                outs[t] = m * h
            return jnp.stack(outs, axis=1), h

        out_f, h_f = scan_dir(lp['w_hh_f'], 0, reverse=False)
        out_b, h_b = scan_dir(lp['w_hh_b'], 4 * H, reverse=True)
        return (jnp.concatenate([out_f, out_b], axis=-1),
                jnp.concatenate([h_f, h_b], axis=-1))

    hcat = None
    for lp in params['lstm']:
        seq, hcat = run_layer(seq, lp)
    h = hcat
    for i in (1, 2, 3):
        h = jnp.maximum(jnp.dot(h.astype(jnp.bfloat16), params['mlp'][f'w{i}'],
                                preferred_element_type=jnp.float32)
                        + params['mlp'][f'b{i}'][0], 0.0)
    return h[:, :OUTPUT_DIM]


if __name__ == "__main__":
    key = jax.random.PRNGKey(0)
    kp, kx = jax.random.split(key)
    params = init_params(kp)

    B, T = 2, 8
    ids = jax.random.randint(kx, (B, T), 0, VOCAB, dtype=jnp.int32)
    lengths = jnp.array([8, 5], dtype=jnp.int32)

    forward = jax.jit(sentiment_lstm_forward)
    out = jax.block_until_ready(forward(params, ids, lengths))
    assert out.shape == (B, OUTPUT_DIM) and out.dtype == jnp.float32

    # Pure-JAX reference check (guards the masked / interleaved scan logic).
    ref = jax.block_until_ready(reference_forward(params, ids, lengths))
    err = float(jnp.max(jnp.abs(out - ref)))
    assert err < 1e-2, f"kernel/reference mismatch: max abs err {err}"
    print("KERNEL_OK")
</pallas_src>

<mosaic_0001>
module attributes {stable_mosaic.version = 11 : i64} {
  func.func @_fused_forward_kernel(%arg0: i32, %arg1: memref<64x64xbf16, #tpu.memory_space<vmem>>, %arg2: memref<64x64xf32, #tpu.memory_space<vmem>>, %arg3: memref<64x512xbf16, #tpu.memory_space<vmem>>, %arg4: memref<64x256xbf16, #tpu.memory_space<vmem>>, %arg5: memref<64x256xbf16, #tpu.memory_space<vmem>>, %arg6: memref<1x512xf32, #tpu.memory_space<vmem>>, %arg7: memref<128x512xbf16, #tpu.memory_space<vmem>>, %arg8: memref<64x256xbf16, #tpu.memory_space<vmem>>, %arg9: memref<64x256xbf16, #tpu.memory_space<vmem>>, %arg10: memref<1x512xf32, #tpu.memory_space<vmem>>, %arg11: memref<128x128xbf16, #tpu.memory_space<vmem>>, %arg12: memref<1x128xf32, #tpu.memory_space<vmem>>, %arg13: memref<128x128xbf16, #tpu.memory_space<vmem>>, %arg14: memref<1x128xf32, #tpu.memory_space<vmem>>, %arg15: memref<128x128xbf16, #tpu.memory_space<vmem>>, %arg16: memref<1x128xf32, #tpu.memory_space<vmem>>, %arg17: memref<8x128xf32, #tpu.memory_space<vmem>>, %arg18: memref<64x512xf32, #tpu.memory_space<vmem>>, %arg19: memref<64x128xf32, #tpu.memory_space<vmem>>) attributes {dimension_semantics = [#tpu.dimension_semantics<arbitrary>], iteration_bounds = array<i64: 1>, scalar_prefetch = 0 : i64, scratch_operands = 2 : i64, tpu.core_type = #tpu.core_type<tc>, window_params = [{pipeline_mode = #tpu.pipeline_mode<synchronous>, transform_indices = @transform_0, window_bounds = array<i64: 64, 64>}, {pipeline_mode = #tpu.pipeline_mode<synchronous>, transform_indices = @transform_1, window_bounds = array<i64: 64, 64>}, {pipeline_mode = #tpu.pipeline_mode<synchronous>, transform_indices = @transform_2, window_bounds = array<i64: 64, 512>}, {pipeline_mode = #tpu.pipeline_mode<synchronous>, transform_indices = @transform_3, window_bounds = array<i64: 64, 256>}, {pipeline_mode = #tpu.pipeline_mode<synchronous>, transform_indices = @transform_4, window_bounds = array<i64: 64, 256>}, {pipeline_mode = #tpu.pipeline_mode<synchronous>, transform_indices = @transform_5, window_bounds = array<i64: 1, 512>}, {pipeline_mode = #tpu.pipeline_mode<synchronous>, transform_indices = @transform_6, window_bounds = array<i64: 128, 512>}, {pipeline_mode = #tpu.pipeline_mode<synchronous>, transform_indices = @transform_7, window_bounds = array<i64: 64, 256>}, {pipeline_mode = #tpu.pipeline_mode<synchronous>, transform_indices = @transform_8, window_bounds = array<i64: 64, 256>}, {pipeline_mode = #tpu.pipeline_mode<synchronous>, transform_indices = @transform_9, window_bounds = array<i64: 1, 512>}, {pipeline_mode = #tpu.pipeline_mode<synchronous>, transform_indices = @transform_10, window_bounds = array<i64: 128, 128>}, {pipeline_mode = #tpu.pipeline_mode<synchronous>, transform_indices = @transform_11, window_bounds = array<i64: 1, 128>}, {pipeline_mode = #tpu.pipeline_mode<synchronous>, transform_indices = @transform_12, window_bounds = array<i64: 128, 128>}, {pipeline_mode = #tpu.pipeline_mode<synchronous>, transform_indices = @transform_13, window_bounds = array<i64: 1, 128>}, {pipeline_mode = #tpu.pipeline_mode<synchronous>, transform_indices = @transform_14, window_bounds = array<i64: 128, 128>}, {pipeline_mode = #tpu.pipeline_mode<synchronous>, transform_indices = @transform_15, window_bounds = array<i64: 1, 128>}, {pipeline_mode = #tpu.pipeline_mode<synchronous>, transform_indices = @transform_16, window_bounds = array<i64: 8, 128>}]} {
    %c0 = arith.constant 0 : index
    %c0_0 = arith.constant 0 : index
    %0 = vector.load %arg1[%c0, %c0_0] : memref<64x64xbf16, #tpu.memory_space<vmem>>, vector<64x64xbf16>
    %c0_1 = arith.constant 0 : index
    %c0_2 = arith.constant 0 : index
    %1 = vector.load %arg3[%c0_1, %c0_2] : memref<64x512xbf16, #tpu.memory_space<vmem>>, vector<64x512xbf16>
    %cst = arith.constant dense<0.000000e+00> : vector<64x512xf32>
    %2 = tpu.matmul %0, %1, %cst {dimension_numbers = #tpu.dot_dimension_numbers<[1], [0], [0], [1], [0, 0, 1, 1], [], []>} : vector<64x64xbf16>, vector<64x512xbf16>, vector<64x512xf32> -> vector<64x512xf32>
    %c0_3 = arith.constant 0 : index
    %c0_4 = arith.constant 0 : index
    %3 = vector.load %arg6[%c0_3, %c0_4] : memref<1x512xf32, #tpu.memory_space<vmem>>, vector<1x512xf32>
    %4 = vector.broadcast %3 : vector<1x512xf32> to vector<64x512xf32>
    %5 = arith.addf %2, %4 : vector<64x512xf32>
    %c0_5 = arith.constant 0 : index
    %c0_6 = arith.constant 0 : index
    %6 = vector.load %arg18[%c0_5, %c0_6] : memref<64x512xf32, #tpu.memory_space<vmem>>, vector<64x512xf32>
    tpu.vector_store %arg18[%c0_5, %c0_6], %5 {strides = array<i32>} : memref<64x512xf32, #tpu.memory_space<vmem>>, vector<64x512xf32>,
    %c0_7 = arith.constant 0 : index
    %c0_8 = arith.constant 0 : index
    %7 = vector.load %arg4[%c0_7, %c0_8] : memref<64x256xbf16, #tpu.memory_space<vmem>>, vector<64x256xbf16>
    %c0_9 = arith.constant 0 : index
    %c0_10 = arith.constant 0 : index
    %8 = vector.load %arg5[%c0_9, %c0_10] : memref<64x256xbf16, #tpu.memory_space<vmem>>, vector<64x256xbf16>
    %cst_11 = arith.constant 0.000000e+00 : f32
    %9 = vector.broadcast %cst_11 : f32 to vector<8x64xf32>
    %c0_i32 = arith.constant 0 : i32
    %c8_i32 = arith.constant 8 : i32
    %10 = arith.muli %c0_i32, %c8_i32 : i32
    %11 = tpu.assume_multiple %10, 8 : i32
    %c7_i32 = arith.constant 7 : i32
    %12 = arith.subi %c7_i32, %c0_i32 : i32
    %c8_i32_12 = arith.constant 8 : i32
    %13 = arith.muli %12, %c8_i32_12 : i32
    %14 = tpu.assume_multiple %13, 8 : i32
    %15 = arith.index_cast %11 : i32 to index
    %c0_13 = arith.constant 0 : index
    %16 = vector.load %arg2[%15, %c0_13] : memref<64x64xf32, #tpu.memory_space<vmem>>, vector<8x64xf32>
    %17 = arith.index_cast %14 : i32 to index
    %c0_14 = arith.constant 0 : index
    %18 = vector.load %arg2[%17, %c0_14] : memref<64x64xf32, #tpu.memory_space<vmem>>, vector<8x64xf32>
    %19 = arith.index_cast %11 : i32 to index
    %c0_15 = arith.constant 0 : index
    %20 = vector.load %arg18[%19, %c0_15] : memref<64x512xf32, #tpu.memory_space<vmem>>, vector<8x256xf32>
    %21 = arith.truncf %9 : vector<8x64xf32> to vector<8x64xbf16>
    %cst_16 = arith.constant dense<0.000000e+00> : vector<8x256xf32>
    %22 = tpu.matmul %21, %7, %cst_16 {dimension_numbers = #tpu.dot_dimension_numbers<[1], [0], [0], [1], [0, 0, 1, 1], [], []>} : vector<8x64xbf16>, vector<64x256xbf16>, vector<8x256xf32> -> vector<8x256xf32>
    %23 = arith.addf %20, %22 : vector<8x256xf32>
    %24 = arith.index_cast %14 : i32 to index
    %c256 = arith.constant 256 : index
    %25 = vector.load %arg18[%24, %c256] : memref<64x512xf32, #tpu.memory_space<vmem>>, vector<8x256xf32>
    %26 = arith.truncf %9 : vector<8x64xf32> to vector<8x64xbf16>
    %cst_17 = arith.constant dense<0.000000e+00> : vector<8x256xf32>
    %27 = tpu.matmul %26, %8, %cst_17 {dimension_numbers = #tpu.dot_dimension_numbers<[1], [0], [0], [1], [0, 0, 1, 1], [], []>} : vector<8x64xbf16>, vector<64x256xbf16>, vector<8x256xf32> -> vector<8x256xf32>
    %28 = arith.addf %25, %27 : vector<8x256xf32>
    %29 = vector.extract_strided_slice %23 {offsets = [0, 0], sizes = [8, 192], strides = [1, 1]} : vector<8x256xf32> to vector<8x192xf32>
    %30 = arith.negf %29 : vector<8x192xf32>
    %31 = math.exp %30 : vector<8x192xf32>
    %cst_18 = arith.constant 1.000000e+00 : f32
    %32 = vector.broadcast %cst_18 : f32 to vector<8x192xf32>
    %33 = arith.addf %32, %31 : vector<8x192xf32>
    %34 = arith.divf %32, %33 : vector<8x192xf32>
    %35 = vector.extract_strided_slice %23 {offsets = [0, 192], sizes = [8, 64], strides = [1, 1]} : vector<8x256xf32> to vector<8x64xf32>
    %36 = math.tanh %35 : vector<8x64xf32>
    %37 = vector.extract_strided_slice %34 {offsets = [0, 0], sizes = [8, 64], strides = [1, 1]} : vector<8x192xf32> to vector<8x64xf32>
    %38 = vector.extract_strided_slice %34 {offsets = [0, 64], sizes = [8, 64], strides = [1, 1]} : vector<8x192xf32> to vector<8x64xf32>
    %39 = vector.extract_strided_slice %34 {offsets = [0, 128], sizes = [8, 64], strides = [1, 1]} : vector<8x192xf32> to vector<8x64xf32>
    %40 = arith.mulf %38, %9 : vector<8x64xf32>
    %41 = arith.mulf %37, %36 : vector<8x64xf32>
    %42 = arith.addf %40, %41 : vector<8x64xf32>
    %43 = math.tanh %42 : vector<8x64xf32>
    %44 = arith.mulf %39, %43 : vector<8x64xf32>
    %45 = arith.subf %42, %9 : vector<8x64xf32>
    %46 = arith.mulf %16, %45 : vector<8x64xf32>
    %47 = arith.addf %9, %46 : vector<8x64xf32>
    %48 = arith.subf %44, %9 : vector<8x64xf32>
    %49 = arith.mulf %16, %48 : vector<8x64xf32>
    %50 = arith.addf %9, %49 : vector<8x64xf32>
    %51 = vector.extract_strided_slice %28 {offsets = [0, 0], sizes = [8, 192], strides = [1, 1]} : vector<8x256xf32> to vector<8x192xf32>
    %52 = arith.negf %51 : vector<8x192xf32>
    %53 = math.exp %52 : vector<8x192xf32>
    %cst_19 = arith.constant 1.000000e+00 : f32
    %54 = vector.broadcast %cst_19 : f32 to vector<8x192xf32>
    %55 = arith.addf %54, %53 : vector<8x192xf32>
    %56 = arith.divf %54, %55 : vector<8x192xf32>
    %57 = vector.extract_strided_slice %28 {offsets = [0, 192], sizes = [8, 64], strides = [1, 1]} : vector<8x256xf32> to vector<8x64xf32>
    %58 = math.tanh %57 : vector<8x64xf32>
    %59 = vector.extract_strided_slice %56 {offsets = [0, 0], sizes = [8, 64], strides = [1, 1]} : vector<8x192xf32> to vector<8x64xf32>
    %60 = vector.extract_strided_slice %56 {offsets = [0, 64], sizes = [8, 64], strides = [1, 1]} : vector<8x192xf32> to vector<8x64xf32>
    %61 = vector.extract_strided_slice %56 {offsets = [0, 128], sizes = [8, 64], strides = [1, 1]} : vector<8x192xf32> to vector<8x64xf32>
    %62 = arith.mulf %60, %9 : vector<8x64xf32>
    %63 = arith.mulf %59, %58 : vector<8x64xf32>
    %64 = arith.addf %62, %63 : vector<8x64xf32>
    %65 = math.tanh %64 : vector<8x64xf32>
    %66 = arith.mulf %61, %65 : vector<8x64xf32>
    %67 = arith.subf %64, %9 : vector<8x64xf32>
    %68 = arith.mulf %18, %67 : vector<8x64xf32>
    %69 = arith.addf %9, %68 : vector<8x64xf32>
    %70 = arith.subf %66, %9 : vector<8x64xf32>
    %71 = arith.mulf %18, %70 : vector<8x64xf32>
    %72 = arith.addf %9, %71 : vector<8x64xf32>
    %73 = arith.mulf %16, %50 : vector<8x64xf32>
    %74 = arith.index_cast %11 : i32 to index
    %c0_20 = arith.constant 0 : index
    %75 = vector.load %arg19[%74, %c0_20] : memref<64x128xf32, #tpu.memory_space<vmem>>, vector<8x64xf32>
    tpu.vector_store %arg19[%74, %c0_20], %73 {strides = array<i32>} : memref<64x128xf32, #tpu.memory_space<vmem>>, vector<8x64xf32>,
    %76 = arith.mulf %18, %72 : vector<8x64xf32>
    %77 = arith.index_cast %14 : i32 to index
    %c64 = arith.constant 64 : index
    %78 = vector.load %arg19[%77, %c64] : memref<64x128xf32, #tpu.memory_space<vmem>>, vector<8x64xf32>
    tpu.vector_store %arg19[%77, %c64], %76 {strides = array<i32>} : memref<64x128xf32, #tpu.memory_space<vmem>>, vector<8x64xf32>,
    %c1_i32 = arith.constant 1 : i32
    %c8_i32_21 = arith.constant 8 : i32
    %79 = arith.muli %c1_i32, %c8_i32_21 : i32
    %80 = tpu.assume_multiple %79, 8 : i32
    %c7_i32_22 = arith.constant 7 : i32
    %81 = arith.subi %c7_i32_22, %c1_i32 : i32
    %c8_i32_23 = arith.constant 8 : i32
    %82 = arith.muli %81, %c8_i32_23 : i32
    %83 = tpu.assume_multiple %82, 8 : i32
    %84 = arith.index_cast %80 : i32 to index
    %c0_24 = arith.constant 0 : index
    %85 = vector.load %arg2[%84, %c0_24] : memref<64x64xf32, #tpu.memory_space<vmem>>, vector<8x64xf32>
    %86 = arith.index_cast %83 : i32 to index
    %c0_25 = arith.constant 0 : index
    %87 = vector.load %arg2[%86, %c0_25] : memref<64x64xf32, #tpu.memory_space<vmem>>, vector<8x64xf32>
    %88 = arith.index_cast %80 : i32 to index
    %c0_26 = arith.constant 0 : index
    %89 = vector.load %arg18[%88, %c0_26] : memref<64x512xf32, #tpu.memory_space<vmem>>, vector<8x256xf32>
    %90 = arith.truncf %50 : vector<8x64xf32> to vector<8x64xbf16>
    %cst_27 = arith.constant dense<0.000000e+00> : vector<8x256xf32>
    %91 = tpu.matmul %90, %7, %cst_27 {dimension_numbers = #tpu.dot_dimension_numbers<[1], [0], [0], [1], [0, 0, 1, 1], [], []>} : vector<8x64xbf16>, vector<64x256xbf16>, vector<8x256xf32> -> vector<8x256xf32>
    %92 = arith.addf %89, %91 : vector<8x256xf32>
    %93 = arith.index_cast %83 : i32 to index
    %c256_28 = arith.constant 256 : index
    %94 = vector.load %arg18[%93, %c256_28] : memref<64x512xf32, #tpu.memory_space<vmem>>, vector<8x256xf32>
    %95 = arith.truncf %72 : vector<8x64xf32> to vector<8x64xbf16>
    %cst_29 = arith.constant dense<0.000000e+00> : vector<8x256xf32>
    %96 = tpu.matmul %95, %8, %cst_29 {dimension_numbers = #tpu.dot_dimension_numbers<[1], [0], [0], [1], [0, 0, 1, 1], [], []>} : vector<8x64xbf16>, vector<64x256xbf16>, vector<8x256xf32> -> vector<8x256xf32>
    %97 = arith.addf %94, %96 : vector<8x256xf32>
    %98 = vector.extract_strided_slice %92 {offsets = [0, 0], sizes = [8, 192], strides = [1, 1]} : vector<8x256xf32> to vector<8x192xf32>
    %99 = arith.negf %98 : vector<8x192xf32>
    %100 = math.exp %99 : vector<8x192xf32>
    %cst_30 = arith.constant 1.000000e+00 : f32
    %101 = vector.broadcast %cst_30 : f32 to vector<8x192xf32>
    %102 = arith.addf %101, %100 : vector<8x192xf32>
    %103 = arith.divf %101, %102 : vector<8x192xf32>
    %104 = vector.extract_strided_slice %92 {offsets = [0, 192], sizes = [8, 64], strides = [1, 1]} : vector<8x256xf32> to vector<8x64xf32>
    %105 = math.tanh %104 : vector<8x64xf32>
    %106 = vector.extract_strided_slice %103 {offsets = [0, 0], sizes = [8, 64], strides = [1, 1]} : vector<8x192xf32> to vector<8x64xf32>
    %107 = vector.extract_strided_slice %103 {offsets = [0, 64], sizes = [8, 64], strides = [1, 1]} : vector<8x192xf32> to vector<8x64xf32>
    %108 = vector.extract_strided_slice %103 {offsets = [0, 128], sizes = [8, 64], strides = [1, 1]} : vector<8x192xf32> to vector<8x64xf32>
    %109 = arith.mulf %107, %47 : vector<8x64xf32>
    %110 = arith.mulf %106, %105 : vector<8x64xf32>
    %111 = arith.addf %109, %110 : vector<8x64xf32>
    %112 = math.tanh %111 : vector<8x64xf32>
    %113 = arith.mulf %108, %112 : vector<8x64xf32>
    %114 = arith.subf %111, %47 : vector<8x64xf32>
    %115 = arith.mulf %85, %114 : vector<8x64xf32>
    %116 = arith.addf %47, %115 : vector<8x64xf32>
    %117 = arith.subf %113, %50 : vector<8x64xf32>
    %118 = arith.mulf %85, %117 : vector<8x64xf32>
    %119 = arith.addf %50, %118 : vector<8x64xf32>
    %120 = vector.extract_strided_slice %97 {offsets = [0, 0], sizes = [8, 192], strides = [1, 1]} : vector<8x256xf32> to vector<8x192xf32>
    %121 = arith.negf %120 : vector<8x192xf32>
    %122 = math.exp %121 : vector<8x192xf32>
    %cst_31 = arith.constant 1.000000e+00 : f32
    %123 = vector.broadcast %cst_31 : f32 to vector<8x192xf32>
    %124 = arith.addf %123, %122 : vector<8x192xf32>
    %125 = arith.divf %123, %124 : vector<8x192xf32>
    %126 = vector.extract_strided_slice %97 {offsets = [0, 192], sizes = [8, 64], strides = [1, 1]} : vector<8x256xf32> to vector<8x64xf32>
    %127 = math.tanh %126 : vector<8x64xf32>
    %128 = vector.extract_strided_slice %125 {offsets = [0, 0], sizes = [8, 64], strides = [1, 1]} : vector<8x192xf32> to vector<8x64xf32>
    %129 = vector.extract_strided_slice %125 {offsets = [0, 64], sizes = [8, 64], strides = [1, 1]} : vector<8x192xf32> to vector<8x64xf32>
    %130 = vector.extract_strided_slice %125 {offsets = [0, 128], sizes = [8, 64], strides = [1, 1]} : vector<8x192xf32> to vector<8x64xf32>
    %131 = arith.mulf %129, %69 : vector<8x64xf32>
    %132 = arith.mulf %128, %127 : vector<8x64xf32>
    %133 = arith.addf %131, %132 : vector<8x64xf32>
    %134 = math.tanh %133 : vector<8x64xf32>
    %135 = arith.mulf %130, %134 : vector<8x64xf32>
    %136 = arith.subf %133, %69 : vector<8x64xf32>
    %137 = arith.mulf %87, %136 : vector<8x64xf32>
    %138 = arith.addf %69, %137 : vector<8x64xf32>
    %139 = arith.subf %135, %72 : vector<8x64xf32>
    %140 = arith.mulf %87, %139 : vector<8x64xf32>
    %141 = arith.addf %72, %140 : vector<8x64xf32>
    %142 = arith.mulf %85, %119 : vector<8x64xf32>
    %143 = arith.index_cast %80 : i32 to index
    %c0_32 = arith.constant 0 : index
    %144 = vector.load %arg19[%143, %c0_32] : memref<64x128xf32, #tpu.memory_space<vmem>>, vector<8x64xf32>
    tpu.vector_store %arg19[%143, %c0_32], %142 {strides = array<i32>} : memref<64x128xf32, #tpu.memory_space<vmem>>, vector<8x64xf32>,
    %145 = arith.mulf %87, %141 : vector<8x64xf32>
    %146 = arith.index_cast %83 : i32 to index
    %c64_33 = arith.constant 64 : index
    %147 = vector.load %arg19[%146, %c64_33] : memref<64x128xf32, #tpu.memory_space<vmem>>, vector<8x64xf32>
    tpu.vector_store %arg19[%146, %c64_33], %145 {strides = array<i32>} : memref<64x128xf32, #tpu.memory_space<vmem>>, vector<8x64xf32>,
    %c2_i32 = arith.constant 2 : i32
    %c8_i32_34 = arith.constant 8 : i32
    %148 = arith.muli %c2_i32, %c8_i32_34 : i32
    %149 = tpu.assume_multiple %148, 8 : i32
    %c7_i32_35 = arith.constant 7 : i32
    %150 = arith.subi %c7_i32_35, %c2_i32 : i32
    %c8_i32_36 = arith.constant 8 : i32
    %151 = arith.muli %150, %c8_i32_36 : i32
    %152 = tpu.assume_multiple %151, 8 : i32
    %153 = arith.index_cast %149 : i32 to index
    %c0_37 = arith.constant 0 : index
    %154 = vector.load %arg2[%153, %c0_37] : memref<64x64xf32, #tpu.memory_space<vmem>>, vector<8x64xf32>
    %155 = arith.index_cast %152 : i32 to index
    %c0_38 = arith.constant 0 : index
    %156 = vector.load %arg2[%155, %c0_38] : memref<64x64xf32, #tpu.memory_space<vmem>>, vector<8x64xf32>
    %157 = arith.index_cast %149 : i32 to index
    %c0_39 = arith.constant 0 : index
    %158 = vector.load %arg18[%157, %c0_39] : memref<64x512xf32, #tpu.memory_space<vmem>>, vector<8x256xf32>
    %159 = arith.truncf %119 : vector<8x64xf32> to vector<8x64xbf16>
    %cst_40 = arith.constant dense<0.000000e+00> : vector<8x256xf32>
    %160 = tpu.matmul %159, %7, %cst_40 {dimension_numbers = #tpu.dot_dimension_numbers<[1], [0], [0], [1], [0, 0, 1, 1], [], []>} : vector<8x64xbf16>, vector<64x256xbf16>, vector<8x256xf32> -> vector<8x256xf32>
    %161 = arith.addf %158, %160 : vector<8x256xf32>
    %162 = arith.index_cast %152 : i32 to index
    %c256_41 = arith.constant 256 : index
    %163 = vector.load %arg18[%162, %c256_41] : memref<64x512xf32, #tpu.memory_space<vmem>>, vector<8x256xf32>
    %164 = arith.truncf %141 : vector<8x64xf32> to vector<8x64xbf16>
    %cst_42 = arith.constant dense<0.000000e+00> : vector<8x256xf32>
    %165 = tpu.matmul %164, %8, %cst_42 {dimension_numbers = #tpu.dot_dimension_numbers<[1], [0], [0], [1], [0, 0, 1, 1], [], []>} : vector<8x64xbf16>, vector<64x256xbf16>, vector<8x256xf32> -> vector<8x256xf32>
    %166 = arith.addf %163, %165 : vector<8x256xf32>
    %167 = vector.extract_strided_slice %161 {offsets = [0, 0], sizes = [8, 192], strides = [1, 1]} : vector<8x256xf32> to vector<8x192xf32>
    %168 = arith.negf %167 : vector<8x192xf32>
    %169 = math.exp %168 : vector<8x192xf32>
    %cst_43 = arith.constant 1.000000e+00 : f32
    %170 = vector.broadcast %cst_43 : f32 to vector<8x192xf32>
    %171 = arith.addf %170, %169 : vector<8x192xf32>
    %172 = arith.divf %170, %171 : vector<8x192xf32>
    %173 = vector.extract_strided_slice %161 {offsets = [0, 192], sizes = [8, 64], strides = [1, 1]} : vector<8x256xf32> to vector<8x64xf32>
    %174 = math.tanh %173 : vector<8x64xf32>
    %175 = vector.extract_strided_slice %172 {offsets = [0, 0], sizes = [8, 64], strides = [1, 1]} : vector<8x192xf32> to vector<8x64xf32>
    %176 = vector.extract_strided_slice %172 {offsets = [0, 64], sizes = [8, 64], strides = [1, 1]} : vector<8x192xf32> to vector<8x64xf32>
    %177 = vector.extract_strided_slice %172 {offsets = [0, 128], sizes = [8, 64], strides = [1, 1]} : vector<8x192xf32> to vector<8x64xf32>
    %178 = arith.mulf %176, %116 : vector<8x64xf32>
    %179 = arith.mulf %175, %174 : vector<8x64xf32>
    %180 = arith.addf %178, %179 : vector<8x64xf32>
    %181 = math.tanh %180 : vector<8x64xf32>
    %182 = arith.mulf %177, %181 : vector<8x64xf32>
    %183 = arith.subf %180, %116 : vector<8x64xf32>
    %184 = arith.mulf %154, %183 : vector<8x64xf32>
    %185 = arith.addf %116, %184 : vector<8x64xf32>
    %186 = arith.subf %182, %119 : vector<8x64xf32>
    %187 = arith.mulf %154, %186 : vector<8x64xf32>
    %188 = arith.addf %119, %187 : vector<8x64xf32>
    %189 = vector.extract_strided_slice %166 {offsets = [0, 0], sizes = [8, 192], strides = [1, 1]} : vector<8x256xf32> to vector<8x192xf32>
    %190 = arith.negf %189 : vector<8x192xf32>
    %191 = math.exp %190 : vector<8x192xf32>
    %cst_44 = arith.constant 1.000000e+00 : f32
    %192 = vector.broadcast %cst_44 : f32 to vector<8x192xf32>
    %193 = arith.addf %192, %191 : vector<8x192xf32>
    %194 = arith.divf %192, %193 : vector<8x192xf32>
    %195 = vector.extract_strided_slice %166 {offsets = [0, 192], sizes = [8, 64], strides = [1, 1]} : vector<8x256xf32> to vector<8x64xf32>
    %196 = math.tanh %195 : vector<8x64xf32>
    %197 = vector.extract_strided_slice %194 {offsets = [0, 0], sizes = [8, 64], strides = [1, 1]} : vector<8x192xf32> to vector<8x64xf32>
    %198 = vector.extract_strided_slice %194 {offsets = [0, 64], sizes = [8, 64], strides = [1, 1]} : vector<8x192xf32> to vector<8x64xf32>
    %199 = vector.extract_strided_slice %194 {offsets = [0, 128], sizes = [8, 64], strides = [1, 1]} : vector<8x192xf32> to vector<8x64xf32>
    %200 = arith.mulf %198, %138 : vector<8x64xf32>
    %201 = arith.mulf %197, %196 : vector<8x64xf32>
    %202 = arith.addf %200, %201 : vector<8x64xf32>
    %203 = math.tanh %202 : vector<8x64xf32>
    %204 = arith.mulf %199, %203 : vector<8x64xf32>
    %205 = arith.subf %202, %138 : vector<8x64xf32>
    %206 = arith.mulf %156, %205 : vector<8x64xf32>
    %207 = arith.addf %138, %206 : vector<8x64xf32>
    %208 = arith.subf %204, %141 : vector<8x64xf32>
    %209 = arith.mulf %156, %208 : vector<8x64xf32>
    %210 = arith.addf %141, %209 : vector<8x64xf32>
    %211 = arith.mulf %154, %188 : vector<8x64xf32>
    %212 = arith.index_cast %149 : i32 to index
    %c0_45 = arith.constant 0 : index
    %213 = vector.load %arg19[%212, %c0_45] : memref<64x128xf32, #tpu.memory_space<vmem>>, vector<8x64xf32>
    tpu.vector_store %arg19[%212, %c0_45], %211 {strides = array<i32>} : memref<64x128xf32, #tpu.memory_space<vmem>>, vector<8x64xf32>,
    %214 = arith.mulf %156, %210 : vector<8x64xf32>
    %215 = arith.index_cast %152 : i32 to index
    %c64_46 = arith.constant 64 : index
    %216 = vector.load %arg19[%215, %c64_46] : memref<64x128xf32, #tpu.memory_space<vmem>>, vector<8x64xf32>
    tpu.vector_store %arg19[%215, %c64_46], %214 {strides = array<i32>} : memref<64x128xf32, #tpu.memory_space<vmem>>, vector<8x64xf32>,
    %c3_i32 = arith.constant 3 : i32
    %c8_i32_47 = arith.constant 8 : i32
    %217 = arith.muli %c3_i32, %c8_i32_47 : i32
    %218 = tpu.assume_multiple %217, 8 : i32
    %c7_i32_48 = arith.constant 7 : i32
    %219 = arith.subi %c7_i32_48, %c3_i32 : i32
    %c8_i32_49 = arith.constant 8 : i32
    %220 = arith.muli %219, %c8_i32_49 : i32
    %221 = tpu.assume_multiple %220, 8 : i32
    %222 = arith.index_cast %218 : i32 to index
    %c0_50 = arith.constant 0 : index
    %223 = vector.load %arg2[%222, %c0_50] : memref<64x64xf32, #tpu.memory_space<vmem>>, vector<8x64xf32>
    %224 = arith.index_cast %221 : i32 to index
    %c0_51 = arith.constant 0 : index
    %225 = vector.load %arg2[%224, %c0_51] : memref<64x64xf32, #tpu.memory_space<vmem>>, vector<8x64xf32>
    %226 = arith.index_cast %218 : i32 to index
    %c0_52 = arith.constant 0 : index
    %227 = vector.load %arg18[%226, %c0_52] : memref<64x512xf32, #tpu.memory_space<vmem>>, vector<8x256xf32>
    %228 = arith.truncf %188 : vector<8x64xf32> to vector<8x64xbf16>
    %cst_53 = arith.constant dense<0.000000e+00> : vector<8x256xf32>
    %229 = tpu.matmul %228, %7, %cst_53 {dimension_numbers = #tpu.dot_dimension_numbers<[1], [0], [0], [1], [0, 0, 1, 1], [], []>} : vector<8x64xbf16>, vector<64x256xbf16>, vector<8x256xf32> -> vector<8x256xf32>
    %230 = arith.addf %227, %229 : vector<8x256xf32>
    %231 = arith.index_cast %221 : i32 to index
    %c256_54 = arith.constant 256 : index
    %232 = vector.load %arg18[%231, %c256_54] : memref<64x512xf32, #tpu.memory_space<vmem>>, vector<8x256xf32>
    %233 = arith.truncf %210 : vector<8x64xf32> to vector<8x64xbf16>
    %cst_55 = arith.constant dense<0.000000e+00> : vector<8x256xf32>
    %234 = tpu.matmul %233, %8, %cst_55 {dimension_numbers = #tpu.dot_dimension_numbers<[1], [0], [0], [1], [0, 0, 1, 1], [], []>} : vector<8x64xbf16>, vector<64x256xbf16>, vector<8x256xf32> -> vector<8x256xf32>
    %235 = arith.addf %232, %234 : vector<8x256xf32>
    %236 = vector.extract_strided_slice %230 {offsets = [0, 0], sizes = [8, 192], strides = [1, 1]} : vector<8x256xf32> to vector<8x192xf32>
    %237 = arith.negf %236 : vector<8x192xf32>
    %238 = math.exp %237 : vector<8x192xf32>
    %cst_56 = arith.constant 1.000000e+00 : f32
    %239 = vector.broadcast %cst_56 : f32 to vector<8x192xf32>
    %240 = arith.addf %239, %238 : vector<8x192xf32>
    %241 = arith.divf %239, %240 : vector<8x192xf32>
    %242 = vector.extract_strided_slice %230 {offsets = [0, 192], sizes = [8, 64], strides = [1, 1]} : vector<8x256xf32> to vector<8x64xf32>
    %243 = math.tanh %242 : vector<8x64xf32>
    %244 = vector.extract_strided_slice %241 {offsets = [0, 0], sizes = [8, 64], strides = [1, 1]} : vector<8x192xf32> to vector<8x64xf32>
    %245 = vector.extract_strided_slice %241 {offsets = [0, 64], sizes = [8, 64], strides = [1, 1]} : vector<8x192xf32> to vector<8x64xf32>
    %246 = vector.extract_strided_slice %241 {offsets = [0, 128], sizes = [8, 64], strides = [1, 1]} : vector<8x192xf32> to vector<8x64xf32>
    %247 = arith.mulf %245, %185 : vector<8x64xf32>
    %248 = arith.mulf %244, %243 : vector<8x64xf32>
    %249 = arith.addf %247, %248 : vector<8x64xf32>
    %250 = math.tanh %249 : vector<8x64xf32>
    %251 = arith.mulf %246, %250 : vector<8x64xf32>
    %252 = arith.subf %249, %185 : vector<8x64xf32>
    %253 = arith.mulf %223, %252 : vector<8x64xf32>
    %254 = arith.addf %185, %253 : vector<8x64xf32>
    %255 = arith.subf %251, %188 : vector<8x64xf32>
    %256 = arith.mulf %223, %255 : vector<8x64xf32>
    %257 = arith.addf %188, %256 : vector<8x64xf32>
    %258 = vector.extract_strided_slice %235 {offsets = [0, 0], sizes = [8, 192], strides = [1, 1]} : vector<8x256xf32> to vector<8x192xf32>
    %259 = arith.negf %258 : vector<8x192xf32>
    %260 = math.exp %259 : vector<8x192xf32>
    %cst_57 = arith.constant 1.000000e+00 : f32
    %261 = vector.broadcast %cst_57 : f32 to vector<8x192xf32>
    %262 = arith.addf %261, %260 : vector<8x192xf32>
    %263 = arith.divf %261, %262 : vector<8x192xf32>
    %264 = vector.extract_strided_slice %235 {offsets = [0, 192], sizes = [8, 64], strides = [1, 1]} : vector<8x256xf32> to vector<8x64xf32>
    %265 = math.tanh %264 : vector<8x64xf32>
    %266 = vector.extract_strided_slice %263 {offsets = [0, 0], sizes = [8, 64], strides = [1, 1]} : vector<8x192xf32> to vector<8x64xf32>
    %267 = vector.extract_strided_slice %263 {offsets = [0, 64], sizes = [8, 64], strides = [1, 1]} : vector<8x192xf32> to vector<8x64xf32>
    %268 = vector.extract_strided_slice %263 {offsets = [0, 128], sizes = [8, 64], strides = [1, 1]} : vector<8x192xf32> to vector<8x64xf32>
    %269 = arith.mulf %267, %207 : vector<8x64xf32>
    %270 = arith.mulf %266, %265 : vector<8x64xf32>
    %271 = arith.addf %269, %270 : vector<8x64xf32>
    %272 = math.tanh %271 : vector<8x64xf32>
    %273 = arith.mulf %268, %272 : vector<8x64xf32>
    %274 = arith.subf %271, %207 : vector<8x64xf32>
    %275 = arith.mulf %225, %274 : vector<8x64xf32>
    %276 = arith.addf %207, %275 : vector<8x64xf32>
    %277 = arith.subf %273, %210 : vector<8x64xf32>
    %278 = arith.mulf %225, %277 : vector<8x64xf32>
    %279 = arith.addf %210, %278 : vector<8x64xf32>
    %280 = arith.mulf %223, %257 : vector<8x64xf32>
    %281 = arith.index_cast %218 : i32 to index
    %c0_58 = arith.constant 0 : index
    %282 = vector.load %arg19[%281, %c0_58] : memref<64x128xf32, #tpu.memory_space<vmem>>, vector<8x64xf32>
    tpu.vector_store %arg19[%281, %c0_58], %280 {strides = array<i32>} : memref<64x128xf32, #tpu.memory_space<vmem>>, vector<8x64xf32>,
    %283 = arith.mulf %225, %279 : vector<8x64xf32>
    %284 = arith.index_cast %221 : i32 to index
    %c64_59 = arith.constant 64 : index
    %285 = vector.load %arg19[%284, %c64_59] : memref<64x128xf32, #tpu.memory_space<vmem>>, vector<8x64xf32>
    tpu.vector_store %arg19[%284, %c64_59], %283 {strides = array<i32>} : memref<64x128xf32, #tpu.memory_space<vmem>>, vector<8x64xf32>,
    %c4_i32 = arith.constant 4 : i32
    %c8_i32_60 = arith.constant 8 : i32
    %286 = arith.muli %c4_i32, %c8_i32_60 : i32
    %287 = tpu.assume_multiple %286, 8 : i32
    %c7_i32_61 = arith.constant 7 : i32
    %288 = arith.subi %c7_i32_61, %c4_i32 : i32
    %c8_i32_62 = arith.constant 8 : i32
    %289 = arith.muli %288, %c8_i32_62 : i32
    %290 = tpu.assume_multiple %289, 8 : i32
    %291 = arith.index_cast %287 : i32 to index
    %c0_63 = arith.constant 0 : index
    %292 = vector.load %arg2[%291, %c0_63] : memref<64x64xf32, #tpu.memory_space<vmem>>, vector<8x64xf32>
    %293 = arith.index_cast %290 : i32 to index
    %c0_64 = arith.constant 0 : index
    %294 = vector.load %arg2[%293, %c0_64] : memref<64x64xf32, #tpu.memory_space<vmem>>, vector<8x64xf32>
    %295 = arith.index_cast %287 : i32 to index
    %c0_65 = arith.constant 0 : index
    %296 = vector.load %arg18[%295, %c0_65] : memref<64x512xf32, #tpu.memory_space<vmem>>, vector<8x256xf32>
    %297 = arith.truncf %257 : vector<8x64xf32> to vector<8x64xbf16>
    %cst_66 = arith.constant dense<0.000000e+00> : vector<8x256xf32>
    %298 = tpu.matmul %297, %7, %cst_66 {dimension_numbers = #tpu.dot_dimension_numbers<[1], [0], [0], [1], [0, 0, 1, 1], [], []>} : vector<8x64xbf16>, vector<64x256xbf16>, vector<8x256xf32> -> vector<8x256xf32>
    %299 = arith.addf %296, %298 : vector<8x256xf32>
    %300 = arith.index_cast %290 : i32 to index
    %c256_67 = arith.constant 256 : index
    %301 = vector.load %arg18[%300, %c256_67] : memref<64x512xf32, #tpu.memory_space<vmem>>, vector<8x256xf32>
    %302 = arith.truncf %279 : vector<8x64xf32> to vector<8x64xbf16>
    %cst_68 = arith.constant dense<0.000000e+00> : vector<8x256xf32>
    %303 = tpu.matmul %302, %8, %cst_68 {dimension_numbers = #tpu.dot_dimension_numbers<[1], [0], [0], [1], [0, 0, 1, 1], [], []>} : vector<8x64xbf16>, vector<64x256xbf16>, vector<8x256xf32> -> vector<8x256xf32>
    %304 = arith.addf %301, %303 : vector<8x256xf32>
    %305 = vector.extract_strided_slice %299 {offsets = [0, 0], sizes = [8, 192], strides = [1, 1]} : vector<8x256xf32> to vector<8x192xf32>
    %306 = arith.negf %305 : vector<8x192xf32>
    %307 = math.exp %306 : vector<8x192xf32>
    %cst_69 = arith.constant 1.000000e+00 : f32
    %308 = vector.broadcast %cst_69 : f32 to vector<8x192xf32>
    %309 = arith.addf %308, %307 : vector<8x192xf32>
    %310 = arith.divf %308, %309 : vector<8x192xf32>
    %311 = vector.extract_strided_slice %299 {offsets = [0, 192], sizes = [8, 64], strides = [1, 1]} : vector<8x256xf32> to vector<8x64xf32>
    %312 = math.tanh %311 : vector<8x64xf32>
    %313 = vector.extract_strided_slice %310 {offsets = [0, 0], sizes = [8, 64], strides = [1, 1]} : vector<8x192xf32> to vector<8x64xf32>
    %314 = vector.extract_strided_slice %310 {offsets = [0, 64], sizes = [8, 64], strides = [1, 1]} : vector<8x192xf32> to vector<8x64xf32>
    %315 = vector.extract_strided_slice %310 {offsets = [0, 128], sizes = [8, 64], strides = [1, 1]} : vector<8x192xf32> to vector<8x64xf32>
    %316 = arith.mulf %314, %254 : vector<8x64xf32>
    %317 = arith.mulf %313, %312 : vector<8x64xf32>
    %318 = arith.addf %316, %317 : vector<8x64xf32>
    %319 = math.tanh %318 : vector<8x64xf32>
    %320 = arith.mulf %315, %319 : vector<8x64xf32>
    %321 = arith.subf %318, %254 : vector<8x64xf32>
    %322 = arith.mulf %292, %321 : vector<8x64xf32>
    %323 = arith.addf %254, %322 : vector<8x64xf32>
    %324 = arith.subf %320, %257 : vector<8x64xf32>
    %325 = arith.mulf %292, %324 : vector<8x64xf32>
    %326 = arith.addf %257, %325 : vector<8x64xf32>
    %327 = vector.extract_strided_slice %304 {offsets = [0, 0], sizes = [8, 192], strides = [1, 1]} : vector<8x256xf32> to vector<8x192xf32>
    %328 = arith.negf %327 : vector<8x192xf32>
    %329 = math.exp %328 : vector<8x192xf32>
    %cst_70 = arith.constant 1.000000e+00 : f32
    %330 = vector.broadcast %cst_70 : f32 to vector<8x192xf32>
    %331 = arith.addf %330, %329 : vector<8x192xf32>
    %332 = arith.divf %330, %331 : vector<8x192xf32>
    %333 = vector.extract_strided_slice %304 {offsets = [0, 192], sizes = [8, 64], strides = [1, 1]} : vector<8x256xf32> to vector<8x64xf32>
    %334 = math.tanh %333 : vector<8x64xf32>
    %335 = vector.extract_strided_slice %332 {offsets = [0, 0], sizes = [8, 64], strides = [1, 1]} : vector<8x192xf32> to vector<8x64xf32>
    %336 = vector.extract_strided_slice %332 {offsets = [0, 64], sizes = [8, 64], strides = [1, 1]} : vector<8x192xf32> to vector<8x64xf32>
    %337 = vector.extract_strided_slice %332 {offsets = [0, 128], sizes = [8, 64], strides = [1, 1]} : vector<8x192xf32> to vector<8x64xf32>
    %338 = arith.mulf %336, %276 : vector<8x64xf32>
    %339 = arith.mulf %335, %334 : vector<8x64xf32>
    %340 = arith.addf %338, %339 : vector<8x64xf32>
    %341 = math.tanh %340 : vector<8x64xf32>
    %342 = arith.mulf %337, %341 : vector<8x64xf32>
    %343 = arith.subf %340, %276 : vector<8x64xf32>
    %344 = arith.mulf %294, %343 : vector<8x64xf32>
    %345 = arith.addf %276, %344 : vector<8x64xf32>
    %346 = arith.subf %342, %279 : vector<8x64xf32>
    %347 = arith.mulf %294, %346 : vector<8x64xf32>
    %348 = arith.addf %279, %347 : vector<8x64xf32>
    %349 = arith.mulf %292, %326 : vector<8x64xf32>
    %350 = arith.index_cast %287 : i32 to index
    %c0_71 = arith.constant 0 : index
    %351 = vector.load %arg19[%350, %c0_71] : memref<64x128xf32, #tpu.memory_space<vmem>>, vector<8x64xf32>
    tpu.vector_store %arg19[%350, %c0_71], %349 {strides = array<i32>} : memref<64x128xf32, #tpu.memory_space<vmem>>, vector<8x64xf32>,
    %352 = arith.mulf %294, %348 : vector<8x64xf32>
    %353 = arith.index_cast %290 : i32 to index
    %c64_72 = arith.constant 64 : index
    %354 = vector.load %arg19[%353, %c64_72] : memref<64x128xf32, #tpu.memory_space<vmem>>, vector<8x64xf32>
    tpu.vector_store %arg19[%353, %c64_72], %352 {strides = array<i32>} : memref<64x128xf32, #tpu.memory_space<vmem>>, vector<8x64xf32>,
    %c5_i32 = arith.constant 5 : i32
    %c8_i32_73 = arith.constant 8 : i32
    %355 = arith.muli %c5_i32, %c8_i32_73 : i32
    %356 = tpu.assume_multiple %355, 8 : i32
    %c7_i32_74 = arith.constant 7 : i32
    %357 = arith.subi %c7_i32_74, %c5_i32 : i32
    %c8_i32_75 = arith.constant 8 : i32
    %358 = arith.muli %357, %c8_i32_75 : i32
    %359 = tpu.assume_multiple %358, 8 : i32
    %360 = arith.index_cast %356 : i32 to index
    %c0_76 = arith.constant 0 : index
    %361 = vector.load %arg2[%360, %c0_76] : memref<64x64xf32, #tpu.memory_space<vmem>>, vector<8x64xf32>
    %362 = arith.index_cast %359 : i32 to index
    %c0_77 = arith.constant 0 : index
    %363 = vector.load %arg2[%362, %c0_77] : memref<64x64xf32, #tpu.memory_space<vmem>>, vector<8x64xf32>
    %364 = arith.index_cast %356 : i32 to index
    %c0_78 = arith.constant 0 : index
    %365 = vector.load %arg18[%364, %c0_78] : memref<64x512xf32, #tpu.memory_space<vmem>>, vector<8x256xf32>
    %366 = arith.truncf %326 : vector<8x64xf32> to vector<8x64xbf16>
    %cst_79 = arith.constant dense<0.000000e+00> : vector<8x256xf32>
    %367 = tpu.matmul %366, %7, %cst_79 {dimension_numbers = #tpu.dot_dimension_numbers<[1], [0], [0], [1], [0, 0, 1, 1], [], []>} : vector<8x64xbf16>, vector<64x256xbf16>, vector<8x256xf32> -> vector<8x256xf32>
    %368 = arith.addf %365, %367 : vector<8x256xf32>
    %369 = arith.index_cast %359 : i32 to index
    %c256_80 = arith.constant 256 : index
    %370 = vector.load %arg18[%369, %c256_80] : memref<64x512xf32, #tpu.memory_space<vmem>>, vector<8x256xf32>
    %371 = arith.truncf %348 : vector<8x64xf32> to vector<8x64xbf16>
    %cst_81 = arith.constant dense<0.000000e+00> : vector<8x256xf32>
    %372 = tpu.matmul %371, %8, %cst_81 {dimension_numbers = #tpu.dot_dimension_numbers<[1], [0], [0], [1], [0, 0, 1, 1], [], []>} : vector<8x64xbf16>, vector<64x256xbf16>, vector<8x256xf32> -> vector<8x256xf32>
    %373 = arith.addf %370, %372 : vector<8x256xf32>
    %374 = vector.extract_strided_slice %368 {offsets = [0, 0], sizes = [8, 192], strides = [1, 1]} : vector<8x256xf32> to vector<8x192xf32>
    %375 = arith.negf %374 : vector<8x192xf32>
    %376 = math.exp %375 : vector<8x192xf32>
    %cst_82 = arith.constant 1.000000e+00 : f32
    %377 = vector.broadcast %cst_82 : f32 to vector<8x192xf32>
    %378 = arith.addf %377, %376 : vector<8x192xf32>
    %379 = arith.divf %377, %378 : vector<8x192xf32>
    %380 = vector.extract_strided_slice %368 {offsets = [0, 192], sizes = [8, 64], strides = [1, 1]} : vector<8x256xf32> to vector<8x64xf32>
    %381 = math.tanh %380 : vector<8x64xf32>
    %382 = vector.extract_strided_slice %379 {offsets = [0, 0], sizes = [8, 64], strides = [1, 1]} : vector<8x192xf32> to vector<8x64xf32>
    %383 = vector.extract_strided_slice %379 {offsets = [0, 64], sizes = [8, 64], strides = [1, 1]} : vector<8x192xf32> to vector<8x64xf32>
    %384 = vector.extract_strided_slice %379 {offsets = [0, 128], sizes = [8, 64], strides = [1, 1]} : vector<8x192xf32> to vector<8x64xf32>
    %385 = arith.mulf %383, %323 : vector<8x64xf32>
    %386 = arith.mulf %382, %381 : vector<8x64xf32>
    %387 = arith.addf %385, %386 : vector<8x64xf32>
    %388 = math.tanh %387 : vector<8x64xf32>
    %389 = arith.mulf %384, %388 : vector<8x64xf32>
    %390 = arith.subf %387, %323 : vector<8x64xf32>
    %391 = arith.mulf %361, %390 : vector<8x64xf32>
    %392 = arith.addf %323, %391 : vector<8x64xf32>
    %393 = arith.subf %389, %326 : vector<8x64xf32>
    %394 = arith.mulf %361, %393 : vector<8x64xf32>
    %395 = arith.addf %326, %394 : vector<8x64xf32>
    %396 = vector.extract_strided_slice %373 {offsets = [0, 0], sizes = [8, 192], strides = [1, 1]} : vector<8x256xf32> to vector<8x192xf32>
    %397 = arith.negf %396 : vector<8x192xf32>
    %398 = math.exp %397 : vector<8x192xf32>
    %cst_83 = arith.constant 1.000000e+00 : f32
    %399 = vector.broadcast %cst_83 : f32 to vector<8x192xf32>
    %400 = arith.addf %399, %398 : vector<8x192xf32>
    %401 = arith.divf %399, %400 : vector<8x192xf32>
    %402 = vector.extract_strided_slice %373 {offsets = [0, 192], sizes = [8, 64], strides = [1, 1]} : vector<8x256xf32> to vector<8x64xf32>
    %403 = math.tanh %402 : vector<8x64xf32>
    %404 = vector.extract_strided_slice %401 {offsets = [0, 0], sizes = [8, 64], strides = [1, 1]} : vector<8x192xf32> to vector<8x64xf32>
    %405 = vector.extract_strided_slice %401 {offsets = [0, 64], sizes = [8, 64], strides = [1, 1]} : vector<8x192xf32> to vector<8x64xf32>
    %406 = vector.extract_strided_slice %401 {offsets = [0, 128], sizes = [8, 64], strides = [1, 1]} : vector<8x192xf32> to vector<8x64xf32>
    %407 = arith.mulf %405, %345 : vector<8x64xf32>
    %408 = arith.mulf %404, %403 : vector<8x64xf32>
    %409 = arith.addf %407, %408 : vector<8x64xf32>
    %410 = math.tanh %409 : vector<8x64xf32>
    %411 = arith.mulf %406, %410 : vector<8x64xf32>
    %412 = arith.subf %409, %345 : vector<8x64xf32>
    %413 = arith.mulf %363, %412 : vector<8x64xf32>
    %414 = arith.addf %345, %413 : vector<8x64xf32>
    %415 = arith.subf %411, %348 : vector<8x64xf32>
    %416 = arith.mulf %363, %415 : vector<8x64xf32>
    %417 = arith.addf %348, %416 : vector<8x64xf32>
    %418 = arith.mulf %361, %395 : vector<8x64xf32>
    %419 = arith.index_cast %356 : i32 to index
    %c0_84 = arith.constant 0 : index
    %420 = vector.load %arg19[%419, %c0_84] : memref<64x128xf32, #tpu.memory_space<vmem>>, vector<8x64xf32>
    tpu.vector_store %arg19[%419, %c0_84], %418 {strides = array<i32>} : memref<64x128xf32, #tpu.memory_space<vmem>>, vector<8x64xf32>,
    %421 = arith.mulf %363, %417 : vector<8x64xf32>
    %422 = arith.index_cast %359 : i32 to index
    %c64_85 = arith.constant 64 : index
    %423 = vector.load %arg19[%422, %c64_85] : memref<64x128xf32, #tpu.memory_space<vmem>>, vector<8x64xf32>
    tpu.vector_store %arg19[%422, %c64_85], %421 {strides = array<i32>} : memref<64x128xf32, #tpu.memory_space<vmem>>, vector<8x64xf32>,
    %c6_i32 = arith.constant 6 : i32
    %c8_i32_86 = arith.constant 8 : i32
    %424 = arith.muli %c6_i32, %c8_i32_86 : i32
    %425 = tpu.assume_multiple %424, 8 : i32
    %c7_i32_87 = arith.constant 7 : i32
    %426 = arith.subi %c7_i32_87, %c6_i32 : i32
    %c8_i32_88 = arith.constant 8 : i32
    %427 = arith.muli %426, %c8_i32_88 : i32
    %428 = tpu.assume_multiple %427, 8 : i32
    %429 = arith.index_cast %425 : i32 to index
    %c0_89 = arith.constant 0 : index
    %430 = vector.load %arg2[%429, %c0_89] : memref<64x64xf32, #tpu.memory_space<vmem>>, vector<8x64xf32>
    %431 = arith.index_cast %428 : i32 to index
    %c0_90 = arith.constant 0 : index
    %432 = vector.load %arg2[%431, %c0_90] : memref<64x64xf32, #tpu.memory_space<vmem>>, vector<8x64xf32>
    %433 = arith.index_cast %425 : i32 to index
    %c0_91 = arith.constant 0 : index
    %434 = vector.load %arg18[%433, %c0_91] : memref<64x512xf32, #tpu.memory_space<vmem>>, vector<8x256xf32>
    %435 = arith.truncf %395 : vector<8x64xf32> to vector<8x64xbf16>
    %cst_92 = arith.constant dense<0.000000e+00> : vector<8x256xf32>
    %436 = tpu.matmul %435, %7, %cst_92 {dimension_numbers = #tpu.dot_dimension_numbers<[1], [0], [0], [1], [0, 0, 1, 1], [], []>} : vector<8x64xbf16>, vector<64x256xbf16>, vector<8x256xf32> -> vector<8x256xf32>
    %437 = arith.addf %434, %436 : vector<8x256xf32>
    %438 = arith.index_cast %428 : i32 to index
    %c256_93 = arith.constant 256 : index
    %439 = vector.load %arg18[%438, %c256_93] : memref<64x512xf32, #tpu.memory_space<vmem>>, vector<8x256xf32>
    %440 = arith.truncf %417 : vector<8x64xf32> to vector<8x64xbf16>
    %cst_94 = arith.constant dense<0.000000e+00> : vector<8x256xf32>
    %441 = tpu.matmul %440, %8, %cst_94 {dimension_numbers = #tpu.dot_dimension_numbers<[1], [0], [0], [1], [0, 0, 1, 1], [], []>} : vector<8x64xbf16>, vector<64x256xbf16>, vector<8x256xf32> -> vector<8x256xf32>
    %442 = arith.addf %439, %441 : vector<8x256xf32>
    %443 = vector.extract_strided_slice %437 {offsets = [0, 0], sizes = [8, 192], strides = [1, 1]} : vector<8x256xf32> to vector<8x192xf32>
    %444 = arith.negf %443 : vector<8x192xf32>
    %445 = math.exp %444 : vector<8x192xf32>
    %cst_95 = arith.constant 1.000000e+00 : f32
    %446 = vector.broadcast %cst_95 : f32 to vector<8x192xf32>
    %447 = arith.addf %446, %445 : vector<8x192xf32>
    %448 = arith.divf %446, %447 : vector<8x192xf32>
    %449 = vector.extract_strided_slice %437 {offsets = [0, 192], sizes = [8, 64], strides = [1, 1]} : vector<8x256xf32> to vector<8x64xf32>
    %450 = math.tanh %449 : vector<8x64xf32>
    %451 = vector.extract_strided_slice %448 {offsets = [0, 0], sizes = [8, 64], strides = [1, 1]} : vector<8x192xf32> to vector<8x64xf32>
    %452 = vector.extract_strided_slice %448 {offsets = [0, 64], sizes = [8, 64], strides = [1, 1]} : vector<8x192xf32> to vector<8x64xf32>
    %453 = vector.extract_strided_slice %448 {offsets = [0, 128], sizes = [8, 64], strides = [1, 1]} : vector<8x192xf32> to vector<8x64xf32>
    %454 = arith.mulf %452, %392 : vector<8x64xf32>
    %455 = arith.mulf %451, %450 : vector<8x64xf32>
    %456 = arith.addf %454, %455 : vector<8x64xf32>
    %457 = math.tanh %456 : vector<8x64xf32>
    %458 = arith.mulf %453, %457 : vector<8x64xf32>
    %459 = arith.subf %456, %392 : vector<8x64xf32>
    %460 = arith.mulf %430, %459 : vector<8x64xf32>
    %461 = arith.addf %392, %460 : vector<8x64xf32>
    %462 = arith.subf %458, %395 : vector<8x64xf32>
    %463 = arith.mulf %430, %462 : vector<8x64xf32>
    %464 = arith.addf %395, %463 : vector<8x64xf32>
    %465 = vector.extract_strided_slice %442 {offsets = [0, 0], sizes = [8, 192], strides = [1, 1]} : vector<8x256xf32> to vector<8x192xf32>
    %466 = arith.negf %465 : vector<8x192xf32>
    %467 = math.exp %466 : vector<8x192xf32>
    %cst_96 = arith.constant 1.000000e+00 : f32
    %468 = vector.broadcast %cst_96 : f32 to vector<8x192xf32>
    %469 = arith.addf %468, %467 : vector<8x192xf32>
    %470 = arith.divf %468, %469 : vector<8x192xf32>
    %471 = vector.extract_strided_slice %442 {offsets = [0, 192], sizes = [8, 64], strides = [1, 1]} : vector<8x256xf32> to vector<8x64xf32>
    %472 = math.tanh %471 : vector<8x64xf32>
    %473 = vector.extract_strided_slice %470 {offsets = [0, 0], sizes = [8, 64], strides = [1, 1]} : vector<8x192xf32> to vector<8x64xf32>
    %474 = vector.extract_strided_slice %470 {offsets = [0, 64], sizes = [8, 64], strides = [1, 1]} : vector<8x192xf32> to vector<8x64xf32>
    %475 = vector.extract_strided_slice %470 {offsets = [0, 128], sizes = [8, 64], strides = [1, 1]} : vector<8x192xf32> to vector<8x64xf32>
    %476 = arith.mulf %474, %414 : vector<8x64xf32>
    %477 = arith.mulf %473, %472 : vector<8x64xf32>
    %478 = arith.addf %476, %477 : vector<8x64xf32>
    %479 = math.tanh %478 : vector<8x64xf32>
    %480 = arith.mulf %475, %479 : vector<8x64xf32>
    %481 = arith.subf %478, %414 : vector<8x64xf32>
    %482 = arith.mulf %432, %481 : vector<8x64xf32>
    %483 = arith.addf %414, %482 : vector<8x64xf32>
    %484 = arith.subf %480, %417 : vector<8x64xf32>
    %485 = arith.mulf %432, %484 : vector<8x64xf32>
    %486 = arith.addf %417, %485 : vector<8x64xf32>
    %487 = arith.mulf %430, %464 : vector<8x64xf32>
    %488 = arith.index_cast %425 : i32 to index
    %c0_97 = arith.constant 0 : index
    %489 = vector.load %arg19[%488, %c0_97] : memref<64x128xf32, #tpu.memory_space<vmem>>, vector<8x64xf32>
    tpu.vector_store %arg19[%488, %c0_97], %487 {strides = array<i32>} : memref<64x128xf32, #tpu.memory_space<vmem>>, vector<8x64xf32>,
    %490 = arith.mulf %432, %486 : vector<8x64xf32>
    %491 = arith.index_cast %428 : i32 to index
    %c64_98 = arith.constant 64 : index
    %492 = vector.load %arg19[%491, %c64_98] : memref<64x128xf32, #tpu.memory_space<vmem>>, vector<8x64xf32>
    tpu.vector_store %arg19[%491, %c64_98], %490 {strides = array<i32>} : memref<64x128xf32, #tpu.memory_space<vmem>>, vector<8x64xf32>,
    %c7_i32_99 = arith.constant 7 : i32
    %c8_i32_100 = arith.constant 8 : i32
    %493 = arith.muli %c7_i32_99, %c8_i32_100 : i32
    %494 = tpu.assume_multiple %493, 8 : i32
    %c7_i32_101 = arith.constant 7 : i32
    %495 = arith.subi %c7_i32_101, %c7_i32_99 : i32
    %c8_i32_102 = arith.constant 8 : i32
    %496 = arith.muli %495, %c8_i32_102 : i32
    %497 = tpu.assume_multiple %496, 8 : i32
    %498 = arith.index_cast %494 : i32 to index
    %c0_103 = arith.constant 0 : index
    %499 = vector.load %arg2[%498, %c0_103] : memref<64x64xf32, #tpu.memory_space<vmem>>, vector<8x64xf32>
    %500 = arith.index_cast %497 : i32 to index
    %c0_104 = arith.constant 0 : index
    %501 = vector.load %arg2[%500, %c0_104] : memref<64x64xf32, #tpu.memory_space<vmem>>, vector<8x64xf32>
    %502 = arith.index_cast %494 : i32 to index
    %c0_105 = arith.constant 0 : index
    %503 = vector.load %arg18[%502, %c0_105] : memref<64x512xf32, #tpu.memory_space<vmem>>, vector<8x256xf32>
    %504 = arith.truncf %464 : vector<8x64xf32> to vector<8x64xbf16>
    %cst_106 = arith.constant dense<0.000000e+00> : vector<8x256xf32>
    %505 = tpu.matmul %504, %7, %cst_106 {dimension_numbers = #tpu.dot_dimension_numbers<[1], [0], [0], [1], [0, 0, 1, 1], [], []>} : vector<8x64xbf16>, vector<64x256xbf16>, vector<8x256xf32> -> vector<8x256xf32>
    %506 = arith.addf %503, %505 : vector<8x256xf32>
    %507 = arith.index_cast %497 : i32 to index
    %c256_107 = arith.constant 256 : index
    %508 = vector.load %arg18[%507, %c256_107] : memref<64x512xf32, #tpu.memory_space<vmem>>, vector<8x256xf32>
    %509 = arith.truncf %486 : vector<8x64xf32> to vector<8x64xbf16>
    %cst_108 = arith.constant dense<0.000000e+00> : vector<8x256xf32>
    %510 = tpu.matmul %509, %8, %cst_108 {dimension_numbers = #tpu.dot_dimension_numbers<[1], [0], [0], [1], [0, 0, 1, 1], [], []>} : vector<8x64xbf16>, vector<64x256xbf16>, vector<8x256xf32> -> vector<8x256xf32>
    %511 = arith.addf %508, %510 : vector<8x256xf32>
    %512 = vector.extract_strided_slice %506 {offsets = [0, 0], sizes = [8, 192], strides = [1, 1]} : vector<8x256xf32> to vector<8x192xf32>
    %513 = arith.negf %512 : vector<8x192xf32>
    %514 = math.exp %513 : vector<8x192xf32>
    %cst_109 = arith.constant 1.000000e+00 : f32
    %515 = vector.broadcast %cst_109 : f32 to vector<8x192xf32>
    %516 = arith.addf %515, %514 : vector<8x192xf32>
    %517 = arith.divf %515, %516 : vector<8x192xf32>
    %518 = vector.extract_strided_slice %506 {offsets = [0, 192], sizes = [8, 64], strides = [1, 1]} : vector<8x256xf32> to vector<8x64xf32>
    %519 = math.tanh %518 : vector<8x64xf32>
    %520 = vector.extract_strided_slice %517 {offsets = [0, 0], sizes = [8, 64], strides = [1, 1]} : vector<8x192xf32> to vector<8x64xf32>
    %521 = vector.extract_strided_slice %517 {offsets = [0, 64], sizes = [8, 64], strides = [1, 1]} : vector<8x192xf32> to vector<8x64xf32>
    %522 = vector.extract_strided_slice %517 {offsets = [0, 128], sizes = [8, 64], strides = [1, 1]} : vector<8x192xf32> to vector<8x64xf32>
    %523 = arith.mulf %521, %461 : vector<8x64xf32>
    %524 = arith.mulf %520, %519 : vector<8x64xf32>
    %525 = arith.addf %523, %524 : vector<8x64xf32>
    %526 = math.tanh %525 : vector<8x64xf32>
    %527 = arith.mulf %522, %526 : vector<8x64xf32>
    %528 = arith.subf %525, %461 : vector<8x64xf32>
    %529 = arith.mulf %499, %528 : vector<8x64xf32>
    %530 = arith.addf %461, %529 : vector<8x64xf32>
    %531 = arith.subf %527, %464 : vector<8x64xf32>
    %532 = arith.mulf %499, %531 : vector<8x64xf32>
    %533 = arith.addf %464, %532 : vector<8x64xf32>
    %534 = vector.extract_strided_slice %511 {offsets = [0, 0], sizes = [8, 192], strides = [1, 1]} : vector<8x256xf32> to vector<8x192xf32>
    %535 = arith.negf %534 : vector<8x192xf32>
    %536 = math.exp %535 : vector<8x192xf32>
    %cst_110 = arith.constant 1.000000e+00 : f32
    %537 = vector.broadcast %cst_110 : f32 to vector<8x192xf32>
    %538 = arith.addf %537, %536 : vector<8x192xf32>
    %539 = arith.divf %537, %538 : vector<8x192xf32>
    %540 = vector.extract_strided_slice %511 {offsets = [0, 192], sizes = [8, 64], strides = [1, 1]} : vector<8x256xf32> to vector<8x64xf32>
    %541 = math.tanh %540 : vector<8x64xf32>
    %542 = vector.extract_strided_slice %539 {offsets = [0, 0], sizes = [8, 64], strides = [1, 1]} : vector<8x192xf32> to vector<8x64xf32>
    %543 = vector.extract_strided_slice %539 {offsets = [0, 64], sizes = [8, 64], strides = [1, 1]} : vector<8x192xf32> to vector<8x64xf32>
    %544 = vector.extract_strided_slice %539 {offsets = [0, 128], sizes = [8, 64], strides = [1, 1]} : vector<8x192xf32> to vector<8x64xf32>
    %545 = arith.mulf %543, %483 : vector<8x64xf32>
    %546 = arith.mulf %542, %541 : vector<8x64xf32>
    %547 = arith.addf %545, %546 : vector<8x64xf32>
    %548 = math.tanh %547 : vector<8x64xf32>
    %549 = arith.mulf %544, %548 : vector<8x64xf32>
    %550 = arith.subf %547, %483 : vector<8x64xf32>
    %551 = arith.mulf %501, %550 : vector<8x64xf32>
    %552 = arith.addf %483, %551 : vector<8x64xf32>
    %553 = arith.subf %549, %486 : vector<8x64xf32>
    %554 = arith.mulf %501, %553 : vector<8x64xf32>
    %555 = arith.addf %486, %554 : vector<8x64xf32>
    %556 = arith.mulf %499, %533 : vector<8x64xf32>
    %557 = arith.index_cast %494 : i32 to index
    %c0_111 = arith.constant 0 : index
    %558 = vector.load %arg19[%557, %c0_111] : memref<64x128xf32, #tpu.memory_space<vmem>>, vector<8x64xf32>
    tpu.vector_store %arg19[%557, %c0_111], %556 {strides = array<i32>} : memref<64x128xf32, #tpu.memory_space<vmem>>, vector<8x64xf32>,
    %559 = arith.mulf %501, %555 : vector<8x64xf32>
    %560 = arith.index_cast %497 : i32 to index
    %c64_112 = arith.constant 64 : index
    %561 = vector.load %arg19[%560, %c64_112] : memref<64x128xf32, #tpu.memory_space<vmem>>, vector<8x64xf32>
    tpu.vector_store %arg19[%560, %c64_112], %559 {strides = array<i32>} : memref<64x128xf32, #tpu.memory_space<vmem>>, vector<8x64xf32>,
    %c8_i32_113 = arith.constant 8 : i32
    %c0_114 = arith.constant 0 : index
    %c0_115 = arith.constant 0 : index
    %562 = vector.load %arg19[%c0_114, %c0_115] : memref<64x128xf32, #tpu.memory_space<vmem>>, vector<64x128xf32>
    %563 = arith.truncf %562 : vector<64x128xf32> to vector<64x128xbf16>
    %c0_116 = arith.constant 0 : index
    %c0_117 = arith.constant 0 : index
    %564 = vector.load %arg7[%c0_116, %c0_117] : memref<128x512xbf16, #tpu.memory_space<vmem>>, vector<128x512xbf16>
    %cst_118 = arith.constant dense<0.000000e+00> : vector<64x512xf32>
    %565 = tpu.matmul %563, %564, %cst_118 {dimension_numbers = #tpu.dot_dimension_numbers<[1], [0], [0], [1], [0, 0, 1, 1], [], []>} : vector<64x128xbf16>, vector<128x512xbf16>, vector<64x512xf32> -> vector<64x512xf32>
    %c0_119 = arith.constant 0 : index
    %c0_120 = arith.constant 0 : index
    %566 = vector.load %arg10[%c0_119, %c0_120] : memref<1x512xf32, #tpu.memory_space<vmem>>, vector<1x512xf32>
    %567 = vector.broadcast %566 : vector<1x512xf32> to vector<64x512xf32>
    %568 = arith.addf %565, %567 : vector<64x512xf32>
    %c0_121 = arith.constant 0 : index
    %c0_122 = arith.constant 0 : index
    %569 = vector.load %arg18[%c0_121, %c0_122] : memref<64x512xf32, #tpu.memory_space<vmem>>, vector<64x512xf32>
    tpu.vector_store %arg18[%c0_121, %c0_122], %568 {strides = array<i32>} : memref<64x512xf32, #tpu.memory_space<vmem>>, vector<64x512xf32>,
    %c0_123 = arith.constant 0 : index
    %c0_124 = arith.constant 0 : index
    %570 = vector.load %arg8[%c0_123, %c0_124] : memref<64x256xbf16, #tpu.memory_space<vmem>>, vector<64x256xbf16>
    %c0_125 = arith.constant 0 : index
    %c0_126 = arith.constant 0 : index
    %571 = vector.load %arg9[%c0_125, %c0_126] : memref<64x256xbf16, #tpu.memory_space<vmem>>, vector<64x256xbf16>
    %cst_127 = arith.constant 0.000000e+00 : f32
    %572 = vector.broadcast %cst_127 : f32 to vector<8x64xf32>
    %c0_i32_128 = arith.constant 0 : i32
    %c8_i32_129 = arith.constant 8 : i32
    %573 = arith.muli %c0_i32_128, %c8_i32_129 : i32
    %574 = tpu.assume_multiple %573, 8 : i32
    %c7_i32_130 = arith.constant 7 : i32
    %575 = arith.subi %c7_i32_130, %c0_i32_128 : i32
    %c8_i32_131 = arith.constant 8 : i32
    %576 = arith.muli %575, %c8_i32_131 : i32
    %577 = tpu.assume_multiple %576, 8 : i32
    %578 = arith.index_cast %574 : i32 to index
    %c0_132 = arith.constant 0 : index
    %579 = vector.load %arg2[%578, %c0_132] : memref<64x64xf32, #tpu.memory_space<vmem>>, vector<8x64xf32>
    %580 = arith.index_cast %577 : i32 to index
    %c0_133 = arith.constant 0 : index
    %581 = vector.load %arg2[%580, %c0_133] : memref<64x64xf32, #tpu.memory_space<vmem>>, vector<8x64xf32>
    %582 = arith.index_cast %574 : i32 to index
    %c0_134 = arith.constant 0 : index
    %583 = vector.load %arg18[%582, %c0_134] : memref<64x512xf32, #tpu.memory_space<vmem>>, vector<8x256xf32>
    %584 = arith.truncf %572 : vector<8x64xf32> to vector<8x64xbf16>
    %cst_135 = arith.constant dense<0.000000e+00> : vector<8x256xf32>
    %585 = tpu.matmul %584, %570, %cst_135 {dimension_numbers = #tpu.dot_dimension_numbers<[1], [0], [0], [1], [0, 0, 1, 1], [], []>} : vector<8x64xbf16>, vector<64x256xbf16>, vector<8x256xf32> -> vector<8x256xf32>
    %586 = arith.addf %583, %585 : vector<8x256xf32>
    %587 = arith.index_cast %577 : i32 to index
    %c256_136 = arith.constant 256 : index
    %588 = vector.load %arg18[%587, %c256_136] : memref<64x512xf32, #tpu.memory_space<vmem>>, vector<8x256xf32>
    %589 = arith.truncf %572 : vector<8x64xf32> to vector<8x64xbf16>
    %cst_137 = arith.constant dense<0.000000e+00> : vector<8x256xf32>
    %590 = tpu.matmul %589, %571, %cst_137 {dimension_numbers = #tpu.dot_dimension_numbers<[1], [0], [0], [1], [0, 0, 1, 1], [], []>} : vector<8x64xbf16>, vector<64x256xbf16>, vector<8x256xf32> -> vector<8x256xf32>
    %591 = arith.addf %588, %590 : vector<8x256xf32>
    %592 = vector.extract_strided_slice %586 {offsets = [0, 0], sizes = [8, 192], strides = [1, 1]} : vector<8x256xf32> to vector<8x192xf32>
    %593 = arith.negf %592 : vector<8x192xf32>
    %594 = math.exp %593 : vector<8x192xf32>
    %cst_138 = arith.constant 1.000000e+00 : f32
    %595 = vector.broadcast %cst_138 : f32 to vector<8x192xf32>
    %596 = arith.addf %595, %594 : vector<8x192xf32>
    %597 = arith.divf %595, %596 : vector<8x192xf32>
    %598 = vector.extract_strided_slice %586 {offsets = [0, 192], sizes = [8, 64], strides = [1, 1]} : vector<8x256xf32> to vector<8x64xf32>
    %599 = math.tanh %598 : vector<8x64xf32>
    %600 = vector.extract_strided_slice %597 {offsets = [0, 0], sizes = [8, 64], strides = [1, 1]} : vector<8x192xf32> to vector<8x64xf32>
    %601 = vector.extract_strided_slice %597 {offsets = [0, 64], sizes = [8, 64], strides = [1, 1]} : vector<8x192xf32> to vector<8x64xf32>
    %602 = vector.extract_strided_slice %597 {offsets = [0, 128], sizes = [8, 64], strides = [1, 1]} : vector<8x192xf32> to vector<8x64xf32>
    %603 = arith.mulf %601, %572 : vector<8x64xf32>
    %604 = arith.mulf %600, %599 : vector<8x64xf32>
    %605 = arith.addf %603, %604 : vector<8x64xf32>
    %606 = math.tanh %605 : vector<8x64xf32>
    %607 = arith.mulf %602, %606 : vector<8x64xf32>
    %608 = arith.subf %605, %572 : vector<8x64xf32>
    %609 = arith.mulf %579, %608 : vector<8x64xf32>
    %610 = arith.addf %572, %609 : vector<8x64xf32>
    %611 = arith.subf %607, %572 : vector<8x64xf32>
    %612 = arith.mulf %579, %611 : vector<8x64xf32>
    %613 = arith.addf %572, %612 : vector<8x64xf32>
    %614 = vector.extract_strided_slice %591 {offsets = [0, 0], sizes = [8, 192], strides = [1, 1]} : vector<8x256xf32> to vector<8x192xf32>
    %615 = arith.negf %614 : vector<8x192xf32>
    %616 = math.exp %615 : vector<8x192xf32>
    %cst_139 = arith.constant 1.000000e+00 : f32
    %617 = vector.broadcast %cst_139 : f32 to vector<8x192xf32>
    %618 = arith.addf %617, %616 : vector<8x192xf32>
    %619 = arith.divf %617, %618 : vector<8x192xf32>
    %620 = vector.extract_strided_slice %591 {offsets = [0, 192], sizes = [8, 64], strides = [1, 1]} : vector<8x256xf32> to vector<8x64xf32>
    %621 = math.tanh %620 : vector<8x64xf32>
    %622 = vector.extract_strided_slice %619 {offsets = [0, 0], sizes = [8, 64], strides = [1, 1]} : vector<8x192xf32> to vector<8x64xf32>
    %623 = vector.extract_strided_slice %619 {offsets = [0, 64], sizes = [8, 64], strides = [1, 1]} : vector<8x192xf32> to vector<8x64xf32>
    %624 = vector.extract_strided_slice %619 {offsets = [0, 128], sizes = [8, 64], strides = [1, 1]} : vector<8x192xf32> to vector<8x64xf32>
    %625 = arith.mulf %623, %572 : vector<8x64xf32>
    %626 = arith.mulf %622, %621 : vector<8x64xf32>
    %627 = arith.addf %625, %626 : vector<8x64xf32>
    %628 = math.tanh %627 : vector<8x64xf32>
    %629 = arith.mulf %624, %628 : vector<8x64xf32>
    %630 = arith.subf %627, %572 : vector<8x64xf32>
    %631 = arith.mulf %581, %630 : vector<8x64xf32>
    %632 = arith.addf %572, %631 : vector<8x64xf32>
    %633 = arith.subf %629, %572 : vector<8x64xf32>
    %634 = arith.mulf %581, %633 : vector<8x64xf32>
    %635 = arith.addf %572, %634 : vector<8x64xf32>
    %c1_i32_140 = arith.constant 1 : i32
    %c8_i32_141 = arith.constant 8 : i32
    %636 = arith.muli %c1_i32_140, %c8_i32_141 : i32
    %637 = tpu.assume_multiple %636, 8 : i32
    %c7_i32_142 = arith.constant 7 : i32
    %638 = arith.subi %c7_i32_142, %c1_i32_140 : i32
    %c8_i32_143 = arith.constant 8 : i32
    %639 = arith.muli %638, %c8_i32_143 : i32
    %640 = tpu.assume_multiple %639, 8 : i32
    %641 = arith.index_cast %637 : i32 to index
    %c0_144 = arith.constant 0 : index
    %642 = vector.load %arg2[%641, %c0_144] : memref<64x64xf32, #tpu.memory_space<vmem>>, vector<8x64xf32>
    %643 = arith.index_cast %640 : i32 to index
    %c0_145 = arith.constant 0 : index
    %644 = vector.load %arg2[%643, %c0_145] : memref<64x64xf32, #tpu.memory_space<vmem>>, vector<8x64xf32>
    %645 = arith.index_cast %637 : i32 to index
    %c0_146 = arith.constant 0 : index
    %646 = vector.load %arg18[%645, %c0_146] : memref<64x512xf32, #tpu.memory_space<vmem>>, vector<8x256xf32>
    %647 = arith.truncf %613 : vector<8x64xf32> to vector<8x64xbf16>
    %cst_147 = arith.constant dense<0.000000e+00> : vector<8x256xf32>
    %648 = tpu.matmul %647, %570, %cst_147 {dimension_numbers = #tpu.dot_dimension_numbers<[1], [0], [0], [1], [0, 0, 1, 1], [], []>} : vector<8x64xbf16>, vector<64x256xbf16>, vector<8x256xf32> -> vector<8x256xf32>
    %649 = arith.addf %646, %648 : vector<8x256xf32>
    %650 = arith.index_cast %640 : i32 to index
    %c256_148 = arith.constant 256 : index
    %651 = vector.load %arg18[%650, %c256_148] : memref<64x512xf32, #tpu.memory_space<vmem>>, vector<8x256xf32>
    %652 = arith.truncf %635 : vector<8x64xf32> to vector<8x64xbf16>
    %cst_149 = arith.constant dense<0.000000e+00> : vector<8x256xf32>
    %653 = tpu.matmul %652, %571, %cst_149 {dimension_numbers = #tpu.dot_dimension_numbers<[1], [0], [0], [1], [0, 0, 1, 1], [], []>} : vector<8x64xbf16>, vector<64x256xbf16>, vector<8x256xf32> -> vector<8x256xf32>
    %654 = arith.addf %651, %653 : vector<8x256xf32>
    %655 = vector.extract_strided_slice %649 {offsets = [0, 0], sizes = [8, 192], strides = [1, 1]} : vector<8x256xf32> to vector<8x192xf32>
    %656 = arith.negf %655 : vector<8x192xf32>
    %657 = math.exp %656 : vector<8x192xf32>
    %cst_150 = arith.constant 1.000000e+00 : f32
    %658 = vector.broadcast %cst_150 : f32 to vector<8x192xf32>
    %659 = arith.addf %658, %657 : vector<8x192xf32>
    %660 = arith.divf %658, %659 : vector<8x192xf32>
    %661 = vector.extract_strided_slice %649 {offsets = [0, 192], sizes = [8, 64], strides = [1, 1]} : vector<8x256xf32> to vector<8x64xf32>
    %662 = math.tanh %661 : vector<8x64xf32>
    %663 = vector.extract_strided_slice %660 {offsets = [0, 0], sizes = [8, 64], strides = [1, 1]} : vector<8x192xf32> to vector<8x64xf32>
    %664 = vector.extract_strided_slice %660 {offsets = [0, 64], sizes = [8, 64], strides = [1, 1]} : vector<8x192xf32> to vector<8x64xf32>
    %665 = vector.extract_strided_slice %660 {offsets = [0, 128], sizes = [8, 64], strides = [1, 1]} : vector<8x192xf32> to vector<8x64xf32>
    %666 = arith.mulf %664, %610 : vector<8x64xf32>
    %667 = arith.mulf %663, %662 : vector<8x64xf32>
    %668 = arith.addf %666, %667 : vector<8x64xf32>
    %669 = math.tanh %668 : vector<8x64xf32>
    %670 = arith.mulf %665, %669 : vector<8x64xf32>
    %671 = arith.subf %668, %610 : vector<8x64xf32>
    %672 = arith.mulf %642, %671 : vector<8x64xf32>
    %673 = arith.addf %610, %672 : vector<8x64xf32>
    %674 = arith.subf %670, %613 : vector<8x64xf32>
    %675 = arith.mulf %642, %674 : vector<8x64xf32>
    %676 = arith.addf %613, %675 : vector<8x64xf32>
    %677 = vector.extract_strided_slice %654 {offsets = [0, 0], sizes = [8, 192], strides = [1, 1]} : vector<8x256xf32> to vector<8x192xf32>
    %678 = arith.negf %677 : vector<8x192xf32>
    %679 = math.exp %678 : vector<8x192xf32>
    %cst_151 = arith.constant 1.000000e+00 : f32
    %680 = vector.broadcast %cst_151 : f32 to vector<8x192xf32>
    %681 = arith.addf %680, %679 : vector<8x192xf32>
    %682 = arith.divf %680, %681 : vector<8x192xf32>
    %683 = vector.extract_strided_slice %654 {offsets = [0, 192], sizes = [8, 64], strides = [1, 1]} : vector<8x256xf32> to vector<8x64xf32>
    %684 = math.tanh %683 : vector<8x64xf32>
    %685 = vector.extract_strided_slice %682 {offsets = [0, 0], sizes = [8, 64], strides = [1, 1]} : vector<8x192xf32> to vector<8x64xf32>
    %686 = vector.extract_strided_slice %682 {offsets = [0, 64], sizes = [8, 64], strides = [1, 1]} : vector<8x192xf32> to vector<8x64xf32>
    %687 = vector.extract_strided_slice %682 {offsets = [0, 128], sizes = [8, 64], strides = [1, 1]} : vector<8x192xf32> to vector<8x64xf32>
    %688 = arith.mulf %686, %632 : vector<8x64xf32>
    %689 = arith.mulf %685, %684 : vector<8x64xf32>
    %690 = arith.addf %688, %689 : vector<8x64xf32>
    %691 = math.tanh %690 : vector<8x64xf32>
    %692 = arith.mulf %687, %691 : vector<8x64xf32>
    %693 = arith.subf %690, %632 : vector<8x64xf32>
    %694 = arith.mulf %644, %693 : vector<8x64xf32>
    %695 = arith.addf %632, %694 : vector<8x64xf32>
    %696 = arith.subf %692, %635 : vector<8x64xf32>
    %697 = arith.mulf %644, %696 : vector<8x64xf32>
    %698 = arith.addf %635, %697 : vector<8x64xf32>
    %c2_i32_152 = arith.constant 2 : i32
    %c8_i32_153 = arith.constant 8 : i32
    %699 = arith.muli %c2_i32_152, %c8_i32_153 : i32
    %700 = tpu.assume_multiple %699, 8 : i32
    %c7_i32_154 = arith.constant 7 : i32
    %701 = arith.subi %c7_i32_154, %c2_i32_152 : i32
    %c8_i32_155 = arith.constant 8 : i32
    %702 = arith.muli %701, %c8_i32_155 : i32
    %703 = tpu.assume_multiple %702, 8 : i32
    %704 = arith.index_cast %700 : i32 to index
    %c0_156 = arith.constant 0 : index
    %705 = vector.load %arg2[%704, %c0_156] : memref<64x64xf32, #tpu.memory_space<vmem>>, vector<8x64xf32>
    %706 = arith.index_cast %703 : i32 to index
    %c0_157 = arith.constant 0 : index
    %707 = vector.load %arg2[%706, %c0_157] : memref<64x64xf32, #tpu.memory_space<vmem>>, vector<8x64xf32>
    %708 = arith.index_cast %700 : i32 to index
    %c0_158 = arith.constant 0 : index
    %709 = vector.load %arg18[%708, %c0_158] : memref<64x512xf32, #tpu.memory_space<vmem>>, vector<8x256xf32>
    %710 = arith.truncf %676 : vector<8x64xf32> to vector<8x64xbf16>
    %cst_159 = arith.constant dense<0.000000e+00> : vector<8x256xf32>
    %711 = tpu.matmul %710, %570, %cst_159 {dimension_numbers = #tpu.dot_dimension_numbers<[1], [0], [0], [1], [0, 0, 1, 1], [], []>} : vector<8x64xbf16>, vector<64x256xbf16>, vector<8x256xf32> -> vector<8x256xf32>
    %712 = arith.addf %709, %711 : vector<8x256xf32>
    %713 = arith.index_cast %703 : i32 to index
    %c256_160 = arith.constant 256 : index
    %714 = vector.load %arg18[%713, %c256_160] : memref<64x512xf32, #tpu.memory_space<vmem>>, vector<8x256xf32>
    %715 = arith.truncf %698 : vector<8x64xf32> to vector<8x64xbf16>
    %cst_161 = arith.constant dense<0.000000e+00> : vector<8x256xf32>
    %716 = tpu.matmul %715, %571, %cst_161 {dimension_numbers = #tpu.dot_dimension_numbers<[1], [0], [0], [1], [0, 0, 1, 1], [], []>} : vector<8x64xbf16>, vector<64x256xbf16>, vector<8x256xf32> -> vector<8x256xf32>
    %717 = arith.addf %714, %716 : vector<8x256xf32>
    %718 = vector.extract_strided_slice %712 {offsets = [0, 0], sizes = [8, 192], strides = [1, 1]} : vector<8x256xf32> to vector<8x192xf32>
    %719 = arith.negf %718 : vector<8x192xf32>
    %720 = math.exp %719 : vector<8x192xf32>
    %cst_162 = arith.constant 1.000000e+00 : f32
    %721 = vector.broadcast %cst_162 : f32 to vector<8x192xf32>
    %722 = arith.addf %721, %720 : vector<8x192xf32>
    %723 = arith.divf %721, %722 : vector<8x192xf32>
    %724 = vector.extract_strided_slice %712 {offsets = [0, 192], sizes = [8, 64], strides = [1, 1]} : vector<8x256xf32> to vector<8x64xf32>
    %725 = math.tanh %724 : vector<8x64xf32>
    %726 = vector.extract_strided_slice %723 {offsets = [0, 0], sizes = [8, 64], strides = [1, 1]} : vector<8x192xf32> to vector<8x64xf32>
    %727 = vector.extract_strided_slice %723 {offsets = [0, 64], sizes = [8, 64], strides = [1, 1]} : vector<8x192xf32> to vector<8x64xf32>
    %728 = vector.extract_strided_slice %723 {offsets = [0, 128], sizes = [8, 64], strides = [1, 1]} : vector<8x192xf32> to vector<8x64xf32>
    %729 = arith.mulf %727, %673 : vector<8x64xf32>
    %730 = arith.mulf %726, %725 : vector<8x64xf32>
    %731 = arith.addf %729, %730 : vector<8x64xf32>
    %732 = math.tanh %731 : vector<8x64xf32>
    %733 = arith.mulf %728, %732 : vector<8x64xf32>
    %734 = arith.subf %731, %673 : vector<8x64xf32>
    %735 = arith.mulf %705, %734 : vector<8x64xf32>
    %736 = arith.addf %673, %735 : vector<8x64xf32>
    %737 = arith.subf %733, %676 : vector<8x64xf32>
    %738 = arith.mulf %705, %737 : vector<8x64xf32>
    %739 = arith.addf %676, %738 : vector<8x64xf32>
    %740 = vector.extract_strided_slice %717 {offsets = [0, 0], sizes = [8, 192], strides = [1, 1]} : vector<8x256xf32> to vector<8x192xf32>
    %741 = arith.negf %740 : vector<8x192xf32>
    %742 = math.exp %741 : vector<8x192xf32>
    %cst_163 = arith.constant 1.000000e+00 : f32
    %743 = vector.broadcast %cst_163 : f32 to vector<8x192xf32>
    %744 = arith.addf %743, %742 : vector<8x192xf32>
    %745 = arith.divf %743, %744 : vector<8x192xf32>
    %746 = vector.extract_strided_slice %717 {offsets = [0, 192], sizes = [8, 64], strides = [1, 1]} : vector<8x256xf32> to vector<8x64xf32>
    %747 = math.tanh %746 : vector<8x64xf32>
    %748 = vector.extract_strided_slice %745 {offsets = [0, 0], sizes = [8, 64], strides = [1, 1]} : vector<8x192xf32> to vector<8x64xf32>
    %749 = vector.extract_strided_slice %745 {offsets = [0, 64], sizes = [8, 64], strides = [1, 1]} : vector<8x192xf32> to vector<8x64xf32>
    %750 = vector.extract_strided_slice %745 {offsets = [0, 128], sizes = [8, 64], strides = [1, 1]} : vector<8x192xf32> to vector<8x64xf32>
    %751 = arith.mulf %749, %695 : vector<8x64xf32>
    %752 = arith.mulf %748, %747 : vector<8x64xf32>
    %753 = arith.addf %751, %752 : vector<8x64xf32>
    %754 = math.tanh %753 : vector<8x64xf32>
    %755 = arith.mulf %750, %754 : vector<8x64xf32>
    %756 = arith.subf %753, %695 : vector<8x64xf32>
    %757 = arith.mulf %707, %756 : vector<8x64xf32>
    %758 = arith.addf %695, %757 : vector<8x64xf32>
    %759 = arith.subf %755, %698 : vector<8x64xf32>
    %760 = arith.mulf %707, %759 : vector<8x64xf32>
    %761 = arith.addf %698, %760 : vector<8x64xf32>
    %c3_i32_164 = arith.constant 3 : i32
    %c8_i32_165 = arith.constant 8 : i32
    %762 = arith.muli %c3_i32_164, %c8_i32_165 : i32
    %763 = tpu.assume_multiple %762, 8 : i32
    %c7_i32_166 = arith.constant 7 : i32
    %764 = arith.subi %c7_i32_166, %c3_i32_164 : i32
    %c8_i32_167 = arith.constant 8 : i32
    %765 = arith.muli %764, %c8_i32_167 : i32
    %766 = tpu.assume_multiple %765, 8 : i32
    %767 = arith.index_cast %763 : i32 to index
    %c0_168 = arith.constant 0 : index
    %768 = vector.load %arg2[%767, %c0_168] : memref<64x64xf32, #tpu.memory_space<vmem>>, vector<8x64xf32>
    %769 = arith.index_cast %766 : i32 to index
    %c0_169 = arith.constant 0 : index
    %770 = vector.load %arg2[%769, %c0_169] : memref<64x64xf32, #tpu.memory_space<vmem>>, vector<8x64xf32>
    %771 = arith.index_cast %763 : i32 to index
    %c0_170 = arith.constant 0 : index
    %772 = vector.load %arg18[%771, %c0_170] : memref<64x512xf32, #tpu.memory_space<vmem>>, vector<8x256xf32>
    %773 = arith.truncf %739 : vector<8x64xf32> to vector<8x64xbf16>
    %cst_171 = arith.constant dense<0.000000e+00> : vector<8x256xf32>
    %774 = tpu.matmul %773, %570, %cst_171 {dimension_numbers = #tpu.dot_dimension_numbers<[1], [0], [0], [1], [0, 0, 1, 1], [], []>} : vector<8x64xbf16>, vector<64x256xbf16>, vector<8x256xf32> -> vector<8x256xf32>
    %775 = arith.addf %772, %774 : vector<8x256xf32>
    %776 = arith.index_cast %766 : i32 to index
    %c256_172 = arith.constant 256 : index
    %777 = vector.load %arg18[%776, %c256_172] : memref<64x512xf32, #tpu.memory_space<vmem>>, vector<8x256xf32>
    %778 = arith.truncf %761 : vector<8x64xf32> to vector<8x64xbf16>
    %cst_173 = arith.constant dense<0.000000e+00> : vector<8x256xf32>
    %779 = tpu.matmul %778, %571, %cst_173 {dimension_numbers = #tpu.dot_dimension_numbers<[1], [0], [0], [1], [0, 0, 1, 1], [], []>} : vector<8x64xbf16>, vector<64x256xbf16>, vector<8x256xf32> -> vector<8x256xf32>
    %780 = arith.addf %777, %779 : vector<8x256xf32>
    %781 = vector.extract_strided_slice %775 {offsets = [0, 0], sizes = [8, 192], strides = [1, 1]} : vector<8x256xf32> to vector<8x192xf32>
    %782 = arith.negf %781 : vector<8x192xf32>
    %783 = math.exp %782 : vector<8x192xf32>
    %cst_174 = arith.constant 1.000000e+00 : f32
    %784 = vector.broadcast %cst_174 : f32 to vector<8x192xf32>
    %785 = arith.addf %784, %783 : vector<8x192xf32>
    %786 = arith.divf %784, %785 : vector<8x192xf32>
    %787 = vector.extract_strided_slice %775 {offsets = [0, 192], sizes = [8, 64], strides = [1, 1]} : vector<8x256xf32> to vector<8x64xf32>
    %788 = math.tanh %787 : vector<8x64xf32>
    %789 = vector.extract_strided_slice %786 {offsets = [0, 0], sizes = [8, 64], strides = [1, 1]} : vector<8x192xf32> to vector<8x64xf32>
    %790 = vector.extract_strided_slice %786 {offsets = [0, 64], sizes = [8, 64], strides = [1, 1]} : vector<8x192xf32> to vector<8x64xf32>
    %791 = vector.extract_strided_slice %786 {offsets = [0, 128], sizes = [8, 64], strides = [1, 1]} : vector<8x192xf32> to vector<8x64xf32>
    %792 = arith.mulf %790, %736 : vector<8x64xf32>
    %793 = arith.mulf %789, %788 : vector<8x64xf32>
    %794 = arith.addf %792, %793 : vector<8x64xf32>
    %795 = math.tanh %794 : vector<8x64xf32>
    %796 = arith.mulf %791, %795 : vector<8x64xf32>
    %797 = arith.subf %794, %736 : vector<8x64xf32>
    %798 = arith.mulf %768, %797 : vector<8x64xf32>
    %799 = arith.addf %736, %798 : vector<8x64xf32>
    %800 = arith.subf %796, %739 : vector<8x64xf32>
    %801 = arith.mulf %768, %800 : vector<8x64xf32>
    %802 = arith.addf %739, %801 : vector<8x64xf32>
    %803 = vector.extract_strided_slice %780 {offsets = [0, 0], sizes = [8, 192], strides = [1, 1]} : vector<8x256xf32> to vector<8x192xf32>
    %804 = arith.negf %803 : vector<8x192xf32>
    %805 = math.exp %804 : vector<8x192xf32>
    %cst_175 = arith.constant 1.000000e+00 : f32
    %806 = vector.broadcast %cst_175 : f32 to vector<8x192xf32>
    %807 = arith.addf %806, %805 : vector<8x192xf32>
    %808 = arith.divf %806, %807 : vector<8x192xf32>
    %809 = vector.extract_strided_slice %780 {offsets = [0, 192], sizes = [8, 64], strides = [1, 1]} : vector<8x256xf32> to vector<8x64xf32>
    %810 = math.tanh %809 : vector<8x64xf32>
    %811 = vector.extract_strided_slice %808 {offsets = [0, 0], sizes = [8, 64], strides = [1, 1]} : vector<8x192xf32> to vector<8x64xf32>
    %812 = vector.extract_strided_slice %808 {offsets = [0, 64], sizes = [8, 64], strides = [1, 1]} : vector<8x192xf32> to vector<8x64xf32>
    %813 = vector.extract_strided_slice %808 {offsets = [0, 128], sizes = [8, 64], strides = [1, 1]} : vector<8x192xf32> to vector<8x64xf32>
    %814 = arith.mulf %812, %758 : vector<8x64xf32>
    %815 = arith.mulf %811, %810 : vector<8x64xf32>
    %816 = arith.addf %814, %815 : vector<8x64xf32>
    %817 = math.tanh %816 : vector<8x64xf32>
    %818 = arith.mulf %813, %817 : vector<8x64xf32>
    %819 = arith.subf %816, %758 : vector<8x64xf32>
    %820 = arith.mulf %770, %819 : vector<8x64xf32>
    %821 = arith.addf %758, %820 : vector<8x64xf32>
    %822 = arith.subf %818, %761 : vector<8x64xf32>
    %823 = arith.mulf %770, %822 : vector<8x64xf32>
    %824 = arith.addf %761, %823 : vector<8x64xf32>
    %c4_i32_176 = arith.constant 4 : i32
    %c8_i32_177 = arith.constant 8 : i32
    %825 = arith.muli %c4_i32_176, %c8_i32_177 : i32
    %826 = tpu.assume_multiple %825, 8 : i32
    %c7_i32_178 = arith.constant 7 : i32
    %827 = arith.subi %c7_i32_178, %c4_i32_176 : i32
    %c8_i32_179 = arith.constant 8 : i32
    %828 = arith.muli %827, %c8_i32_179 : i32
    %829 = tpu.assume_multiple %828, 8 : i32
    %830 = arith.index_cast %826 : i32 to index
    %c0_180 = arith.constant 0 : index
    %831 = vector.load %arg2[%830, %c0_180] : memref<64x64xf32, #tpu.memory_space<vmem>>, vector<8x64xf32>
    %832 = arith.index_cast %829 : i32 to index
    %c0_181 = arith.constant 0 : index
    %833 = vector.load %arg2[%832, %c0_181] : memref<64x64xf32, #tpu.memory_space<vmem>>, vector<8x64xf32>
    %834 = arith.index_cast %826 : i32 to index
    %c0_182 = arith.constant 0 : index
    %835 = vector.load %arg18[%834, %c0_182] : memref<64x512xf32, #tpu.memory_space<vmem>>, vector<8x256xf32>
    %836 = arith.truncf %802 : vector<8x64xf32> to vector<8x64xbf16>
    %cst_183 = arith.constant dense<0.000000e+00> : vector<8x256xf32>
    %837 = tpu.matmul %836, %570, %cst_183 {dimension_numbers = #tpu.dot_dimension_numbers<[1], [0], [0], [1], [0, 0, 1, 1], [], []>} : vector<8x64xbf16>, vector<64x256xbf16>, vector<8x256xf32> -> vector<8x256xf32>
    %838 = arith.addf %835, %837 : vector<8x256xf32>
    %839 = arith.index_cast %829 : i32 to index
    %c256_184 = arith.constant 256 : index
    %840 = vector.load %arg18[%839, %c256_184] : memref<64x512xf32, #tpu.memory_space<vmem>>, vector<8x256xf32>
    %841 = arith.truncf %824 : vector<8x64xf32> to vector<8x64xbf16>
    %cst_185 = arith.constant dense<0.000000e+00> : vector<8x256xf32>
    %842 = tpu.matmul %841, %571, %cst_185 {dimension_numbers = #tpu.dot_dimension_numbers<[1], [0], [0], [1], [0, 0, 1, 1], [], []>} : vector<8x64xbf16>, vector<64x256xbf16>, vector<8x256xf32> -> vector<8x256xf32>
    %843 = arith.addf %840, %842 : vector<8x256xf32>
    %844 = vector.extract_strided_slice %838 {offsets = [0, 0], sizes = [8, 192], strides = [1, 1]} : vector<8x256xf32> to vector<8x192xf32>
    %845 = arith.negf %844 : vector<8x192xf32>
    %846 = math.exp %845 : vector<8x192xf32>
    %cst_186 = arith.constant 1.000000e+00 : f32
    %847 = vector.broadcast %cst_186 : f32 to vector<8x192xf32>
    %848 = arith.addf %847, %846 : vector<8x192xf32>
    %849 = arith.divf %847, %848 : vector<8x192xf32>
    %850 = vector.extract_strided_slice %838 {offsets = [0, 192], sizes = [8, 64], strides = [1, 1]} : vector<8x256xf32> to vector<8x64xf32>
    %851 = math.tanh %850 : vector<8x64xf32>
    %852 = vector.extract_strided_slice %849 {offsets = [0, 0], sizes = [8, 64], strides = [1, 1]} : vector<8x192xf32> to vector<8x64xf32>
    %853 = vector.extract_strided_slice %849 {offsets = [0, 64], sizes = [8, 64], strides = [1, 1]} : vector<8x192xf32> to vector<8x64xf32>
    %854 = vector.extract_strided_slice %849 {offsets = [0, 128], sizes = [8, 64], strides = [1, 1]} : vector<8x192xf32> to vector<8x64xf32>
    %855 = arith.mulf %853, %799 : vector<8x64xf32>
    %856 = arith.mulf %852, %851 : vector<8x64xf32>
    %857 = arith.addf %855, %856 : vector<8x64xf32>
    %858 = math.tanh %857 : vector<8x64xf32>
    %859 = arith.mulf %854, %858 : vector<8x64xf32>
    %860 = arith.subf %857, %799 : vector<8x64xf32>
    %861 = arith.mulf %831, %860 : vector<8x64xf32>
    %862 = arith.addf %799, %861 : vector<8x64xf32>
    %863 = arith.subf %859, %802 : vector<8x64xf32>
    %864 = arith.mulf %831, %863 : vector<8x64xf32>
    %865 = arith.addf %802, %864 : vector<8x64xf32>
    %866 = vector.extract_strided_slice %843 {offsets = [0, 0], sizes = [8, 192], strides = [1, 1]} : vector<8x256xf32> to vector<8x192xf32>
    %867 = arith.negf %866 : vector<8x192xf32>
    %868 = math.exp %867 : vector<8x192xf32>
    %cst_187 = arith.constant 1.000000e+00 : f32
    %869 = vector.broadcast %cst_187 : f32 to vector<8x192xf32>
    %870 = arith.addf %869, %868 : vector<8x192xf32>
    %871 = arith.divf %869, %870 : vector<8x192xf32>
    %872 = vector.extract_strided_slice %843 {offsets = [0, 192], sizes = [8, 64], strides = [1, 1]} : vector<8x256xf32> to vector<8x64xf32>
    %873 = math.tanh %872 : vector<8x64xf32>
    %874 = vector.extract_strided_slice %871 {offsets = [0, 0], sizes = [8, 64], strides = [1, 1]} : vector<8x192xf32> to vector<8x64xf32>
    %875 = vector.extract_strided_slice %871 {offsets = [0, 64], sizes = [8, 64], strides = [1, 1]} : vector<8x192xf32> to vector<8x64xf32>
    %876 = vector.extract_strided_slice %871 {offsets = [0, 128], sizes = [8, 64], strides = [1, 1]} : vector<8x192xf32> to vector<8x64xf32>
    %877 = arith.mulf %875, %821 : vector<8x64xf32>
    %878 = arith.mulf %874, %873 : vector<8x64xf32>
    %879 = arith.addf %877, %878 : vector<8x64xf32>
    %880 = math.tanh %879 : vector<8x64xf32>
    %881 = arith.mulf %876, %880 : vector<8x64xf32>
    %882 = arith.subf %879, %821 : vector<8x64xf32>
    %883 = arith.mulf %833, %882 : vector<8x64xf32>
    %884 = arith.addf %821, %883 : vector<8x64xf32>
    %885 = arith.subf %881, %824 : vector<8x64xf32>
    %886 = arith.mulf %833, %885 : vector<8x64xf32>
    %887 = arith.addf %824, %886 : vector<8x64xf32>
    %c5_i32_188 = arith.constant 5 : i32
    %c8_i32_189 = arith.constant 8 : i32
    %888 = arith.muli %c5_i32_188, %c8_i32_189 : i32
    %889 = tpu.assume_multiple %888, 8 : i32
    %c7_i32_190 = arith.constant 7 : i32
    %890 = arith.subi %c7_i32_190, %c5_i32_188 : i32
    %c8_i32_191 = arith.constant 8 : i32
    %891 = arith.muli %890, %c8_i32_191 : i32
    %892 = tpu.assume_multiple %891, 8 : i32
    %893 = arith.index_cast %889 : i32 to index
    %c0_192 = arith.constant 0 : index
    %894 = vector.load %arg2[%893, %c0_192] : memref<64x64xf32, #tpu.memory_space<vmem>>, vector<8x64xf32>
    %895 = arith.index_cast %892 : i32 to index
    %c0_193 = arith.constant 0 : index
    %896 = vector.load %arg2[%895, %c0_193] : memref<64x64xf32, #tpu.memory_space<vmem>>, vector<8x64xf32>
    %897 = arith.index_cast %889 : i32 to index
    %c0_194 = arith.constant 0 : index
    %898 = vector.load %arg18[%897, %c0_194] : memref<64x512xf32, #tpu.memory_space<vmem>>, vector<8x256xf32>
    %899 = arith.truncf %865 : vector<8x64xf32> to vector<8x64xbf16>
    %cst_195 = arith.constant dense<0.000000e+00> : vector<8x256xf32>
    %900 = tpu.matmul %899, %570, %cst_195 {dimension_numbers = #tpu.dot_dimension_numbers<[1], [0], [0], [1], [0, 0, 1, 1], [], []>} : vector<8x64xbf16>, vector<64x256xbf16>, vector<8x256xf32> -> vector<8x256xf32>
    %901 = arith.addf %898, %900 : vector<8x256xf32>
    %902 = arith.index_cast %892 : i32 to index
    %c256_196 = arith.constant 256 : index
    %903 = vector.load %arg18[%902, %c256_196] : memref<64x512xf32, #tpu.memory_space<vmem>>, vector<8x256xf32>
    %904 = arith.truncf %887 : vector<8x64xf32> to vector<8x64xbf16>
    %cst_197 = arith.constant dense<0.000000e+00> : vector<8x256xf32>
    %905 = tpu.matmul %904, %571, %cst_197 {dimension_numbers = #tpu.dot_dimension_numbers<[1], [0], [0], [1], [0, 0, 1, 1], [], []>} : vector<8x64xbf16>, vector<64x256xbf16>, vector<8x256xf32> -> vector<8x256xf32>
    %906 = arith.addf %903, %905 : vector<8x256xf32>
    %907 = vector.extract_strided_slice %901 {offsets = [0, 0], sizes = [8, 192], strides = [1, 1]} : vector<8x256xf32> to vector<8x192xf32>
    %908 = arith.negf %907 : vector<8x192xf32>
    %909 = math.exp %908 : vector<8x192xf32>
    %cst_198 = arith.constant 1.000000e+00 : f32
    %910 = vector.broadcast %cst_198 : f32 to vector<8x192xf32>
    %911 = arith.addf %910, %909 : vector<8x192xf32>
    %912 = arith.divf %910, %911 : vector<8x192xf32>
    %913 = vector.extract_strided_slice %901 {offsets = [0, 192], sizes = [8, 64], strides = [1, 1]} : vector<8x256xf32> to vector<8x64xf32>
    %914 = math.tanh %913 : vector<8x64xf32>
    %915 = vector.extract_strided_slice %912 {offsets = [0, 0], sizes = [8, 64], strides = [1, 1]} : vector<8x192xf32> to vector<8x64xf32>
    %916 = vector.extract_strided_slice %912 {offsets = [0, 64], sizes = [8, 64], strides = [1, 1]} : vector<8x192xf32> to vector<8x64xf32>
    %917 = vector.extract_strided_slice %912 {offsets = [0, 128], sizes = [8, 64], strides = [1, 1]} : vector<8x192xf32> to vector<8x64xf32>
    %918 = arith.mulf %916, %862 : vector<8x64xf32>
    %919 = arith.mulf %915, %914 : vector<8x64xf32>
    %920 = arith.addf %918, %919 : vector<8x64xf32>
    %921 = math.tanh %920 : vector<8x64xf32>
    %922 = arith.mulf %917, %921 : vector<8x64xf32>
    %923 = arith.subf %920, %862 : vector<8x64xf32>
    %924 = arith.mulf %894, %923 : vector<8x64xf32>
    %925 = arith.addf %862, %924 : vector<8x64xf32>
    %926 = arith.subf %922, %865 : vector<8x64xf32>
    %927 = arith.mulf %894, %926 : vector<8x64xf32>
    %928 = arith.addf %865, %927 : vector<8x64xf32>
    %929 = vector.extract_strided_slice %906 {offsets = [0, 0], sizes = [8, 192], strides = [1, 1]} : vector<8x256xf32> to vector<8x192xf32>
    %930 = arith.negf %929 : vector<8x192xf32>
    %931 = math.exp %930 : vector<8x192xf32>
    %cst_199 = arith.constant 1.000000e+00 : f32
    %932 = vector.broadcast %cst_199 : f32 to vector<8x192xf32>
    %933 = arith.addf %932, %931 : vector<8x192xf32>
    %934 = arith.divf %932, %933 : vector<8x192xf32>
    %935 = vector.extract_strided_slice %906 {offsets = [0, 192], sizes = [8, 64], strides = [1, 1]} : vector<8x256xf32> to vector<8x64xf32>
    %936 = math.tanh %935 : vector<8x64xf32>
    %937 = vector.extract_strided_slice %934 {offsets = [0, 0], sizes = [8, 64], strides = [1, 1]} : vector<8x192xf32> to vector<8x64xf32>
    %938 = vector.extract_strided_slice %934 {offsets = [0, 64], sizes = [8, 64], strides = [1, 1]} : vector<8x192xf32> to vector<8x64xf32>
    %939 = vector.extract_strided_slice %934 {offsets = [0, 128], sizes = [8, 64], strides = [1, 1]} : vector<8x192xf32> to vector<8x64xf32>
    %940 = arith.mulf %938, %884 : vector<8x64xf32>
    %941 = arith.mulf %937, %936 : vector<8x64xf32>
    %942 = arith.addf %940, %941 : vector<8x64xf32>
    %943 = math.tanh %942 : vector<8x64xf32>
    %944 = arith.mulf %939, %943 : vector<8x64xf32>
    %945 = arith.subf %942, %884 : vector<8x64xf32>
    %946 = arith.mulf %896, %945 : vector<8x64xf32>
    %947 = arith.addf %884, %946 : vector<8x64xf32>
    %948 = arith.subf %944, %887 : vector<8x64xf32>
    %949 = arith.mulf %896, %948 : vector<8x64xf32>
    %950 = arith.addf %887, %949 : vector<8x64xf32>
    %c6_i32_200 = arith.constant 6 : i32
    %c8_i32_201 = arith.constant 8 : i32
    %951 = arith.muli %c6_i32_200, %c8_i32_201 : i32
    %952 = tpu.assume_multiple %951, 8 : i32
    %c7_i32_202 = arith.constant 7 : i32
    %953 = arith.subi %c7_i32_202, %c6_i32_200 : i32
    %c8_i32_203 = arith.constant 8 : i32
    %954 = arith.muli %953, %c8_i32_203 : i32
    %955 = tpu.assume_multiple %954, 8 : i32
    %956 = arith.index_cast %952 : i32 to index
    %c0_204 = arith.constant 0 : index
    %957 = vector.load %arg2[%956, %c0_204] : memref<64x64xf32, #tpu.memory_space<vmem>>, vector<8x64xf32>
    %958 = arith.index_cast %955 : i32 to index
    %c0_205 = arith.constant 0 : index
    %959 = vector.load %arg2[%958, %c0_205] : memref<64x64xf32, #tpu.memory_space<vmem>>, vector<8x64xf32>
    %960 = arith.index_cast %952 : i32 to index
    %c0_206 = arith.constant 0 : index
    %961 = vector.load %arg18[%960, %c0_206] : memref<64x512xf32, #tpu.memory_space<vmem>>, vector<8x256xf32>
    %962 = arith.truncf %928 : vector<8x64xf32> to vector<8x64xbf16>
    %cst_207 = arith.constant dense<0.000000e+00> : vector<8x256xf32>
    %963 = tpu.matmul %962, %570, %cst_207 {dimension_numbers = #tpu.dot_dimension_numbers<[1], [0], [0], [1], [0, 0, 1, 1], [], []>} : vector<8x64xbf16>, vector<64x256xbf16>, vector<8x256xf32> -> vector<8x256xf32>
    %964 = arith.addf %961, %963 : vector<8x256xf32>
    %965 = arith.index_cast %955 : i32 to index
    %c256_208 = arith.constant 256 : index
    %966 = vector.load %arg18[%965, %c256_208] : memref<64x512xf32, #tpu.memory_space<vmem>>, vector<8x256xf32>
    %967 = arith.truncf %950 : vector<8x64xf32> to vector<8x64xbf16>
    %cst_209 = arith.constant dense<0.000000e+00> : vector<8x256xf32>
    %968 = tpu.matmul %967, %571, %cst_209 {dimension_numbers = #tpu.dot_dimension_numbers<[1], [0], [0], [1], [0, 0, 1, 1], [], []>} : vector<8x64xbf16>, vector<64x256xbf16>, vector<8x256xf32> -> vector<8x256xf32>
    %969 = arith.addf %966, %968 : vector<8x256xf32>
    %970 = vector.extract_strided_slice %964 {offsets = [0, 0], sizes = [8, 192], strides = [1, 1]} : vector<8x256xf32> to vector<8x192xf32>
    %971 = arith.negf %970 : vector<8x192xf32>
    %972 = math.exp %971 : vector<8x192xf32>
    %cst_210 = arith.constant 1.000000e+00 : f32
    %973 = vector.broadcast %cst_210 : f32 to vector<8x192xf32>
    %974 = arith.addf %973, %972 : vector<8x192xf32>
    %975 = arith.divf %973, %974 : vector<8x192xf32>
    %976 = vector.extract_strided_slice %964 {offsets = [0, 192], sizes = [8, 64], strides = [1, 1]} : vector<8x256xf32> to vector<8x64xf32>
    %977 = math.tanh %976 : vector<8x64xf32>
    %978 = vector.extract_strided_slice %975 {offsets = [0, 0], sizes = [8, 64], strides = [1, 1]} : vector<8x192xf32> to vector<8x64xf32>
    %979 = vector.extract_strided_slice %975 {offsets = [0, 64], sizes = [8, 64], strides = [1, 1]} : vector<8x192xf32> to vector<8x64xf32>
    %980 = vector.extract_strided_slice %975 {offsets = [0, 128], sizes = [8, 64], strides = [1, 1]} : vector<8x192xf32> to vector<8x64xf32>
    %981 = arith.mulf %979, %925 : vector<8x64xf32>
    %982 = arith.mulf %978, %977 : vector<8x64xf32>
    %983 = arith.addf %981, %982 : vector<8x64xf32>
    %984 = math.tanh %983 : vector<8x64xf32>
    %985 = arith.mulf %980, %984 : vector<8x64xf32>
    %986 = arith.subf %983, %925 : vector<8x64xf32>
    %987 = arith.mulf %957, %986 : vector<8x64xf32>
    %988 = arith.addf %925, %987 : vector<8x64xf32>
    %989 = arith.subf %985, %928 : vector<8x64xf32>
    %990 = arith.mulf %957, %989 : vector<8x64xf32>
    %991 = arith.addf %928, %990 : vector<8x64xf32>
    %992 = vector.extract_strided_slice %969 {offsets = [0, 0], sizes = [8, 192], strides = [1, 1]} : vector<8x256xf32> to vector<8x192xf32>
    %993 = arith.negf %992 : vector<8x192xf32>
    %994 = math.exp %993 : vector<8x192xf32>
    %cst_211 = arith.constant 1.000000e+00 : f32
    %995 = vector.broadcast %cst_211 : f32 to vector<8x192xf32>
    %996 = arith.addf %995, %994 : vector<8x192xf32>
    %997 = arith.divf %995, %996 : vector<8x192xf32>
    %998 = vector.extract_strided_slice %969 {offsets = [0, 192], sizes = [8, 64], strides = [1, 1]} : vector<8x256xf32> to vector<8x64xf32>
    %999 = math.tanh %998 : vector<8x64xf32>
    %1000 = vector.extract_strided_slice %997 {offsets = [0, 0], sizes = [8, 64], strides = [1, 1]} : vector<8x192xf32> to vector<8x64xf32>
    %1001 = vector.extract_strided_slice %997 {offsets = [0, 64], sizes = [8, 64], strides = [1, 1]} : vector<8x192xf32> to vector<8x64xf32>
    %1002 = vector.extract_strided_slice %997 {offsets = [0, 128], sizes = [8, 64], strides = [1, 1]} : vector<8x192xf32> to vector<8x64xf32>
    %1003 = arith.mulf %1001, %947 : vector<8x64xf32>
    %1004 = arith.mulf %1000, %999 : vector<8x64xf32>
    %1005 = arith.addf %1003, %1004 : vector<8x64xf32>
    %1006 = math.tanh %1005 : vector<8x64xf32>
    %1007 = arith.mulf %1002, %1006 : vector<8x64xf32>
    %1008 = arith.subf %1005, %947 : vector<8x64xf32>
    %1009 = arith.mulf %959, %1008 : vector<8x64xf32>
    %1010 = arith.addf %947, %1009 : vector<8x64xf32>
    %1011 = arith.subf %1007, %950 : vector<8x64xf32>
    %1012 = arith.mulf %959, %1011 : vector<8x64xf32>
    %1013 = arith.addf %950, %1012 : vector<8x64xf32>
    %c7_i32_212 = arith.constant 7 : i32
    %c8_i32_213 = arith.constant 8 : i32
    %1014 = arith.muli %c7_i32_212, %c8_i32_213 : i32
    %1015 = tpu.assume_multiple %1014, 8 : i32
    %c7_i32_214 = arith.constant 7 : i32
    %1016 = arith.subi %c7_i32_214, %c7_i32_212 : i32
    %c8_i32_215 = arith.constant 8 : i32
    %1017 = arith.muli %1016, %c8_i32_215 : i32
    %1018 = tpu.assume_multiple %1017, 8 : i32
    %1019 = arith.index_cast %1015 : i32 to index
    %c0_216 = arith.constant 0 : index
    %1020 = vector.load %arg2[%1019, %c0_216] : memref<64x64xf32, #tpu.memory_space<vmem>>, vector<8x64xf32>
    %1021 = arith.index_cast %1018 : i32 to index
    %c0_217 = arith.constant 0 : index
    %1022 = vector.load %arg2[%1021, %c0_217] : memref<64x64xf32, #tpu.memory_space<vmem>>, vector<8x64xf32>
    %1023 = arith.index_cast %1015 : i32 to index
    %c0_218 = arith.constant 0 : index
    %1024 = vector.load %arg18[%1023, %c0_218] : memref<64x512xf32, #tpu.memory_space<vmem>>, vector<8x256xf32>
    %1025 = arith.truncf %991 : vector<8x64xf32> to vector<8x64xbf16>
    %cst_219 = arith.constant dense<0.000000e+00> : vector<8x256xf32>
    %1026 = tpu.matmul %1025, %570, %cst_219 {dimension_numbers = #tpu.dot_dimension_numbers<[1], [0], [0], [1], [0, 0, 1, 1], [], []>} : vector<8x64xbf16>, vector<64x256xbf16>, vector<8x256xf32> -> vector<8x256xf32>
    %1027 = arith.addf %1024, %1026 : vector<8x256xf32>
    %1028 = arith.index_cast %1018 : i32 to index
    %c256_220 = arith.constant 256 : index
    %1029 = vector.load %arg18[%1028, %c256_220] : memref<64x512xf32, #tpu.memory_space<vmem>>, vector<8x256xf32>
    %1030 = arith.truncf %1013 : vector<8x64xf32> to vector<8x64xbf16>
    %cst_221 = arith.constant dense<0.000000e+00> : vector<8x256xf32>
    %1031 = tpu.matmul %1030, %571, %cst_221 {dimension_numbers = #tpu.dot_dimension_numbers<[1], [0], [0], [1], [0, 0, 1, 1], [], []>} : vector<8x64xbf16>, vector<64x256xbf16>, vector<8x256xf32> -> vector<8x256xf32>
    %1032 = arith.addf %1029, %1031 : vector<8x256xf32>
    %1033 = vector.extract_strided_slice %1027 {offsets = [0, 0], sizes = [8, 192], strides = [1, 1]} : vector<8x256xf32> to vector<8x192xf32>
    %1034 = arith.negf %1033 : vector<8x192xf32>
    %1035 = math.exp %1034 : vector<8x192xf32>
    %cst_222 = arith.constant 1.000000e+00 : f32
    %1036 = vector.broadcast %cst_222 : f32 to vector<8x192xf32>
    %1037 = arith.addf %1036, %1035 : vector<8x192xf32>
    %1038 = arith.divf %1036, %1037 : vector<8x192xf32>
    %1039 = vector.extract_strided_slice %1027 {offsets = [0, 192], sizes = [8, 64], strides = [1, 1]} : vector<8x256xf32> to vector<8x64xf32>
    %1040 = math.tanh %1039 : vector<8x64xf32>
    %1041 = vector.extract_strided_slice %1038 {offsets = [0, 0], sizes = [8, 64], strides = [1, 1]} : vector<8x192xf32> to vector<8x64xf32>
    %1042 = vector.extract_strided_slice %1038 {offsets = [0, 64], sizes = [8, 64], strides = [1, 1]} : vector<8x192xf32> to vector<8x64xf32>
    %1043 = vector.extract_strided_slice %1038 {offsets = [0, 128], sizes = [8, 64], strides = [1, 1]} : vector<8x192xf32> to vector<8x64xf32>
    %1044 = arith.mulf %1042, %988 : vector<8x64xf32>
    %1045 = arith.mulf %1041, %1040 : vector<8x64xf32>
    %1046 = arith.addf %1044, %1045 : vector<8x64xf32>
    %1047 = math.tanh %1046 : vector<8x64xf32>
    %1048 = arith.mulf %1043, %1047 : vector<8x64xf32>
    %1049 = arith.subf %1046, %988 : vector<8x64xf32>
    %1050 = arith.mulf %1020, %1049 : vector<8x64xf32>
    %1051 = arith.addf %988, %1050 : vector<8x64xf32>
    %1052 = arith.subf %1048, %991 : vector<8x64xf32>
    %1053 = arith.mulf %1020, %1052 : vector<8x64xf32>
    %1054 = arith.addf %991, %1053 : vector<8x64xf32>
    %1055 = vector.extract_strided_slice %1032 {offsets = [0, 0], sizes = [8, 192], strides = [1, 1]} : vector<8x256xf32> to vector<8x192xf32>
    %1056 = arith.negf %1055 : vector<8x192xf32>
    %1057 = math.exp %1056 : vector<8x192xf32>
    %cst_223 = arith.constant 1.000000e+00 : f32
    %1058 = vector.broadcast %cst_223 : f32 to vector<8x192xf32>
    %1059 = arith.addf %1058, %1057 : vector<8x192xf32>
    %1060 = arith.divf %1058, %1059 : vector<8x192xf32>
    %1061 = vector.extract_strided_slice %1032 {offsets = [0, 192], sizes = [8, 64], strides = [1, 1]} : vector<8x256xf32> to vector<8x64xf32>
    %1062 = math.tanh %1061 : vector<8x64xf32>
    %1063 = vector.extract_strided_slice %1060 {offsets = [0, 0], sizes = [8, 64], strides = [1, 1]} : vector<8x192xf32> to vector<8x64xf32>
    %1064 = vector.extract_strided_slice %1060 {offsets = [0, 64], sizes = [8, 64], strides = [1, 1]} : vector<8x192xf32> to vector<8x64xf32>
    %1065 = vector.extract_strided_slice %1060 {offsets = [0, 128], sizes = [8, 64], strides = [1, 1]} : vector<8x192xf32> to vector<8x64xf32>
    %1066 = arith.mulf %1064, %1010 : vector<8x64xf32>
    %1067 = arith.mulf %1063, %1062 : vector<8x64xf32>
    %1068 = arith.addf %1066, %1067 : vector<8x64xf32>
    %1069 = math.tanh %1068 : vector<8x64xf32>
    %1070 = arith.mulf %1065, %1069 : vector<8x64xf32>
    %1071 = arith.subf %1068, %1010 : vector<8x64xf32>
    %1072 = arith.mulf %1022, %1071 : vector<8x64xf32>
    %1073 = arith.addf %1010, %1072 : vector<8x64xf32>
    %1074 = arith.subf %1070, %1013 : vector<8x64xf32>
    %1075 = arith.mulf %1022, %1074 : vector<8x64xf32>
    %1076 = arith.addf %1013, %1075 : vector<8x64xf32>
    %c8_i32_224 = arith.constant 8 : i32
    %1077 = tpu.concatenate %1054, %1076 in 1 : vector<8x64xf32>, vector<8x64xf32> -> vector<8x128xf32>
    %1078 = arith.truncf %1077 : vector<8x128xf32> to vector<8x128xbf16>
    %c0_225 = arith.constant 0 : index
    %c0_226 = arith.constant 0 : index
    %1079 = vector.load %arg11[%c0_225, %c0_226] : memref<128x128xbf16, #tpu.memory_space<vmem>>, vector<128x128xbf16>
    %cst_227 = arith.constant dense<0.000000e+00> : vector<8x128xf32>
    %1080 = tpu.matmul %1078, %1079, %cst_227 {dimension_numbers = #tpu.dot_dimension_numbers<[1], [0], [0], [1], [0, 0, 1, 1], [], []>} : vector<8x128xbf16>, vector<128x128xbf16>, vector<8x128xf32> -> vector<8x128xf32>
    %c0_228 = arith.constant 0 : index
    %c0_229 = arith.constant 0 : index
    %1081 = vector.load %arg12[%c0_228, %c0_229] : memref<1x128xf32, #tpu.memory_space<vmem>>, vector<1x128xf32>
    %1082 = vector.broadcast %1081 : vector<1x128xf32> to vector<8x128xf32>
    %1083 = arith.addf %1080, %1082 : vector<8x128xf32>
    %cst_230 = arith.constant 0.000000e+00 : f32
    %1084 = vector.broadcast %cst_230 : f32 to vector<8x128xf32>
    %1085 = arith.maximumf %1083, %1084 : vector<8x128xf32>
    %1086 = arith.truncf %1085 : vector<8x128xf32> to vector<8x128xbf16>
    %c0_231 = arith.constant 0 : index
    %c0_232 = arith.constant 0 : index
    %1087 = vector.load %arg13[%c0_231, %c0_232] : memref<128x128xbf16, #tpu.memory_space<vmem>>, vector<128x128xbf16>
    %cst_233 = arith.constant dense<0.000000e+00> : vector<8x128xf32>
    %1088 = tpu.matmul %1086, %1087, %cst_233 {dimension_numbers = #tpu.dot_dimension_numbers<[1], [0], [0], [1], [0, 0, 1, 1], [], []>} : vector<8x128xbf16>, vector<128x128xbf16>, vector<8x128xf32> -> vector<8x128xf32>
    %c0_234 = arith.constant 0 : index
    %c0_235 = arith.constant 0 : index
    %1089 = vector.load %arg14[%c0_234, %c0_235] : memref<1x128xf32, #tpu.memory_space<vmem>>, vector<1x128xf32>
    %1090 = vector.broadcast %1089 : vector<1x128xf32> to vector<8x128xf32>
    %1091 = arith.addf %1088, %1090 : vector<8x128xf32>
    %cst_236 = arith.constant 0.000000e+00 : f32
    %1092 = vector.broadcast %cst_236 : f32 to vector<8x128xf32>
    %1093 = arith.maximumf %1091, %1092 : vector<8x128xf32>
    %1094 = arith.truncf %1093 : vector<8x128xf32> to vector<8x128xbf16>
    %c0_237 = arith.constant 0 : index
    %c0_238 = arith.constant 0 : index
    %1095 = vector.load %arg15[%c0_237, %c0_238] : memref<128x128xbf16, #tpu.memory_space<vmem>>, vector<128x128xbf16>
    %cst_239 = arith.constant dense<0.000000e+00> : vector<8x128xf32>
    %1096 = tpu.matmul %1094, %1095, %cst_239 {dimension_numbers = #tpu.dot_dimension_numbers<[1], [0], [0], [1], [0, 0, 1, 1], [], []>} : vector<8x128xbf16>, vector<128x128xbf16>, vector<8x128xf32> -> vector<8x128xf32>
    %c0_240 = arith.constant 0 : index
    %c0_241 = arith.constant 0 : index
    %1097 = vector.load %arg16[%c0_240, %c0_241] : memref<1x128xf32, #tpu.memory_space<vmem>>, vector<1x128xf32>
    %1098 = vector.broadcast %1097 : vector<1x128xf32> to vector<8x128xf32>
    %1099 = arith.addf %1096, %1098 : vector<8x128xf32>
    %cst_242 = arith.constant 0.000000e+00 : f32
    %1100 = vector.broadcast %cst_242 : f32 to vector<8x128xf32>
    %1101 = arith.maximumf %1099, %1100 : vector<8x128xf32>
    %c0_243 = arith.constant 0 : index
    %c0_244 = arith.constant 0 : index
    %1102 = vector.load %arg17[%c0_243, %c0_244] : memref<8x128xf32, #tpu.memory_space<vmem>>, vector<8x128xf32>
    tpu.vector_store %arg17[%c0_243, %c0_244], %1101 {strides = array<i32>} : memref<8x128xf32, #tpu.memory_space<vmem>>, vector<8x128xf32>,
    return
  }
  func.func @transform_0(%arg0: i32) -> (i32, i32) {
    %c0_i32 = arith.constant 0 : i32
    %c0_i32_0 = arith.constant 0 : i32
    %c0_i32_1 = arith.constant 0 : i32
    return %c0_i32, %c0_i32_0 : i32, i32
  }
  func.func @transform_1(%arg0: i32) -> (i32, i32) {
    %c0_i32 = arith.constant 0 : i32
    %c0_i32_0 = arith.constant 0 : i32
    %c0_i32_1 = arith.constant 0 : i32
    return %c0_i32, %c0_i32_0 : i32, i32
  }
  func.func @transform_2(%arg0: i32) -> (i32, i32) {
    %c0_i32 = arith.constant 0 : i32
    %c0_i32_0 = arith.constant 0 : i32
    %c0_i32_1 = arith.constant 0 : i32
    return %c0_i32, %c0_i32_0 : i32, i32
  }
  func.func @transform_3(%arg0: i32) -> (i32, i32) {
    %c0_i32 = arith.constant 0 : i32
    %c0_i32_0 = arith.constant 0 : i32
    %c0_i32_1 = arith.constant 0 : i32
    return %c0_i32, %c0_i32_0 : i32, i32
  }
  func.func @transform_4(%arg0: i32) -> (i32, i32) {
    %c0_i32 = arith.constant 0 : i32
    %c0_i32_0 = arith.constant 0 : i32
    %c0_i32_1 = arith.constant 0 : i32
    return %c0_i32, %c0_i32_0 : i32, i32
  }
  func.func @transform_5(%arg0: i32) -> (i32, i32) {
    %c0_i32 = arith.constant 0 : i32
    %c0_i32_0 = arith.constant 0 : i32
    %c0_i32_1 = arith.constant 0 : i32
    return %c0_i32, %c0_i32_0 : i32, i32
  }
  func.func @transform_6(%arg0: i32) -> (i32, i32) {
    %c0_i32 = arith.constant 0 : i32
    %c0_i32_0 = arith.constant 0 : i32
    %c0_i32_1 = arith.constant 0 : i32
    return %c0_i32, %c0_i32_0 : i32, i32
  }
  func.func @transform_7(%arg0: i32) -> (i32, i32) {
    %c0_i32 = arith.constant 0 : i32
    %c0_i32_0 = arith.constant 0 : i32
    %c0_i32_1 = arith.constant 0 : i32
    return %c0_i32, %c0_i32_0 : i32, i32
  }
  func.func @transform_8(%arg0: i32) -> (i32, i32) {
    %c0_i32 = arith.constant 0 : i32
    %c0_i32_0 = arith.constant 0 : i32
    %c0_i32_1 = arith.constant 0 : i32
    return %c0_i32, %c0_i32_0 : i32, i32
  }
  func.func @transform_9(%arg0: i32) -> (i32, i32) {
    %c0_i32 = arith.constant 0 : i32
    %c0_i32_0 = arith.constant 0 : i32
    %c0_i32_1 = arith.constant 0 : i32
    return %c0_i32, %c0_i32_0 : i32, i32
  }
  func.func @transform_10(%arg0: i32) -> (i32, i32) {
    %c0_i32 = arith.constant 0 : i32
    %c0_i32_0 = arith.constant 0 : i32
    %c0_i32_1 = arith.constant 0 : i32
    return %c0_i32, %c0_i32_0 : i32, i32
  }
  func.func @transform_11(%arg0: i32) -> (i32, i32) {
    %c0_i32 = arith.constant 0 : i32
    %c0_i32_0 = arith.constant 0 : i32
    %c0_i32_1 = arith.constant 0 : i32
    return %c0_i32, %c0_i32_0 : i32, i32
  }
  func.func @transform_12(%arg0: i32) -> (i32, i32) {
    %c0_i32 = arith.constant 0 : i32
    %c0_i32_0 = arith.constant 0 : i32
    %c0_i32_1 = arith.constant 0 : i32
    return %c0_i32, %c0_i32_0 : i32, i32
  }
  func.func @transform_13(%arg0: i32) -> (i32, i32) {
    %c0_i32 = arith.constant 0 : i32
    %c0_i32_0 = arith.constant 0 : i32
    %c0_i32_1 = arith.constant 0 : i32
    return %c0_i32, %c0_i32_0 : i32, i32
  }
  func.func @transform_14(%arg0: i32) -> (i32, i32) {
    %c0_i32 = arith.constant 0 : i32
    %c0_i32_0 = arith.constant 0 : i32
    %c0_i32_1 = arith.constant 0 : i32
    return %c0_i32, %c0_i32_0 : i32, i32
  }
  func.func @transform_15(%arg0: i32) -> (i32, i32) {
    %c0_i32 = arith.constant 0 : i32
    %c0_i32_0 = arith.constant 0 : i32
    %c0_i32_1 = arith.constant 0 : i32
    return %c0_i32, %c0_i32_0 : i32, i32
  }
  func.func @transform_16(%arg0: i32) -> (i32, i32) {
    %c0_i32 = arith.constant 0 : i32
    %c0_i32_0 = arith.constant 0 : i32
    %c0_i32_1 = arith.constant 0 : i32
    return %c0_i32, %c0_i32_0 : i32, i32
  }
}

</mosaic_0001>

<bundles_post_ra>
// kernel: sentiment_lstm_forward.1
= control target key start
LH: loop header
LB: loop body
LE: loop exit
PB: predicated region body
PF: predicated region fallthrough
CT: control target
= control target key end

     0   :  { %s7380_s0 = inlined_call_operand.vmem [shape: bf16[64,64], index: 0, kind: input, shape index: {}]   ;;  %s7381_s1 = inlined_call_operand.vmem [shape: f32[64,64], index: 1, kind: input, shape index: {}]   ;;  %s7382_s2 = inlined_call_operand.vmem [shape: bf16[64,512], index: 2, kind: input, shape index: {}]   ;;  %s7383_s3 = inlined_call_operand.vmem [shape: bf16[64,256], index: 3, kind: input, shape index: {}]   ;;  %s7384_s4 = inlined_call_operand.hbm [shape: bf16[64,256], index: 4, kind: input, shape index: {}]   ;;  %s7385_s5 = inlined_call_operand.hbm [shape: f32[1,512], index: 5, kind: input, shape index: {}]   ;;  %s7386_s6 = inlined_call_operand.vmem [shape: bf16[128,512], index: 6, kind: input, shape index: {}]   ;;  %s7387_s7 = inlined_call_operand.vmem [shape: bf16[64,256], index: 7, kind: input, shape index: {}]   ;;  %s7388_s8 = inlined_call_operand.hbm [shape: bf16[64,256], index: 8, kind: input, shape index: {}]   ;;  %s7389_s9 = inlined_call_operand.hbm [shape: f32[1,512], index: 9, kind: input, shape index: {}]   ;;  %s7390_s10 = inlined_call_operand.hbm [shape: bf16[128,128], index: 10, kind: input, shape index: {}]   ;;  %s7391_s11 = inlined_call_operand.vmem [shape: f32[1,128], index: 11, kind: input, shape index: {}]   ;;  %s7392_s12 = inlined_call_operand.hbm [shape: bf16[128,128], index: 12, kind: input, shape index: {}]   ;;  %s7393_s13 = inlined_call_operand.vmem [shape: f32[1,128], index: 13, kind: input, shape index: {}]   ;;  %s7394_s14 = inlined_call_operand.hbm [shape: bf16[128,128], index: 14, kind: input, shape index: {}]   ;;  %s7395_s15 = inlined_call_operand.vmem [shape: f32[1,128], index: 15, kind: input, shape index: {}]   ;;  %s7396_s16 = inlined_call_operand.vmem [shape: f32[8,128], index: 16, kind: output, shape index: {}]  }
   0x1   :  { %7406 = sst [smem:[#allocation27_spill]] %s7380_s0 }
   0x2   :  { %21 = vsyncpa [#allocation5], 0 }
   0x3   :  { %22 = vsyncpa [#allocation7], 0 }
   0x4   :  { %23 = vsyncpa [#allocation10], 0 }
   0x5   :  { %24 = vsyncpa [#allocation13], 0  ;;  %s5551_s21 = smov [#allocation6]   ;;  %s5552_s23 = smov [#allocation9]  }
   0x6   :  { %s51_s22 = sshll.u32 %s5551_s21, 4  ;;  %s77_s24 = sshll.u32 %s5552_s23, 4  ;;  %s52_s22 = int_to_ptr.vmem [resolvable:$true] %s51_s22  ;;  %s78_s24 = int_to_ptr.vmem [resolvable:$true] %s77_s24 }
   0x7   :  { %s5389_s27 = scalar_lea.hbm %s7385_s5, 64 }
   0x8   :  { %p5390_p0 = scmp.ne.s32.totalorder %s7385_s5, %s5389_s27  ;;  %p5393_p1 = scmp.lt.u32.totalorder %s5389_s27, %s7385_s5 }
   0xa   :  { %p5395_p2 = pnand %p5393_p1, %p5390_p0 }
   0xc   :  { %5398 = shalt.err (!%p5395_p2)
}
   0xd   :  { %s5399_s17 = scalar_lea.vmem %s52_s22, 64  ;;  %p5404_p4 = scmp.lt.s32.totalorder %s52_s22, %s52_s22 }
   0xe   :  { %p5400_p3 = scmp.ne.s32.totalorder %s52_s22, %s5399_s17  ;;  %p5405_p5 = scmp.lt.s32.totalorder %s5399_s17, %s5399_s17 }
  0x10   :  { %p5406_p6 = por %p5405_p5, %p5404_p4 }
  0x12   :  { %p5407_p7 = pnand %p5406_p6, %p5400_p3 }
  0x14   :  { %5410 = shalt.err (!%p5407_p7)
}
  0x15   :  { %54 = dma.hbm_to_vmem [thread:$0]  %s7385_s5, 64, %s52_s22, [#allocation7]  }
  0x16   :  { %s5411_s23 = scalar_lea.hbm %s7389_s9, 64 }
  0x17   :  { %p5412_p8 = scmp.ne.s32.totalorder %s7389_s9, %s5411_s23  ;;  %p5415_p9 = scmp.lt.u32.totalorder %s5411_s23, %s7389_s9 }
  0x19   :  { %p5417_p10 = pnand %p5415_p9, %p5412_p8 }
  0x1b   :  { %5420 = shalt.err (!%p5417_p10)
}
  0x1c   :  { %s5421_s29 = scalar_lea.vmem %s78_s24, 64  ;;  %p5426_p12 = scmp.lt.s32.totalorder %s78_s24, %s78_s24 }
  0x1d   :  { %p5422_p11 = scmp.ne.s32.totalorder %s78_s24, %s5421_s29  ;;  %p5427_p13 = scmp.lt.s32.totalorder %s5421_s29, %s5421_s29 }
  0x1f   :  { %p5428_p0 = por %p5427_p13, %p5426_p12 }
  0x21   :  { %p5429_p1 = pnand %p5428_p0, %p5422_p11 }
  0x23   :  { %5432 = shalt.err (!%p5429_p1)
}
  0x24   :  { %80 = dma.hbm_to_vmem [thread:$0]  %s7389_s9, 64, %s78_s24, [#allocation10]  }
  0x25   :  { %s5553_s30 = smov [#allocation12]   ;;  %s5554_s17 = smov [#allocation4]  }
  0x26   :  { %s100_s0 = sshll.u32 %s5553_s30, 4  ;;  %s38_s18 = sshll.u32 %s5554_s17, 4  ;;  %s101_s0 = int_to_ptr.vmem [resolvable:$true] %s100_s0  ;;  %s5674_s18 = int_to_ptr.vmem [resolvable:$true] %s38_s18 }
  0x27   :  { %s5433_s21 = scalar_lea.hbm %s7392_s12, 1024 }
  0x28   :  { %p5434_p2 = scmp.ne.s32.totalorder %s7392_s12, %s5433_s21  ;;  %p5437_p3 = scmp.lt.u32.totalorder %s5433_s21, %s7392_s12 }
  0x2a   :  { %p5439_p4 = pnand %p5437_p3, %p5434_p2 }
  0x2c   :  { %5442 = shalt.err (!%p5439_p4)
}
  0x2d   :  { %s5443_s9 = scalar_lea.vmem %s101_s0, 1024  ;;  %p5448_p6 = scmp.lt.s32.totalorder %s101_s0, %s101_s0 }
  0x2e   :  { %p5444_p5 = scmp.ne.s32.totalorder %s101_s0, %s5443_s9  ;;  %p5449_p7 = scmp.lt.s32.totalorder %s5443_s9, %s5443_s9 }
  0x30   :  { %p5450_p8 = por %p5449_p7, %p5448_p6 }
  0x32   :  { %p5451_p9 = pnand %p5450_p8, %p5444_p5 }
  0x34   :  { %5454 = shalt.err (!%p5451_p9)
}
  0x35   :  { %s5555_s24 = smov 64   ;;  %s5556_s28 = smov 4  }
  0x36   :  { %106 = dma.hbm_to_vmem [thread:$0]  %s7392_s12, 1024, %s101_s0, [#allocation13], %s5555_s24, %s5555_s24, %s5556_s28  }
  0x37   :  { %s5455_s17 = scalar_lea.hbm %s7384_s4, 1024 }
  0x38   :  { %p5456_p10 = scmp.ne.s32.totalorder %s7384_s4, %s5455_s17  ;;  %p5459_p11 = scmp.lt.u32.totalorder %s5455_s17, %s7384_s4 }
  0x3a   :  { %p5461_p12 = pnand %p5459_p11, %p5456_p10 }
  0x3c   :  { %5464 = shalt.err (!%p5461_p12)
}
  0x3d   :  { %s5465_s25 = scalar_lea.vmem %s5674_s18, 1024  ;;  %p5470_p0 = scmp.lt.s32.totalorder %s5674_s18, %s5674_s18 }
  0x3e   :  { %p5466_p13 = scmp.ne.s32.totalorder %s5674_s18, %s5465_s25  ;;  %p5471_p1 = scmp.lt.s32.totalorder %s5465_s25, %s5465_s25 }
  0x40   :  { %p5472_p2 = por %p5471_p1, %p5470_p0 }
  0x42   :  { %p5473_p3 = pnand %p5472_p2, %p5466_p13 }
  0x44   :  { %5476 = shalt.err (!%p5473_p3)
}
  0x45   :  { %s5557_s12 = smov 128   ;;  %s5558_s0 = smov 8  }
  0x46   :  { %44 = dma.hbm_to_vmem [thread:$0]  %s7384_s4, 1024, %s5674_s18, [#allocation5], %s5557_s12, %s5557_s12, %s5558_s0  }
  0x47   :  { %s5559_s9 = smov [#allocation8]   ;;  %s5560_s5 = smov [#allocation11]  }
  0x48   :  { %s64_s29 = sshll.u32 %s5559_s9, 4  ;;  %s86_s22 = sshll.u32 %s5560_s5, 4  ;;  %s65_s29 = int_to_ptr.vmem [resolvable:$true] %s64_s29  ;;  %s5708_s22 = int_to_ptr.vmem [resolvable:$true] %s86_s22 }
  0x49   :  { %s5477_s19 = scalar_lea.hbm %s7388_s8, 1024 }
  0x4a   :  { %p5478_p4 = scmp.ne.s32.totalorder %s7388_s8, %s5477_s19  ;;  %p5481_p5 = scmp.lt.u32.totalorder %s5477_s19, %s7388_s8 }
  0x4c   :  { %p5483_p6 = pnand %p5481_p5, %p5478_p4 }
  0x4e   :  { %5486 = shalt.err (!%p5483_p6)
}
  0x4f   :  { %s5487_s4 = scalar_lea.vmem %s65_s29, 1024  ;;  %p5492_p8 = scmp.lt.s32.totalorder %s65_s29, %s65_s29 }
  0x50   :  { %p5488_p7 = scmp.ne.s32.totalorder %s65_s29, %s5487_s4  ;;  %p5493_p9 = scmp.lt.s32.totalorder %s5487_s4, %s5487_s4 }
  0x52   :  { %p5494_p10 = por %p5493_p9, %p5492_p8 }
  0x54   :  { %p5495_p11 = pnand %p5494_p10, %p5488_p7 }
  0x56   :  { %5498 = shalt.err (!%p5495_p11)
}
  0x57   :  { %70 = dma.hbm_to_vmem [thread:$0]  %s7388_s8, 1024, %s65_s29, [#allocation7], %s5557_s12, %s5557_s12, %s5558_s0  }
  0x58   :  { %s5499_s5 = scalar_lea.hbm %s7390_s10, 1024 }
  0x59   :  { %p5500_p12 = scmp.ne.s32.totalorder %s7390_s10, %s5499_s5  ;;  %p5503_p13 = scmp.lt.u32.totalorder %s5499_s5, %s7390_s10 }
  0x5b   :  { %p5505_p0 = pnand %p5503_p13, %p5500_p12 }
  0x5d   :  { %5508 = shalt.err (!%p5505_p0)
}
  0x5e   :  { %s5509_s21 = scalar_lea.vmem %s5708_s22, 1024  ;;  %p5514_p2 = scmp.lt.s32.totalorder %s5708_s22, %s5708_s22 }
  0x5f   :  { %p5510_p1 = scmp.ne.s32.totalorder %s5708_s22, %s5509_s21  ;;  %p5515_p3 = scmp.lt.s32.totalorder %s5509_s21, %s5509_s21 }
  0x61   :  { %p5516_p4 = por %p5515_p3, %p5514_p2 }
  0x63   :  { %p5517_p5 = pnand %p5516_p4, %p5510_p1 }
  0x65   :  { %5520 = shalt.err (!%p5517_p5)
}
  0x66   :  { %92 = dma.hbm_to_vmem [thread:$0]  %s7390_s10, 1024, %s5708_s22, [#allocation10], %s5555_s24, %s5555_s24, %s5556_s28  }
  0x67   :  { %s5561_s0 = smov [#allocation14]   ;;  %s5521_s4 = scalar_lea.hbm %s7394_s14, 1024 }
  0x68   :  { %s114_s29 = sshll.u32 %s5561_s0, 4  ;;  %p5522_p6 = scmp.ne.s32.totalorder %s7394_s14, %s5521_s4  ;;  %s115_s29 = int_to_ptr.vmem [resolvable:$true] %s114_s29 }
  0x69   :  { %p5525_p7 = scmp.lt.u32.totalorder %s5521_s4, %s7394_s14 }
  0x6b   :  { %p5527_p8 = pnand %p5525_p7, %p5522_p6 }
  0x6d   :  { %5530 = shalt.err (!%p5527_p8)
}
  0x6e   :  { %s5531_s5 = scalar_lea.vmem %s115_s29, 1024  ;;  %p5536_p10 = scmp.lt.s32.totalorder %s115_s29, %s115_s29 }
  0x6f   :  { %p5532_p9 = scmp.ne.s32.totalorder %s115_s29, %s5531_s5  ;;  %p5537_p11 = scmp.lt.s32.totalorder %s5531_s5, %s5531_s5 }
  0x71   :  { %p5538_p12 = por %p5537_p11, %p5536_p10 }
  0x73   :  { %p5539_p13 = pnand %p5538_p12, %p5532_p9 }
  0x75   :  { %5542 = shalt.err (!%p5539_p13)
}
  0x76   :  { %120 = dma.hbm_to_vmem [thread:$0]  %s7394_s14, 1024, %s115_s29, [#allocation13], %s5555_s24, %s5555_s24, %s5556_s28  }
  0x77   :  { %5543 = dma.done.wait [#allocation5], 1024  }
  0x78   :  { %5544 = vsyncadd [#allocation5], 4294966272 }
  0x79   :  { %5545 = dma.done.wait [#allocation7], 1088  }
  0x7a   :  { %5546 = vsyncadd [#allocation7], 4294966208 }
  0x7b   :  { %5547 = dma.done.wait [#allocation10], 1088  }
  0x7c   :  { %5548 = vsyncadd [#allocation10], 4294966208 }
  0x7d   :  { %5549 = dma.done.wait [#allocation13], 2048  }
  0x7e   :  { %5550 = vsyncadd [#allocation13], 4294965248  ;;  %v7402_v0 = vmov 0   ;;  %v4817_v1 = vld [vmem:[%s7382_s2 + $0x4] ss:$16 sps:$4 sm:$0xff]   ;;  %s7407_s22 = sld [smem:[#allocation27_spill]]  ;;  %v171_v37 = vlaneseq }
  0x7f   :  { %356 = vmatprep.mubr.bf16.mxu1 %v7402_v0  ;;  %336 = vmatprep.mubr.bf16.mxu0 %v7402_v0  ;;  %v4819_v2 = vld [vmem:[%s7382_s2] ss:$16 sps:$4 sm:$0xff]   ;;  %v4820_v3 = vld [vmem:[%s7382_s2 + $0x24] ss:$16 sps:$4 sm:$0xff]   ;;  %v4832_v9 = vld [vmem:[%s7382_s2 + $0xc] ss:$16 sps:$4 sm:$0xff]  }
  0x80   :  { %4795 = vmatprep.subr.bf16.mxu1 %v4817_v1  ;;  %304 = vmatprep.subr.bf16.mxu0 %v4817_v1  ;;  %v4822_v4 = vld [vmem:[%s7382_s2 + $0x20] ss:$16 sps:$4 sm:$0xff]   ;;  %v4823_v5 = vld [vmem:[%s7382_s2 + $0x44] ss:$16 sps:$4 sm:$0xff]   ;;  %vm291_vm0 = vcmask 523264   ;;  %v5933_v38 = vshrl.u32 %v171_v37, 7 }
  0x81   :  { %4799 = vmatpush1.bf16.msra.mxu1 %v4819_v2  ;;  %305 = vmatpush1.bf16.msra.mxu0 %v4819_v2  ;;  %v4825_v6 = vld [vmem:[%s7382_s2 + $0x40] ss:$16 sps:$4 sm:$0xff]   ;;  %v4826_v7 = vld [vmem:[%s7382_s2 + $0x64] ss:$16 sps:$4 sm:$0xff]   ;;  %v4830_v11 = vld [vmem:[%s7382_s2 + $0x8] ss:$16 sps:$4 sm:$0xff]  }
  0x82   :  { %4796 = vmatprep.subr.bf16.mxu1 %v4820_v3  ;;  %306 = vmatprep.subr.bf16.mxu0 %v4820_v3  ;;  %v4828_v8 = vld [vmem:[%s7382_s2 + $0x60] ss:$16 sps:$4 sm:$0xff]   ;;  %v4835_v12 = vld [vmem:[%s7382_s2 + $0x2c] ss:$16 sps:$4 sm:$0xff]   ;;  %v4833_v14 = vld [vmem:[%s7382_s2 + $0x28] ss:$16 sps:$4 sm:$0xff]  }
  0x83   :  { %v4839_v15 = vld [vmem:[%s7382_s2 + $0x4c] ss:$16 sps:$4 sm:$0xff]   ;;  %v5818_v17 = vld [vmem:[%s7383_s3] ss:$8 sps:$4 sm:$0xff]   ;;  %v5834_v20 = vld [vmem:[%s7383_s3 + $0x10] ss:$8 sps:$4 sm:$0xff]  }
  0x84   :  { %v5789_v10 = vld [vmem:[%s7407_s22 + $0x10] sm:$0xff]   ;;  %v4843_v13 = vld [vmem:[%s7407_s22] sm:$0xff]   ;;  %v4836_v19 = vld [vmem:[%s7407_s22 + $0x18] sm:$0xff]   ;;  %7408 = vst [vmem:[#allocation19_spill] sm:$0xff] %v5933_v38  ;;  %v7399_v39 = vsub.s32 0, %v5933_v38  ;;  %v7398_v41 = vsub.s32 1, %v5933_v38 }
  0x85   :  { %4800 = vmatpush1.bf16.msra.mxu1 %v4822_v4  ;;  %307 = vmatpush1.bf16.msra.mxu0 %v4822_v4  ;;  %v5813_v16 = vld [vmem:[%s7383_s3 + $0x4] ss:$8 sps:$4 sm:$0xff]   ;;  %v5823_v18 = vld [vmem:[%s7383_s3 + $0x14] ss:$8 sps:$4 sm:$0xff]   ;;  %v4837_v21 = vld [vmem:[%s7382_s2 + $0x48] ss:$16 sps:$4 sm:$0xff]  }
  0x86   :  { %4797 = vmatprep.subr.bf16.mxu1 %v4823_v5  ;;  %308 = vmatprep.subr.bf16.mxu0 %v4823_v5  ;;  %v4842_v22 = vld [vmem:[%s7382_s2 + $0x6c] ss:$16 sps:$4 sm:$0xff]   ;;  %v4840_v25 = vld [vmem:[%s7382_s2 + $0x68] ss:$16 sps:$4 sm:$0xff]   ;;  %v169_v40 = vld [vmem:[#allocation6] sm:$0xf] }
  0x87   :  { %v4847_v23 = vld [vmem:[%s7407_s22 + $0x8] sm:$0xff]   ;;  %v5862_v27 = vld [vmem:[%s7383_s3 + $0x34] ss:$8 sps:$4 sm:$0xff]   ;;  %v5873_v29 = vld [vmem:[%s7383_s3 + $0x30] ss:$8 sps:$4 sm:$0xff]   ;;  %v174_v42 = vrot.slane %v169_v40, %v7399_v39  ;;  %v178_v43 = vrot.slane %v169_v40, %v7398_v41  ;;  %v7401_v61 = vsub.s32 2, %v5933_v38 }
  0x88   :  { %v5849_v24 = vld [vmem:[%s7383_s3 + $0x24] ss:$8 sps:$4 sm:$0xff]   ;;  %v5857_v26 = vld [vmem:[%s7383_s3 + $0x20] ss:$8 sps:$4 sm:$0xff]   ;;  %v5879_v31 = vld [vmem:[#allocation4 + $0x14] ss:$8 sps:$4 sm:$0xff]  }
  0x89   :  { %4801 = vmatpush1.bf16.msra.mxu1 %v4825_v6  ;;  %309 = vmatpush1.bf16.msra.mxu0 %v4825_v6  ;;  %v5865_v28 = vld [vmem:[#allocation4 + $0x4] ss:$8 sps:$4 sm:$0xff]   ;;  %v5875_v30 = vld [vmem:[#allocation4] ss:$8 sps:$4 sm:$0xff]   ;;  %v5884_v32 = vld [vmem:[#allocation4 + $0x10] ss:$8 sps:$4 sm:$0xff]  }
  0x8a   :  { %4798 = vmatprep.subr.bf16.mxu1 %v4826_v7  ;;  %310 = vmatprep.subr.bf16.mxu0 %v4826_v7  ;;  %v5887_v33 = vld [vmem:[#allocation4 + $0x24] ss:$8 sps:$4 sm:$0xff]   ;;  %v5894_v34 = vld [vmem:[#allocation4 + $0x20] ss:$8 sps:$4 sm:$0xff]   ;;  %v5897_v35 = vld [vmem:[#allocation4 + $0x34] ss:$8 sps:$4 sm:$0xff]  }
  0x8b   :  { %v5904_v36 = vld [vmem:[#allocation4 + $0x30] ss:$8 sps:$4 sm:$0xff]   ;;  %v7400_v1 = vsub.s32 3, %v5933_v38  ;;  %vm764_vm1 = vcmask 1048064   ;;  %vm5564_vm2 = vmmov 0  }
  0x8d   :  { %4802 = vmatpush1.bf16.msra.mxu1 %v4828_v8  ;;  %311 = vmatpush1.bf16.msra.mxu0 %v4828_v8 }
  0x8e   :  { %377 = vmatprep.subr.bf16.mxu1 %v4832_v9  ;;  %549 = vmatprep.subr.bf16.mxu0 %v5813_v16 }
  0x90   :  { %4498 = vmatmul.mubr.msk.bf16.vlgmr.msra.gmra.mrb[0].mxu1 %vm291_vm0, %v5789_v10  ;;  %4496 = vmatmul.mubr.msk.bf16.vlgmr.msra.gmra.mrb[0].mxu0 %vm291_vm0, %v4843_v13 }
  0x91   :  { %378 = vmatpush1.bf16.msra.mxu1 %v4830_v11  ;;  %366 = vmatprep.mubr.bf16.mxu1 %v7402_v0 }
  0x92   :  { %379 = vmatprep.subr.bf16.mxu1 %v4835_v12  ;;  %346 = vmatprep.mubr.bf16.mxu0 %v7402_v0 }
  0x93   :  { %550 = vmatpush1.bf16.msra.mxu0 %v5818_v17 }
  0x94   :  { %551 = vmatprep.subr.bf16.mxu0 %v5823_v18 }
  0x95   :  { %380 = vmatpush1.bf16.msra.mxu1 %v4833_v14 }
  0x96   :  { %381 = vmatprep.subr.bf16.mxu1 %v4839_v15 }
  0x97   :  { %552 = vmatpush1.bf16.msra.mxu0 %v5834_v20 }
  0x98   :  { %4499 = vmatmul.mubr.msk.bf16.gmra.mrb[4].mxu1 %vm291_vm0, %v4836_v19  ;;  %4497 = vmatmul.mubr.msk.bf16.gmra.mrb[4].mxu0 %vm291_vm0, %v4847_v23 }
  0x99   :  { %382 = vmatpush1.bf16.msra.mxu1 %v4837_v21  ;;  %409 = vmatprep.mubr.bf16.mxu1 %v7402_v0 }
  0x9a   :  { %383 = vmatprep.subr.bf16.mxu1 %v4842_v22  ;;  %553 = vmatprep.subr.bf16.mxu0 %v5849_v24 }
  0x9b   :  { %581 = vmatprep.mubr.bf16.mxu0 %v7402_v0  ;;  %554 = vmatpush1.bf16.msra.mxu0 %v5857_v26 }
  0x9c   :  { %555 = vmatprep.subr.bf16.mxu0 %v5862_v27 }
  0x9d   :  { %384 = vmatpush1.bf16.msra.mxu1 %v4840_v25 }
  0x9e   :  { %637 = vmatprep.subr.bf16.mxu1 %v5865_v28 }
  0x9f   :  { %556 = vmatpush1.bf16.msra.mxu0 %v5873_v29 }
  0xa0   :  { %4500 = vmatmul.mubr.msk.bf16.vlgmr.msra.gmra.mrb[8].mxu1 %vm291_vm0, %v4843_v13  ;;  %779 = vmatprep.subr.bf16.mxu0 %v5813_v16  ;;  %v186_v13 = vrot.slane %v169_v40, %v7400_v1 }
  0xa1   :  { %638 = vmatpush1.bf16.msra.mxu1 %v5875_v30  ;;  %419 = vmatprep.mubr.bf16.mxu1 %v7402_v0 }
  0xa2   :  { %639 = vmatprep.subr.bf16.mxu1 %v5879_v31  ;;  %582 = vmatmul.mubr.bf16.vlgmr.msra.gmra.mrb[8].mxu0 %v7402_v0 }
  0xa3   :  { %780 = vmatpush1.bf16.msra.mxu0 %v5818_v17  ;;  %811 = vmatprep.mubr.bf16.mxu0 %v7402_v0 }
  0xa4   :  { %781 = vmatprep.subr.bf16.mxu0 %v5823_v18 }
  0xa5   :  { %640 = vmatpush1.bf16.msra.mxu1 %v5884_v32 }
  0xa6   :  { %641 = vmatprep.subr.bf16.mxu1 %v5887_v33 }
  0xa7   :  { %782 = vmatpush1.bf16.msra.mxu0 %v5834_v20 }
  0xa8   :  { %4501 = vmatmul.mubr.msk.bf16.gmra.mrb[12].mxu1 %vm291_vm0, %v4847_v23  ;;  %783 = vmatprep.subr.bf16.mxu0 %v5849_v24 }
  0xa9   :  { %429 = vmatprep.mubr.bf16.mxu1 %v7402_v0  ;;  %642 = vmatpush1.bf16.msra.mxu1 %v5894_v34 }
  0xaa   :  { %643 = vmatprep.subr.bf16.mxu1 %v5897_v35 }
  0xab   :  { %784 = vmatpush1.bf16.msra.mxu0 %v5857_v26 }
  0xac   :  { %785 = vmatprep.subr.bf16.mxu0 %v5862_v27 }
  0xad   :  { %644 = vmatpush1.bf16.msra.mxu1 %v5904_v36 }
  0xae   :  { %831 = vmatprep.subr.bf16.mxu1 %v5865_v28 }
  0xaf   :  { %786 = vmatpush1.bf16.msra.mxu0 %v5873_v29 }
  0xb0   :  { %4502 = vmatmul.mubr.msk.bf16.gmra.mrb[16].mxu1 %vm291_vm0, %v5789_v10  ;;  %985 = vmatprep.subr.bf16.mxu0 %v5813_v16  ;;  %v182_v10 = vrot.slane %v169_v40, %v7401_v61 }
  0xb1   :  { %439 = vmatprep.mubr.bf16.mxu1 %v7402_v0 }
  0xb8   :  { %4503 = vmatmul.mubr.msk.bf16.gmra.mrb[20].mxu1 %vm291_vm0, %v4836_v19 }
  0xb9   :  { %669 = vmatprep.mubr.bf16.mxu1 %v7402_v0 }
  0xc0   :  { %670 = vmatmul.mubr.bf16.vlgmr.msra.gmra.mrb[24].mxu1 %v7402_v0 }
  0xc1   :  { %832 = vmatpush1.bf16.msra.mxu1 %v5875_v30  ;;  %863 = vmatprep.mubr.bf16.mxu1 %v7402_v0 }
  0xc2   :  { %833 = vmatprep.subr.bf16.mxu1 %v5879_v31 }
  0xc5   :  { %834 = vmatpush1.bf16.msra.mxu1 %v5884_v32 }
  0xc6   :  { %835 = vmatprep.subr.bf16.mxu1 %v5887_v33 }
  0xc9   :  { %836 = vmatpush1.bf16.msra.mxu1 %v5894_v34 }
  0xca   :  { %837 = vmatprep.subr.bf16.mxu1 %v5897_v35 }
  0xcd   :  { %838 = vmatpush1.bf16.msra.mxu1 %v5904_v36 }
  0xce   :  { %1037 = vmatprep.subr.bf16.mxu1 %v5865_v28 }
 0x163   :  { %v358_v44 = vpop.f32.mrb[0].mxu1  ;;  %v338_v45 = vpop.f32.mrb[0].mxu0 }
 0x164   :  { %v5941_v46 = vadd.f32 %v358_v44, %v174_v42  ;;  %v360_v47 = vpop.f32.mrb[1].mxu1  ;;  %v340_v48 = vpop.f32.mrb[1].mxu0  ;;  %v339_v19 = vadd.f32 %v338_v45, %v174_v42 }
 0x165   :  { %v5943_v49 = vadd.f32 %v360_v47, %v178_v43  ;;  %v362_v50 = vpop.f32.mrb[2].mxu1  ;;  %v342_v51 = vpop.f32.mrb[2].mxu0  ;;  %v341_v23 = vadd.f32 %v340_v48, %v178_v43 }
 0x166   :  { %v5945_v52 = vadd.f32 %v362_v50, %v174_v42  ;;  %v364_v53 = vpop.f32.mrb[3].mxu1  ;;  %v5947_v54 = vadd.f32 %v342_v51, %v174_v42  ;;  %v344_v55 = vpop.f32.mrb[3].mxu0 }
 0x167   :  { %v5949_v56 = vadd.f32 %v364_v53, %v178_v43  ;;  %v5951_v57 = vadd.f32 %v344_v55, %v178_v43 }
 0x16b   :  { %v368_v58 = vpop.f32.mrb[4].mxu1  ;;  %v348_v2 = vpop.f32.mrb[4].mxu0 }
 0x16c   :  { %v5953_v59 = vadd.f32 %v368_v58, %v174_v42  ;;  %v370_v60 = vpop.f32.mrb[5].mxu1  ;;  %v5961_v5 = vadd.f32 %v348_v2, %v174_v42  ;;  %v350_v6 = vpop.f32.mrb[5].mxu0 }
 0x16d   :  { %v5956_v62 = vadd.f32 %v370_v60, %v178_v43  ;;  %v372_v63 = vpop.f32.mrb[6].mxu1  ;;  %v5965_v8 = vadd.f32 %v350_v6, %v178_v43  ;;  %v352_v9 = vpop.f32.mrb[6].mxu0 }
 0x16e   :  { %v5959_v3 = vadd.f32 %v372_v63, %v174_v42  ;;  %v374_v4 = vpop.f32.mrb[7].mxu1  ;;  %v5969_v11 = vadd.f32 %v352_v9, %v174_v42  ;;  %v354_v12 = vpop.f32.mrb[7].mxu0 }
 0x16f   :  { %v5963_v7 = vadd.f32 %v374_v4, %v178_v43  ;;  %v5973_v14 = vadd.f32 %v354_v12, %v178_v43 }
 0x171   :  { %7409 = vst [vmem:[#allocation20_spill] sm:$0xff] %v5963_v7 }
 0x173   :  { %v411_v15 = vpop.f32.mrb[8].mxu1 }
 0x174   :  { %v5975_v21 = vadd.f32 %v411_v15, %v182_v10  ;;  %v413_v22 = vpop.f32.mrb[9].mxu1 }
 0x175   :  { %v5977_v25 = vadd.f32 %v413_v22, %v186_v13  ;;  %v415_v37 = vpop.f32.mrb[10].mxu1  ;;  %v583_v50 = vpop.f32.mrb[8].mxu0 }
 0x176   :  { %v5979_v44 = vadd.f32 %v415_v37, %v182_v10  ;;  %v417_v47 = vpop.f32.mrb[11].mxu1  ;;  %v590_v53 = vadd.f32 %v583_v50, %v339_v19  ;;  %v585_v55 = vpop.f32.mrb[9].mxu0 }
 0x177   :  { %v5981_v51 = vadd.f32 %v417_v47, %v186_v13  ;;  %v5983_v40 = vadd.f32 %v585_v55, %v341_v23  ;;  %v587_v58 = vpop.f32.mrb[10].mxu0 }
 0x178   :  { %v588_v60 = vpop.f32.mrb[11].mxu0 }
 0x179   :  { %4964 = vtanh.f32 %v5983_v40 }
 0x17b   :  { %v421_v42 = vpop.f32.mrb[12].mxu1 }
 0x17c   :  { %v5986_v45 = vadd.f32 %v421_v42, %v182_v10  ;;  %v423_v43 = vpop.f32.mrb[13].mxu1 }
 0x17d   :  { %v5988_v48 = vadd.f32 %v423_v43, %v186_v13  ;;  %v425_v63 = vpop.f32.mrb[14].mxu1 }
 0x17e   :  { %v5990_v2 = vadd.f32 %v425_v63, %v182_v10  ;;  %v427_v4 = vpop.f32.mrb[15].mxu1 }
 0x17f   :  { %v5992_v6 = vadd.f32 %v427_v4, %v186_v13 }
 0x183   :  { %v431_v9 = vpop.f32.mrb[16].mxu1  ;;  %v4965_v12 = vpop.eup %4964 }
 0x184   :  { %v5994_v15 = vadd.f32 %v431_v9, %v182_v10  ;;  %v433_v19 = vpop.f32.mrb[17].mxu1  ;;  %695 = vrot.lane.b32.xlu1 %v4965_v12, %s5555_s24 }
 0x185   :  { %v5996_v22 = vadd.f32 %v433_v19, %v186_v13  ;;  %v435_v23 = vpop.f32.mrb[18].mxu1 }
 0x186   :  { %v5999_v37 = vadd.f32 %v435_v23, %v182_v10  ;;  %v437_v47 = vpop.f32.mrb[19].mxu1 }
 0x187   :  { %v6001_v50 = vadd.f32 %v437_v47, %v186_v13  ;;  %v4521_v47 = vmul.f32 -1.442695, %v590_v53 }
 0x18b   :  { %v441_v55 = vpop.f32.mrb[20].mxu1 }
 0x18c   :  { %v6003_v58 = vadd.f32 %v441_v55, %v182_v10  ;;  %v443_v60 = vpop.f32.mrb[21].mxu1 }
 0x18d   :  { %v6005_v42 = vadd.f32 %v443_v60, %v186_v13  ;;  %v445_v43 = vpop.f32.mrb[22].mxu1 }
 0x18e   :  { %v447_v63 = vpop.f32.mrb[23].mxu1  ;;  %v446_v4 = vadd.f32 %v445_v43, %v182_v10 }
 0x18f   :  { %v448_v9 = vadd.f32 %v447_v63, %v186_v13 }
 0x193   :  { %v671_v19 = vpop.f32.mrb[24].mxu1 }
 0x194   :  { %v678_v41 = vadd.f32 %v671_v19, %v446_v4  ;;  %v673_v39 = vpop.f32.mrb[25].mxu1 }
 0x195   :  { %v679_v1 = vadd.f32 %v673_v39, %v448_v9  ;;  %v675_v12 = vpop.f32.mrb[26].mxu1 }
 0x196   :  { %v676_v23 = vpop.f32.mrb[27].mxu1  ;;  %v4523_v55 = vmul.f32 -1.442695, %v678_v41 }
 0x197   :  { %4966 = vtanh.f32 %v679_v1  ;;  %v4524_v12 = vmul.f32 -1.442695, %v679_v1  ;;  %v4522_v23 = vmul.f32 -1.442695, %v5983_v40 }
 0x198   :  { %4968 = vpow2.f32 %v4521_v47 }
 0x199   :  { %4970 = vpow2.f32 %v4523_v55 }
 0x1a1   :  { %v4967_v61 = vpop.eup %4966 }
 0x1a2   :  { %733 = vrot.lane.b32.xlu0 %v4967_v61, %s5555_s24  ;;  %v4969_v60 = vpop.eup %4968 }
 0x1a3   :  { %v4971_v0 = vpop.eup %4970  ;;  %v686_v38 = vadd.f32 1.0, %v4969_v60 }
 0x1a4   :  { %v724_v7 = vadd.f32 1.0, %v4971_v0 }
 0x1a5   :  { %4972 = vrcp.f32 %v686_v38 }
 0x1a6   :  { %4974 = vrcp.f32 %v724_v7 }
 0x1af   :  { %v4973_v10 = vpop.eup %4972 }
 0x1b0   :  { %v4975_v13 = vpop.eup %4974  ;;  %v693_v9 = vmul.f32 0.0, %v4973_v10 }
 0x1b1   :  { %v731_v61 = vmul.f32 0.0, %v4975_v13 }
 0x1f6   :  { %v696_v39 = vpop.permute.xlu1 %695 }
 0x1f7   :  { %v698_v4 = vmul.f32 %v4973_v10, %v696_v39  ;;  %v4504_v10 = vld [vmem:[%s7381_s1 + $0x38] sm:$0xff] }
 0x214   :  { %v734_v43 = vpop.permute.xlu0 %733 }
 0x215   :  { %v736_v63 = vmul.f32 %v4975_v13, %v734_v43 }
 0x217   :  { %738 = vrot.lane.b32.xlu0 %v736_v63, %s5555_s24 }
 0x21b   :  { %700 = vrot.lane.b32.xlu0 %v698_v4, %s5555_s24 }
 0x289   :  { %v739_v41 = vpop.permute.xlu0 %738 }
 0x28a   :  { %v741_v53 = vadd.f32 %v739_v41, %v731_v61  ;;  %v498_v41 = vld [vmem:[%s7381_s1] sm:$0xff] }
 0x28c   :  { %4976 = vtanh.f32 %v741_v53  ;;  %749 = vrot.lane.b32.xlu0 %v741_v53, %s5555_s24 }
 0x28d   :  { %v701_v0 = vpop.permute.xlu0 %700 }
 0x28e   :  { %v703_v38 = vadd.f32 %v701_v0, %v693_v9 }
 0x290   :  { %4978 = vtanh.f32 %v703_v38 }
 0x291   :  { %4980 = vpow2.f32 %v4524_v12 }
 0x292   :  { %4982 = vpow2.f32 %v4522_v23 }
 0x296   :  { %v4977_v7 = vpop.eup %4976 }
 0x297   :  { %744 = vrot.lane.b32.xlu1 %v4977_v7, %s5555_s24 }
 0x29a   :  { %v4979_v19 = vpop.eup %4978 }
 0x29b   :  { %706 = vrot.lane.b32.xlu1 %v4979_v19, %s5555_s24  ;;  %v4981_v47 = vpop.eup %4980 }
 0x29c   :  { %v725_v55 = vadd.f32 1.0, %v4981_v47  ;;  %v4983_v60 = vpop.eup %4982 }
 0x29d   :  { %v687_v43 = vadd.f32 1.0, %v4983_v60 }
 0x29e   :  { %4984 = vrcp.f32 %v725_v55 }
 0x29f   :  { %4986 = vrcp.f32 %v687_v43 }
 0x2a8   :  { %v4985_v1 = vpop.eup %4984 }
 0x2a9   :  { %v4987_v61 = vpop.eup %4986 }
 0x2fe   :  { %v750_v13 = vpop.permute.xlu0 %749 }
 0x2ff   :  { %v6017_v39 = vmul.f32 %v4504_v10, %v750_v13 }
 0x301   :  { %932 = vrot.lane.b32.xlu0 %v6017_v39, %s5555_s24 }
 0x305   :  { %711 = vrot.lane.b32.xlu0 %v703_v38, %s5555_s24  ;;  %v7410_v38 = vmov 0  }
 0x309   :  { %v745_v40 = vpop.permute.xlu1 %744 }
 0x30a   :  { %v747_v63 = vmul.f32 %v4985_v1, %v745_v40 }
 0x30c   :  { %v6022_v4 = vmul.f32 %v4504_v10, %v747_v63 }
 0x30d   :  { %v707_v53 = vpop.permute.xlu1 %706 }
 0x30e   :  { %v827_v9 = vpack.c.bf16 %v6022_v4, %v6022_v4  ;;  %v709_v0 = vmul.f32 %v4987_v61, %v707_v53 }
 0x310   :  { %v6029_v7 = vmul.f32 %v709_v0, %v498_v41  ;;  %4528 = vmatmul.mubr.msk.bf16.vlgmr.msra.gmra.mrb[28].mxu1 %vm291_vm0, %v827_v9 }
 0x311   :  { %1038 = vmatpush1.bf16.msra.mxu1 %v5875_v30  ;;  %1069 = vmatprep.mubr.bf16.mxu1 %v7410_v38 }
 0x312   :  { %v756_v19 = vmul.f32 %v6029_v7, %v498_v41  ;;  %v775_v12 = vpack.c.bf16 %v6029_v7, %v6029_v7  ;;  %1039 = vmatprep.subr.bf16.mxu1 %v5879_v31 }
 0x314   :  { %757 = vst.msk [vmem:[#allocation3] sm:$0xff] %vm291_vm0, %v756_v19  ;;  %4527 = vmatmul.mubr.msk.bf16.vlgmr.msra.gmra.mrb[12].mxu0 %vm291_vm0, %v775_v12 }
 0x315   :  { %1040 = vmatpush1.bf16.msra.mxu1 %v5884_v32  ;;  %986 = vmatpush1.bf16.msra.mxu0 %v5818_v17 }
 0x316   :  { %1041 = vmatprep.subr.bf16.mxu1 %v5887_v33  ;;  %987 = vmatprep.subr.bf16.mxu0 %v5823_v18 }
 0x317   :  { %1017 = vmatprep.mubr.bf16.mxu0 %v7410_v38 }
 0x319   :  { %1042 = vmatpush1.bf16.msra.mxu1 %v5894_v34  ;;  %988 = vmatpush1.bf16.msra.mxu0 %v5834_v20 }
 0x31a   :  { %1043 = vmatprep.subr.bf16.mxu1 %v5897_v35  ;;  %989 = vmatprep.subr.bf16.mxu0 %v5849_v24 }
 0x31d   :  { %1044 = vmatpush1.bf16.msra.mxu1 %v5904_v36  ;;  %990 = vmatpush1.bf16.msra.mxu0 %v5857_v26 }
 0x31e   :  { %991 = vmatprep.subr.bf16.mxu0 %v5862_v27  ;;  %1243 = vmatprep.subr.bf16.mxu1 %v5865_v28 }
 0x321   :  { %992 = vmatpush1.bf16.msra.mxu0 %v5873_v29 }
 0x322   :  { %1191 = vmatprep.subr.bf16.mxu0 %v5813_v16 }
 0x373   :  { %v933_v12 = vpop.permute.xlu0 %932 }
 0x3e3   :  { %v865_v23 = vpop.f32.mrb[28].mxu1 }
 0x3e4   :  { %v872_v47 = vadd.f32 %v865_v23, %v6003_v58  ;;  %v867_v55 = vpop.f32.mrb[29].mxu1 }
 0x3e5   :  { %v873_v60 = vadd.f32 %v867_v55, %v6005_v42  ;;  %v869_v10 = vpop.f32.mrb[30].mxu1  ;;  %v712_v55 = vpop.permute.xlu0 %711 }
 0x3e6   :  { %v870_v13 = vpop.f32.mrb[31].mxu1  ;;  %v4531_v0 = vmul.f32 -1.442695, %v872_v47  ;;  %v6065_v10 = vmul.f32 %v712_v55, %v498_v41 }
 0x3e7   :  { %4988 = vtanh.f32 %v873_v60  ;;  %v813_v43 = vpop.f32.mrb[12].mxu0 }
 0x3e8   :  { %v820_v1 = vadd.f32 %v813_v43, %v5947_v54  ;;  %v815_v40 = vpop.f32.mrb[13].mxu0  ;;  %4990 = vpow2.f32 %v4531_v0 }
 0x3e9   :  { %v6059_v63 = vadd.f32 %v815_v40, %v5951_v57  ;;  %v817_v61 = vpop.f32.mrb[14].mxu0 }
 0x3ea   :  { %v818_v53 = vpop.f32.mrb[15].mxu0  ;;  %v4529_v47 = vmul.f32 -1.442695, %v820_v1  ;;  %v4532_v1 = vmul.f32 -1.442695, %v873_v60 }
 0x3f1   :  { %v4989_v9 = vpop.eup %4988 }
 0x3f2   :  { %937 = vrot.lane.b32.xlu1 %v4989_v9, %s5555_s24  ;;  %v4991_v58 = vpop.eup %4990 }
 0x3f3   :  { %v924_v19 = vadd.f32 1.0, %v4991_v58 }
 0x3f5   :  { %4992 = vrcp.f32 %v924_v19 }
 0x3f6   :  { %4994 = vtanh.f32 %v6059_v63 }
 0x3f7   :  { %4996 = vpow2.f32 %v4529_v47 }
 0x3ff   :  { %v4993_v42 = vpop.eup %4992 }
 0x400   :  { %v4995_v57 = vpop.eup %4994  ;;  %v935_v43 = vmul.f32 %v4993_v42, %v933_v12 }
 0x401   :  { %v4997_v13 = vpop.eup %4996 }
 0x402   :  { %v880_v61 = vadd.f32 1.0, %v4997_v13  ;;  %v4526_v13 = vld [vmem:[%s7381_s1 + $0x30] sm:$0xff] }
 0x464   :  { %v938_v23 = vpop.permute.xlu1 %937 }
 0x465   :  { %v940_v54 = vmul.f32 %v4993_v42, %v938_v23 }
 0x467   :  { %942 = vrot.lane.b32.xlu1 %v940_v54, %s5555_s24 }
 0x46b   :  { %893 = vrot.lane.b32.xlu1 %v4995_v57, %s5555_s24 }
 0x46f   :  { %888 = vrot.lane.b32.xlu1 %v6065_v10, %s5555_s24 }
 0x4d9   :  { %v943_v40 = vpop.permute.xlu1 %942 }
 0x4da   :  { %v945_v53 = vadd.f32 %v943_v40, %v935_v43 }
 0x4dc   :  { %4998 = vtanh.f32 %v945_v53  ;;  %v952_v41 = vsub.f32 %v945_v53, %v933_v12 }
 0x4dd   :  { %5000 = vrcp.f32 %v880_v61  ;;  %v894_v0 = vpop.permute.xlu1 %893 }
 0x4de   :  { %5002 = vpow2.f32 %v4532_v1 }
 0x4e1   :  { %v889_v57 = vpop.permute.xlu1 %888 }
 0x4e6   :  { %v4999_v9 = vpop.eup %4998 }
 0x4e7   :  { %948 = vrot.lane.b32.xlu0 %v4999_v9, %s5555_s24  ;;  %v5001_v58 = vpop.eup %5000 }
 0x4e8   :  { %v896_v19 = vmul.f32 %v5001_v58, %v894_v0  ;;  %v5003_v23 = vpop.eup %5002  ;;  %v891_v43 = vmul.f32 %v5001_v58, %v889_v57 }
 0x4e9   :  { %v925_v42 = vadd.f32 1.0, %v5003_v23 }
 0x4eb   :  { %898 = vrot.lane.b32.xlu0 %v896_v19, %s5555_s24  ;;  %5004 = vrcp.f32 %v925_v42 }
 0x4ef   :  { %954 = vrot.lane.b32.xlu0 %v952_v41, %s5555_s24 }
 0x4f5   :  { %v5005_v54 = vpop.eup %5004 }
 0x559   :  { %v949_v55 = vpop.permute.xlu0 %948 }
 0x55a   :  { %v951_v47 = vmul.f32 %v5005_v54, %v949_v55 }
 0x55c   :  { %v959_v40 = vsub.f32 %v951_v47, %v6022_v4 }
 0x55d   :  { %v899_v61 = vpop.permute.xlu0 %898 }
 0x55e   :  { %v901_v12 = vadd.f32 %v899_v61, %v891_v43  ;;  %v960_v53 = vmul.f32 %v4526_v13, %v959_v40 }
 0x560   :  { %5006 = vtanh.f32 %v901_v12  ;;  %v6077_v60 = vadd.f32 %v960_v53, %v6022_v4  ;;  %v908_v58 = vsub.f32 %v901_v12, %v889_v57 }
 0x561   :  { %v955_v9 = vpop.permute.xlu0 %954 }
 0x562   :  { %v957_v0 = vmul.f32 %v4526_v13, %v955_v9  ;;  %v1033_v19 = vpack.c.bf16 %v6077_v60, %v6077_v60  ;;  %v6103_v13 = vld [vmem:[%s7381_s1 + $0x8] sm:$0xff] }
 0x564   :  { %4536 = vmatmul.mubr.msk.bf16.vlgmr.msra.gmra.mrb[32].mxu1 %vm291_vm0, %v1033_v19  ;;  %v6083_v41 = vadd.f32 %v957_v0, %v6017_v39  ;;  %v4530_v39 = vmul.f32 -1.442695, %v6059_v63 }
 0x565   :  { %1244 = vmatpush1.bf16.msra.mxu1 %v5875_v30  ;;  %1275 = vmatprep.mubr.bf16.mxu1 %v7410_v38 }
 0x566   :  { %1138 = vrot.lane.b32.xlu0 %v6083_v41, %s5555_s24  ;;  %1245 = vmatprep.subr.bf16.mxu1 %v5879_v31  ;;  %5008 = vpow2.f32 %v4530_v39 }
 0x569   :  { %1246 = vmatpush1.bf16.msra.mxu1 %v5884_v32 }
 0x56a   :  { %v5007_v1 = vpop.eup %5006  ;;  %910 = vrot.lane.b32.xlu0 %v908_v58, %s5555_s24  ;;  %1247 = vmatprep.subr.bf16.mxu1 %v5887_v33 }
 0x56b   :  { %904 = vrot.lane.b32.xlu1 %v5007_v1, %s5555_s24 }
 0x56d   :  { %1248 = vmatpush1.bf16.msra.mxu1 %v5894_v34 }
 0x56e   :  { %1249 = vmatprep.subr.bf16.mxu1 %v5897_v35 }
 0x570   :  { %v5009_v23 = vpop.eup %5008 }
 0x571   :  { %1250 = vmatpush1.bf16.msra.mxu1 %v5904_v36  ;;  %v881_v42 = vadd.f32 1.0, %v5009_v23 }
 0x572   :  { %1441 = vmatprep.subr.bf16.mxu1 %v5865_v28 }
 0x573   :  { %5010 = vrcp.f32 %v881_v42 }
 0x57d   :  { %v5011_v54 = vpop.eup %5010 }
 0x5d8   :  { %v1139_v39 = vpop.permute.xlu0 %1138 }
 0x5dc   :  { %v911_v23 = vpop.permute.xlu0 %910 }
 0x5dd   :  { %v905_v57 = vpop.permute.xlu1 %904  ;;  %v913_v42 = vmul.f32 %v6103_v13, %v911_v23 }
 0x5de   :  { %v907_v55 = vmul.f32 %v5011_v54, %v905_v57 }
 0x5df   :  { %v6136_v57 = vadd.f32 %v913_v42, %v6065_v10 }
 0x5e0   :  { %v915_v47 = vsub.f32 %v907_v55, %v6029_v7 }
 0x5e2   :  { %v916_v43 = vmul.f32 %v6103_v13, %v915_v47 }
 0x5e4   :  { %v6107_v28 = vadd.f32 %v916_v43, %v6029_v7 }
 0x5e6   :  { %v981_v63 = vpack.c.bf16 %v6107_v28, %v6107_v28  ;;  %v962_v40 = vmul.f32 %v6103_v13, %v6107_v28 }
 0x5e8   :  { %4535 = vmatmul.mubr.msk.bf16.vlgmr.msra.gmra.mrb[16].mxu0 %vm291_vm0, %v981_v63  ;;  %964 = vst.msk [vmem:[#allocation3 + $0x8] sm:$0xff] %vm291_vm0, %v962_v40 }
 0x5e9   :  { %1192 = vmatpush1.bf16.msra.mxu0 %v5818_v17  ;;  %1223 = vmatprep.mubr.bf16.mxu0 %v7410_v38 }
 0x5ea   :  { %1193 = vmatprep.subr.bf16.mxu0 %v5823_v18 }
 0x5ed   :  { %1194 = vmatpush1.bf16.msra.mxu0 %v5834_v20 }
 0x5ee   :  { %1195 = vmatprep.subr.bf16.mxu0 %v5849_v24 }
 0x5f1   :  { %1196 = vmatpush1.bf16.msra.mxu0 %v5857_v26 }
 0x5f2   :  { %1197 = vmatprep.subr.bf16.mxu0 %v5862_v27 }
 0x5f5   :  { %1198 = vmatpush1.bf16.msra.mxu0 %v5873_v29 }
 0x5f6   :  { %1392 = vmatprep.subr.bf16.mxu0 %v5813_v16 }
 0x637   :  { %v1071_v7 = vpop.f32.mrb[32].mxu1 }
 0x638   :  { %v1078_v61 = vadd.f32 %v1071_v7, %v5999_v37  ;;  %v1073_v17 = vpop.f32.mrb[33].mxu1 }
 0x639   :  { %v1079_v12 = vadd.f32 %v1073_v17, %v6001_v50  ;;  %v1075_v53 = vpop.f32.mrb[34].mxu1 }
 0x63a   :  { %v1076_v18 = vpop.f32.mrb[35].mxu1  ;;  %v4539_v24 = vmul.f32 -1.442695, %v1078_v61 }
 0x63b   :  { %5012 = vtanh.f32 %v1079_v12  ;;  %v4540_v53 = vmul.f32 -1.442695, %v1079_v12 }
 0x63c   :  { %5014 = vpow2.f32 %v4539_v24 }
 0x645   :  { %v5013_v20 = vpop.eup %5012 }
 0x646   :  { %1143 = vrot.lane.b32.xlu1 %v5013_v20, %s5555_s24  ;;  %v5015_v26 = vpop.eup %5014 }
 0x647   :  { %v1130_v27 = vadd.f32 1.0, %v5015_v26 }
 0x649   :  { %5016 = vrcp.f32 %v1130_v27 }
 0x653   :  { %v5017_v29 = vpop.eup %5016 }
 0x654   :  { %v1141_v55 = vmul.f32 %v5017_v29, %v1139_v39 }
 0x6b8   :  { %v1144_v9 = vpop.permute.xlu1 %1143 }
 0x6b9   :  { %v1146_v16 = vmul.f32 %v5017_v29, %v1144_v9  ;;  %v6146_v9 = vld [vmem:[%s7381_s1 + $0x28] sm:$0xff] }
 0x6bb   :  { %v1019_v0 = vpop.f32.mrb[16].mxu0  ;;  %1148 = vrot.lane.b32.xlu1 %v1146_v16, %s5555_s24 }
 0x6bc   :  { %v1026_v37 = vadd.f32 %v1019_v0, %v5961_v5  ;;  %v1021_v50 = vpop.f32.mrb[17].mxu0 }
 0x6bd   :  { %v6130_v19 = vadd.f32 %v1021_v50, %v5965_v8  ;;  %v1023_v58 = vpop.f32.mrb[18].mxu0 }
 0x6be   :  { %v1024_v1 = vpop.f32.mrb[19].mxu0  ;;  %v4537_v5 = vmul.f32 -1.442695, %v1026_v37 }
 0x6bf   :  { %5018 = vtanh.f32 %v6130_v19 }
 0x6c0   :  { %5020 = vpow2.f32 %v4537_v5 }
 0x6c9   :  { %v5019_v54 = vpop.eup %5018 }
 0x6ca   :  { %1099 = vrot.lane.b32.xlu1 %v5019_v54, %s5555_s24  ;;  %v5021_v8 = vpop.eup %5020 }
 0x6cb   :  { %v1086_v43 = vadd.f32 1.0, %v5021_v8 }
 0x6ce   :  { %1094 = vrot.lane.b32.xlu1 %v6136_v57, %s5555_s24 }
 0x72d   :  { %v1149_v47 = vpop.permute.xlu1 %1148 }
 0x72e   :  { %v1151_v63 = vadd.f32 %v1149_v47, %v1141_v55 }
 0x730   :  { %5022 = vtanh.f32 %v1151_v63  ;;  %v1158_v10 = vsub.f32 %v1151_v63, %v1139_v39  ;;  %v6195_v63 = vld [vmem:[%s7383_s3] ss:$8 sps:$4 sm:$0xff]  }
 0x731   :  { %5024 = vrcp.f32 %v1086_v43 }
 0x732   :  { %5026 = vpow2.f32 %v4540_v53  ;;  %v6238_v53 = vld [vmem:[%s7383_s3 + $0x4] ss:$8 sps:$4 sm:$0xff]  }
 0x73a   :  { %v5023_v40 = vpop.eup %5022 }
 0x73b   :  { %1154 = vrot.lane.b32.xlu0 %v5023_v40, %s5555_s24  ;;  %v5025_v7 = vpop.eup %5024  ;;  %v6208_v40 = vld [vmem:[%s7383_s3 + $0x10] ss:$8 sps:$4 sm:$0xff]  }
 0x73c   :  { %v1100_v61 = vpop.permute.xlu1 %1099  ;;  %v5027_v18 = vpop.eup %5026 }
 0x73d   :  { %v1102_v17 = vmul.f32 %v5025_v7, %v1100_v61  ;;  %v1131_v20 = vadd.f32 1.0, %v5027_v18  ;;  %v6220_v61 = vld [vmem:[%s7383_s3 + $0x20] ss:$8 sps:$4 sm:$0xff]  }
 0x73f   :  { %1104 = vrot.lane.b32.xlu0 %v1102_v17, %s5555_s24  ;;  %5028 = vrcp.f32 %v1131_v20  ;;  %v6226_v17 = vld [vmem:[%s7383_s3 + $0x34] ss:$8 sps:$4 sm:$0xff]  }
 0x740   :  { %v1095_v26 = vpop.permute.xlu1 %1094 }
 0x741   :  { %v1097_v16 = vmul.f32 %v5025_v7, %v1095_v26  ;;  %v6214_v7 = vld [vmem:[%s7383_s3 + $0x24] ss:$8 sps:$4 sm:$0xff]  }
 0x743   :  { %1160 = vrot.lane.b32.xlu0 %v1158_v10, %s5555_s24  ;;  %v6232_v10 = vld [vmem:[%s7383_s3 + $0x30] ss:$8 sps:$4 sm:$0xff]  }
 0x749   :  { %v5029_v24 = vpop.eup %5028 }
 0x7ad   :  { %v1155_v27 = vpop.permute.xlu0 %1154 }
 0x7ae   :  { %v1157_v29 = vmul.f32 %v5029_v24, %v1155_v27 }
 0x7b0   :  { %v1165_v0 = vsub.f32 %v1157_v29, %v6077_v60 }
 0x7b1   :  { %v1105_v37 = vpop.permute.xlu0 %1104 }
 0x7b2   :  { %v1107_v50 = vadd.f32 %v1105_v37, %v1097_v16  ;;  %v1166_v12 = vmul.f32 %v6146_v9, %v1165_v0 }
 0x7b4   :  { %5030 = vtanh.f32 %v1107_v50  ;;  %v6151_v58 = vadd.f32 %v1166_v12, %v6077_v60  ;;  %v1114_v54 = vsub.f32 %v1107_v50, %v1095_v26 }
 0x7b5   :  { %v1161_v1 = vpop.permute.xlu0 %1160 }
 0x7b6   :  { %v1163_v39 = vmul.f32 %v6146_v9, %v1161_v1  ;;  %v1239_v23 = vpack.c.bf16 %v6151_v58, %v6151_v58 }
 0x7b8   :  { %4544 = vmatmul.mubr.msk.bf16.vlgmr.msra.gmra.mrb[36].mxu1 %vm291_vm0, %v1239_v23  ;;  %v6158_v42 = vadd.f32 %v1163_v39, %v6083_v41 }
 0x7b9   :  { %1442 = vmatpush1.bf16.msra.mxu1 %v5875_v30  ;;  %1473 = vmatprep.mubr.bf16.mxu1 %v7410_v38  ;;  %v6172_v30 = vld [vmem:[#allocation4 + $0x4] ss:$8 sps:$4 sm:$0xff]  }
 0x7ba   :  { %1344 = vrot.lane.b32.xlu0 %v6158_v42, %s5555_s24  ;;  %1443 = vmatprep.subr.bf16.mxu1 %v5879_v31  ;;  %v4538_v31 = vmul.f32 -1.442695, %v6130_v19 }
 0x7bc   :  { %5032 = vpow2.f32 %v4538_v31 }
 0x7bd   :  { %1444 = vmatpush1.bf16.msra.mxu1 %v5884_v32 }
 0x7be   :  { %v5031_v5 = vpop.eup %5030  ;;  %1116 = vrot.lane.b32.xlu0 %v1114_v54, %s5555_s24  ;;  %1445 = vmatprep.subr.bf16.mxu1 %v5887_v33 }
 0x7bf   :  { %1110 = vrot.lane.b32.xlu1 %v5031_v5, %s5555_s24 }
 0x7c1   :  { %1446 = vmatpush1.bf16.msra.mxu1 %v5894_v34  ;;  %v6180_v34 = vld [vmem:[%s7381_s1 + $0x10] sm:$0xff] }
 0x7c2   :  { %1447 = vmatprep.subr.bf16.mxu1 %v5897_v35 }
 0x7c5   :  { %1448 = vmatpush1.bf16.msra.mxu1 %v5904_v36 }
 0x7c6   :  { %1637 = vmatprep.subr.bf16.mxu1 %v6172_v30  ;;  %v5033_v32 = vpop.eup %5032 }
 0x7c7   :  { %v1087_v41 = vadd.f32 1.0, %v5033_v32 }
 0x7c9   :  { %5034 = vrcp.f32 %v1087_v41 }
 0x7d3   :  { %v5035_v8 = vpop.eup %5034 }
 0x82c   :  { %v1345_v32 = vpop.permute.xlu0 %1344 }
 0x830   :  { %v1117_v41 = vpop.permute.xlu0 %1116 }
 0x831   :  { %v1111_v33 = vpop.permute.xlu1 %1110 }
 0x832   :  { %v1113_v55 = vmul.f32 %v5035_v8, %v1111_v33  ;;  %v1119_v8 = vmul.f32 %v6180_v34, %v1117_v41 }
 0x834   :  { %v1121_v47 = vsub.f32 %v1113_v55, %v6107_v28  ;;  %v6253_v55 = vadd.f32 %v1119_v8, %v6136_v57 }
 0x836   :  { %v1122_v35 = vmul.f32 %v6180_v34, %v1121_v47 }
 0x838   :  { %v6184_v36 = vadd.f32 %v1122_v35, %v6107_v28  ;;  %v6202_v28 = vld [vmem:[%s7383_s3 + $0x14] ss:$8 sps:$4 sm:$0xff]  }
 0x83a   :  { %v1187_v19 = vpack.c.bf16 %v6184_v36, %v6184_v36  ;;  %v1168_v43 = vmul.f32 %v6180_v34, %v6184_v36 }
 0x83c   :  { %4543 = vmatmul.mubr.msk.bf16.vlgmr.msra.gmra.mrb[20].mxu0 %vm291_vm0, %v1187_v19  ;;  %1170 = vst.msk [vmem:[#allocation3 + $0x10] sm:$0xff] %vm291_vm0, %v1168_v43 }
 0x83d   :  { %1393 = vmatpush1.bf16.msra.mxu0 %v6195_v63  ;;  %1424 = vmatprep.mubr.bf16.mxu0 %v7410_v38 }
 0x83e   :  { %1394 = vmatprep.subr.bf16.mxu0 %v6202_v28 }
 0x841   :  { %1395 = vmatpush1.bf16.msra.mxu0 %v6208_v40 }
 0x842   :  { %1396 = vmatprep.subr.bf16.mxu0 %v6214_v7 }
 0x845   :  { %1397 = vmatpush1.bf16.msra.mxu0 %v6220_v61 }
 0x846   :  { %1398 = vmatprep.subr.bf16.mxu0 %v6226_v17 }
 0x849   :  { %1399 = vmatpush1.bf16.msra.mxu0 %v6232_v10 }
 0x84a   :  { %1588 = vmatprep.subr.bf16.mxu0 %v6238_v53 }
 0x88b   :  { %v1277_v18 = vpop.f32.mrb[36].mxu1 }
 0x88c   :  { %v1284_v20 = vadd.f32 %v1277_v18, %v5994_v15  ;;  %v1279_v24 = vpop.f32.mrb[37].mxu1 }
 0x88d   :  { %v1285_v26 = vadd.f32 %v1279_v24, %v5996_v22  ;;  %v1281_v27 = vpop.f32.mrb[38].mxu1 }
 0x88e   :  { %v1282_v29 = vpop.f32.mrb[39].mxu1  ;;  %v4547_v0 = vmul.f32 -1.442695, %v1284_v20 }
 0x88f   :  { %5036 = vtanh.f32 %v1285_v26  ;;  %v4548_v29 = vmul.f32 -1.442695, %v1285_v26 }
 0x890   :  { %5038 = vpow2.f32 %v4547_v0 }
 0x899   :  { %v5037_v16 = vpop.eup %5036 }
 0x89a   :  { %1349 = vrot.lane.b32.xlu1 %v5037_v16, %s5555_s24  ;;  %v5039_v37 = vpop.eup %5038 }
 0x89b   :  { %v1336_v50 = vadd.f32 1.0, %v5039_v37 }
 0x89d   :  { %5040 = vrcp.f32 %v1336_v50 }
 0x8a7   :  { %v5041_v12 = vpop.eup %5040 }
 0x8a8   :  { %v1347_v47 = vmul.f32 %v5041_v12, %v1345_v32 }
 0x90c   :  { %v1350_v1 = vpop.permute.xlu1 %1349 }
 0x90d   :  { %v1352_v39 = vmul.f32 %v5041_v12, %v1350_v1 }
 0x90f   :  { %v1225_v23 = vpop.f32.mrb[20].mxu0  ;;  %1354 = vrot.lane.b32.xlu1 %v1352_v39, %s5555_s24  ;;  %v6263_v39 = vld [vmem:[%s7381_s1 + $0x20] sm:$0xff] }
 0x910   :  { %v1232_v15 = vadd.f32 %v1225_v23, %v5969_v11  ;;  %v1227_v22 = vpop.f32.mrb[21].mxu0 }
 0x911   :  { %v6247_v54 = vadd.f32 %v1227_v22, %v5973_v14  ;;  %v1229_v5 = vpop.f32.mrb[22].mxu0 }
 0x912   :  { %v1230_v31 = vpop.f32.mrb[23].mxu0  ;;  %v4545_v11 = vmul.f32 -1.442695, %v1232_v15 }
 0x913   :  { %5042 = vtanh.f32 %v6247_v54 }
 0x914   :  { %5044 = vpow2.f32 %v4545_v11  ;;  %v6277_v11 = vld [vmem:[#allocation4] ss:$8 sps:$4 sm:$0xff]  }
 0x91d   :  { %v5043_v33 = vpop.eup %5042 }
 0x91e   :  { %1305 = vrot.lane.b32.xlu1 %v5043_v33, %s5555_s24  ;;  %v5045_v14 = vpop.eup %5044 }
 0x91f   :  { %v1292_v19 = vadd.f32 1.0, %v5045_v14  ;;  %v6283_v14 = vld [vmem:[#allocation4 + $0x14] ss:$8 sps:$4 sm:$0xff]  }
 0x922   :  { %1300 = vrot.lane.b32.xlu1 %v6253_v55, %s5555_s24 }
 0x981   :  { %v1355_v35 = vpop.permute.xlu1 %1354 }
 0x982   :  { %v1357_v43 = vadd.f32 %v1355_v35, %v1347_v47  ;;  %v6286_v35 = vld [vmem:[#allocation4 + $0x10] ss:$8 sps:$4 sm:$0xff]  }
 0x984   :  { %5046 = vtanh.f32 %v1357_v43  ;;  %v1364_v57 = vsub.f32 %v1357_v43, %v1345_v32  ;;  %v6294_v43 = vld [vmem:[#allocation4 + $0x20] ss:$8 sps:$4 sm:$0xff]  }
 0x985   :  { %5048 = vrcp.f32 %v1292_v19  ;;  %v6290_v19 = vld [vmem:[#allocation4 + $0x24] ss:$8 sps:$4 sm:$0xff]  }
 0x986   :  { %5050 = vpow2.f32 %v4548_v29 }
 0x98e   :  { %v5047_v18 = vpop.eup %5046 }
 0x98f   :  { %1360 = vrot.lane.b32.xlu0 %v5047_v18, %s5555_s24  ;;  %v5049_v20 = vpop.eup %5048  ;;  %v6297_v18 = vld [vmem:[#allocation4 + $0x34] ss:$8 sps:$4 sm:$0xff]  }
 0x990   :  { %v1306_v24 = vpop.permute.xlu1 %1305  ;;  %v5051_v16 = vpop.eup %5050 }
 0x991   :  { %v1308_v27 = vmul.f32 %v5049_v20, %v1306_v24  ;;  %v1337_v0 = vadd.f32 1.0, %v5051_v16  ;;  %v4546_v24 = vmul.f32 -1.442695, %v6247_v54 }
 0x993   :  { %1310 = vrot.lane.b32.xlu0 %v1308_v27, %s5555_s24  ;;  %5052 = vrcp.f32 %v1337_v0 }
 0x994   :  { %v1301_v50 = vpop.permute.xlu1 %1300 }
 0x995   :  { %v1303_v23 = vmul.f32 %v5049_v20, %v1301_v50  ;;  %v6300_v20 = vld [vmem:[#allocation4 + $0x30] ss:$8 sps:$4 sm:$0xff]  }
 0x997   :  { %1366 = vrot.lane.b32.xlu0 %v1364_v57, %s5555_s24 }
 0x99d   :  { %v5053_v37 = vpop.eup %5052 }
 0xa01   :  { %v1361_v12 = vpop.permute.xlu0 %1360 }
 0xa02   :  { %v1363_v1 = vmul.f32 %v5053_v37, %v1361_v12 }
 0xa04   :  { %v1371_v15 = vsub.f32 %v1363_v1, %v6151_v58 }
 0xa05   :  { %v1311_v22 = vpop.permute.xlu0 %1310 }
 0xa06   :  { %v1313_v5 = vadd.f32 %v1311_v22, %v1303_v23  ;;  %v1372_v26 = vmul.f32 %v6263_v39, %v1371_v15 }
 0xa08   :  { %5054 = vtanh.f32 %v1313_v5  ;;  %v6268_v31 = vadd.f32 %v1372_v26, %v6151_v58  ;;  %v1320_v47 = vsub.f32 %v1313_v5, %v1301_v50  ;;  %v6309_v50 = vld [vmem:[%s7381_s1 + $0x18] sm:$0xff] }
 0xa09   :  { %v1367_v32 = vpop.permute.xlu0 %1366  ;;  %5056 = vpow2.f32 %v4546_v24 }
 0xa0a   :  { %v1369_v41 = vmul.f32 %v6263_v39, %v1367_v32  ;;  %v1437_v8 = vpack.c.bf16 %v6268_v31, %v6268_v31 }
 0xa0c   :  { %4552 = vmatmul.mubr.msk.bf16.vlgmr.msra.gmra.mrb[40].mxu1 %vm291_vm0, %v1437_v8  ;;  %v6275_v33 = vadd.f32 %v1369_v41, %v6158_v42 }
 0xa0d   :  { %1638 = vmatpush1.bf16.msra.mxu1 %v6277_v11  ;;  %1669 = vmatprep.mubr.bf16.mxu1 %v7410_v38 }
 0xa0e   :  { %1542 = vrot.lane.b32.xlu0 %v6275_v33, %s5555_s24  ;;  %1639 = vmatprep.subr.bf16.mxu1 %v6283_v14 }
 0xa11   :  { %1640 = vmatpush1.bf16.msra.mxu1 %v6286_v35 }
 0xa12   :  { %v5055_v42 = vpop.eup %5054  ;;  %1322 = vrot.lane.b32.xlu0 %v1320_v47, %s5555_s24  ;;  %1641 = vmatprep.subr.bf16.mxu1 %v6290_v19 }
 0xa13   :  { %1316 = vrot.lane.b32.xlu1 %v5055_v42, %s5555_s24  ;;  %v5057_v27 = vpop.eup %5056 }
 0xa14   :  { %v1293_v57 = vadd.f32 1.0, %v5057_v27 }
 0xa15   :  { %1642 = vmatpush1.bf16.msra.mxu1 %v6294_v43 }
 0xa16   :  { %1643 = vmatprep.subr.bf16.mxu1 %v6297_v18  ;;  %5058 = vrcp.f32 %v1293_v57 }
 0xa19   :  { %1644 = vmatpush1.bf16.msra.mxu1 %v6300_v20 }
 0xa1a   :  { %1833 = vmatprep.subr.bf16.mxu1 %v6172_v30 }
 0xa20   :  { %v5059_v29 = vpop.eup %5058 }
 0xa85   :  { %v1317_v16 = vpop.permute.xlu1 %1316 }
 0xa86   :  { %v1319_v0 = vmul.f32 %v5059_v29, %v1317_v16 }
 0xa88   :  { %v1327_v37 = vsub.f32 %v1319_v0, %v6184_v36 }
 0xa8a   :  { %v1328_v12 = vmul.f32 %v6309_v50, %v1327_v37 }
 0xa8c   :  { %v6313_v1 = vadd.f32 %v1328_v12, %v6184_v36  ;;  %v1543_v12 = vpop.permute.xlu0 %1542 }
 0xa8e   :  { %v1388_v54 = vpack.c.bf16 %v6313_v1, %v6313_v1  ;;  %v1374_v23 = vmul.f32 %v6309_v50, %v6313_v1 }
 0xa90   :  { %4551 = vmatmul.mubr.msk.bf16.vlgmr.msra.gmra.mrb[24].mxu0 %vm291_vm0, %v1388_v54  ;;  %1376 = vst.msk [vmem:[#allocation3 + $0x18] sm:$0xff] %vm291_vm0, %v1374_v23  ;;  %v1323_v54 = vpop.permute.xlu0 %1322 }
 0xa91   :  { %1589 = vmatpush1.bf16.msra.mxu0 %v6195_v63  ;;  %1620 = vmatprep.mubr.bf16.mxu0 %v7410_v38  ;;  %v1325_v23 = vmul.f32 %v6309_v50, %v1323_v54 }
 0xa92   :  { %1590 = vmatprep.subr.bf16.mxu0 %v6202_v28 }
 0xa95   :  { %1591 = vmatpush1.bf16.msra.mxu0 %v6208_v40 }
 0xa96   :  { %1592 = vmatprep.subr.bf16.mxu0 %v6214_v7 }
 0xa99   :  { %1593 = vmatpush1.bf16.msra.mxu0 %v6220_v61 }
 0xa9a   :  { %1594 = vmatprep.subr.bf16.mxu0 %v6226_v17 }
 0xa9d   :  { %1595 = vmatpush1.bf16.msra.mxu0 %v6232_v10 }
 0xa9e   :  { %1784 = vmatprep.subr.bf16.mxu0 %v6238_v53 }
 0xadf   :  { %v1475_v36 = vpop.f32.mrb[40].mxu1 }
 0xae0   :  { %v1482_v15 = vadd.f32 %v1475_v36, %v5990_v2  ;;  %v1477_v22 = vpop.f32.mrb[41].mxu1 }
 0xae1   :  { %v1483_v5 = vadd.f32 %v1477_v22, %v5992_v6  ;;  %v1479_v26 = vpop.f32.mrb[42].mxu1 }
 0xae2   :  { %v1480_v32 = vpop.f32.mrb[43].mxu1  ;;  %v4555_v8 = vmul.f32 -1.442695, %v1482_v15  ;;  %v6339_v15 = vadd.f32 %v1325_v23, %v6253_v55 }
 0xae3   :  { %5060 = vtanh.f32 %v1483_v5 }
 0xae4   :  { %5062 = vpow2.f32 %v4555_v8 }
 0xaed   :  { %v5061_v41 = vpop.eup %5060 }
 0xaee   :  { %1547 = vrot.lane.b32.xlu1 %v5061_v41, %s5555_s24  ;;  %v5063_v47 = vpop.eup %5062 }
 0xaef   :  { %v1534_v42 = vadd.f32 1.0, %v5063_v47 }
 0xaf1   :  { %5064 = vrcp.f32 %v1534_v42 }
 0xafb   :  { %v5065_v24 = vpop.eup %5064 }
 0xb60   :  { %v1548_v27 = vpop.permute.xlu1 %1547 }
 0xb61   :  { %v1550_v57 = vmul.f32 %v5065_v24, %v1548_v27 }
 0xb63   :  { %v1426_v29 = vpop.f32.mrb[24].mxu0  ;;  %1552 = vrot.lane.b32.xlu1 %v1550_v57, %s5555_s24  ;;  %v4556_v57 = vmul.f32 -1.442695, %v1483_v5 }
 0xb64   :  { %v1433_v2 = vadd.f32 %v1426_v29, %v5941_v46  ;;  %v1428_v6 = vpop.f32.mrb[25].mxu0 }
 0xb65   :  { %v1434_v16 = vadd.f32 %v1428_v6, %v5943_v49  ;;  %v1430_v0 = vpop.f32.mrb[26].mxu0  ;;  %v1545_v49 = vmul.f32 %v5065_v24, %v1543_v12 }
 0xb66   :  { %v1431_v37 = vpop.f32.mrb[27].mxu0  ;;  %v4553_v46 = vmul.f32 -1.442695, %v1433_v2 }
 0xb67   :  { %5066 = vtanh.f32 %v1434_v16 }
 0xb68   :  { %5068 = vpow2.f32 %v4553_v46 }
 0xb71   :  { %v5067_v36 = vpop.eup %5066 }
 0xb72   :  { %1503 = vrot.lane.b32.xlu1 %v5067_v36, %s5555_s24  ;;  %v5069_v22 = vpop.eup %5068 }
 0xb73   :  { %v1490_v32 = vadd.f32 1.0, %v5069_v22 }
 0xb76   :  { %1498 = vrot.lane.b32.xlu1 %v6339_v15, %s5555_s24 }
 0xbd5   :  { %v1553_v26 = vpop.permute.xlu1 %1552 }
 0xbd6   :  { %v1555_v41 = vadd.f32 %v1553_v26, %v1545_v49 }
 0xbd8   :  { %5070 = vtanh.f32 %v1555_v41  ;;  %v1562_v55 = vsub.f32 %v1555_v41, %v1543_v12 }
 0xbd9   :  { %5072 = vrcp.f32 %v1490_v32 }
 0xbda   :  { %5074 = vpow2.f32 %v4556_v57 }
 0xbe2   :  { %v5071_v8 = vpop.eup %5070 }
 0xbe3   :  { %1558 = vrot.lane.b32.xlu0 %v5071_v8, %s5555_s24  ;;  %v5073_v47 = vpop.eup %5072 }
 0xbe4   :  { %v1504_v42 = vpop.permute.xlu1 %1503  ;;  %v5075_v29 = vpop.eup %5074 }
 0xbe5   :  { %v1506_v27 = vmul.f32 %v5073_v47, %v1504_v42  ;;  %v1535_v24 = vadd.f32 1.0, %v5075_v29 }
 0xbe7   :  { %1508 = vrot.lane.b32.xlu0 %v1506_v27, %s5555_s24  ;;  %5076 = vrcp.f32 %v1535_v24 }
 0xbe8   :  { %v1499_v6 = vpop.permute.xlu1 %1498 }
 0xbe9   :  { %v1501_v54 = vmul.f32 %v5073_v47, %v1499_v6 }
 0xbeb   :  { %1564 = vrot.lane.b32.xlu0 %v1562_v55, %s5555_s24 }
 0xbf1   :  { %v5077_v2 = vpop.eup %5076 }
 0xc55   :  { %v1559_v0 = vpop.permute.xlu0 %1558 }
 0xc56   :  { %v1561_v37 = vmul.f32 %v5077_v2, %v1559_v0 }
 0xc58   :  { %v1569_v23 = vsub.f32 %v1561_v37, %v6268_v31 }
 0xc59   :  { %v1509_v36 = vpop.permute.xlu0 %1508 }
 0xc5a   :  { %v1511_v46 = vadd.f32 %v1509_v36, %v1501_v54  ;;  %v1570_v22 = vmul.f32 %v6309_v50, %v1569_v23 }
 0xc5c   :  { %5078 = vtanh.f32 %v1511_v46  ;;  %v6349_v12 = vadd.f32 %v1570_v22, %v6268_v31  ;;  %v1518_v41 = vsub.f32 %v1511_v46, %v1499_v6 }
 0xc5d   :  { %v1565_v5 = vpop.permute.xlu0 %1564 }
 0xc5e   :  { %v1567_v49 = vmul.f32 %v6309_v50, %v1565_v5  ;;  %v1633_v26 = vpack.c.bf16 %v6349_v12, %v6349_v12 }
 0xc60   :  { %4560 = vmatmul.mubr.msk.bf16.vlgmr.msra.gmra.mrb[44].mxu1 %vm291_vm0, %v1633_v26  ;;  %v6356_v32 = vadd.f32 %v1567_v49, %v6275_v33  ;;  %v4554_v33 = vmul.f32 -1.442695, %v1434_v16 }
 0xc61   :  { %1834 = vmatpush1.bf16.msra.mxu1 %v6277_v11  ;;  %1865 = vmatprep.mubr.bf16.mxu1 %v7410_v38 }
 0xc62   :  { %1738 = vrot.lane.b32.xlu0 %v6356_v32, %s5555_s24  ;;  %1835 = vmatprep.subr.bf16.mxu1 %v6283_v14  ;;  %5080 = vpow2.f32 %v4554_v33 }
 0xc65   :  { %1836 = vmatpush1.bf16.msra.mxu1 %v6286_v35 }
 0xc66   :  { %v5079_v8 = vpop.eup %5078  ;;  %1520 = vrot.lane.b32.xlu0 %v1518_v41, %s5555_s24  ;;  %1837 = vmatprep.subr.bf16.mxu1 %v6290_v19 }
 0xc67   :  { %1514 = vrot.lane.b32.xlu1 %v5079_v8, %s5555_s24 }
 0xc69   :  { %1838 = vmatpush1.bf16.msra.mxu1 %v6294_v43 }
 0xc6a   :  { %1839 = vmatprep.subr.bf16.mxu1 %v6297_v18 }
 0xc6c   :  { %v5081_v47 = vpop.eup %5080 }
 0xc6d   :  { %1840 = vmatpush1.bf16.msra.mxu1 %v6300_v20  ;;  %v1491_v42 = vadd.f32 1.0, %v5081_v47 }
 0xc6e   :  { %2029 = vmatprep.subr.bf16.mxu1 %v6172_v30 }
 0xc6f   :  { %5082 = vrcp.f32 %v1491_v42 }
 0xc79   :  { %v5083_v27 = vpop.eup %5082 }
 0xcd4   :  { %v1739_v47 = vpop.permute.xlu0 %1738 }
 0xcd8   :  { %v1521_v42 = vpop.permute.xlu0 %1520 }
 0xcd9   :  { %v1515_v55 = vpop.permute.xlu1 %1514 }
 0xcda   :  { %v1517_v57 = vmul.f32 %v5083_v27, %v1515_v55  ;;  %v1523_v27 = vmul.f32 %v6263_v39, %v1521_v42 }
 0xcdc   :  { %v1525_v29 = vsub.f32 %v1517_v57, %v6313_v1  ;;  %v6397_v57 = vadd.f32 %v1523_v27, %v6339_v15 }
 0xcde   :  { %v1526_v24 = vmul.f32 %v6263_v39, %v1525_v29 }
 0xce0   :  { %v6374_v2 = vadd.f32 %v1526_v24, %v6313_v1 }
 0xce2   :  { %v1584_v6 = vpack.c.bf16 %v6374_v2, %v6374_v2 }
 0xce4   :  { %4559 = vmatmul.mubr.msk.bf16.vlgmr.msra.gmra.mrb[28].mxu0 %vm291_vm0, %v1584_v6 }
 0xce5   :  { %1785 = vmatpush1.bf16.msra.mxu0 %v6195_v63  ;;  %1816 = vmatprep.mubr.bf16.mxu0 %v7410_v38 }
 0xce6   :  { %1786 = vmatprep.subr.bf16.mxu0 %v6202_v28 }
 0xce9   :  { %1787 = vmatpush1.bf16.msra.mxu0 %v6208_v40 }
 0xcea   :  { %1788 = vmatprep.subr.bf16.mxu0 %v6214_v7 }
 0xced   :  { %1789 = vmatpush1.bf16.msra.mxu0 %v6220_v61 }
 0xcee   :  { %1790 = vmatprep.subr.bf16.mxu0 %v6226_v17 }
 0xcf1   :  { %1791 = vmatpush1.bf16.msra.mxu0 %v6232_v10 }
 0xcf2   :  { %1980 = vmatprep.subr.bf16.mxu0 %v6238_v53 }
 0xd33   :  { %v1671_v30 = vpop.f32.mrb[44].mxu1 }
 0xd34   :  { %v1678_v1 = vadd.f32 %v1671_v30, %v5986_v45  ;;  %v1673_v16 = vpop.f32.mrb[45].mxu1 }
 0xd35   :  { %v1679_v0 = vadd.f32 %v1673_v16, %v5988_v48  ;;  %v1675_v37 = vpop.f32.mrb[46].mxu1 }
 0xd36   :  { %v1676_v54 = vpop.f32.mrb[47].mxu1  ;;  %v4563_v36 = vmul.f32 -1.442695, %v1678_v1 }
 0xd37   :  { %5084 = vtanh.f32 %v1679_v0 }
 0xd38   :  { %5086 = vpow2.f32 %v4563_v36 }
 0xd41   :  { %v5085_v23 = vpop.eup %5084 }
 0xd42   :  { %1743 = vrot.lane.b32.xlu1 %v5085_v23, %s5555_s24  ;;  %v5087_v46 = vpop.eup %5086  ;;  %v4564_v23 = vmul.f32 -1.442695, %v1679_v0 }
 0xd43   :  { %v1730_v22 = vadd.f32 1.0, %v5087_v46 }
 0xd45   :  { %5088 = vrcp.f32 %v1730_v22 }
 0xd4f   :  { %v5089_v5 = vpop.eup %5088 }
 0xdb4   :  { %v1744_v49 = vpop.permute.xlu1 %1743 }
 0xdb5   :  { %v1746_v53 = vmul.f32 %v5089_v5, %v1744_v49 }
 0xdb7   :  { %v1622_v26 = vpop.f32.mrb[28].mxu0  ;;  %1748 = vrot.lane.b32.xlu1 %v1746_v53, %s5555_s24 }
 0xdb8   :  { %v1629_v45 = vadd.f32 %v1622_v26, %v5945_v52  ;;  %v1624_v48 = vpop.f32.mrb[29].mxu0 }
 0xdb9   :  { %v1630_v41 = vadd.f32 %v1624_v48, %v5949_v56  ;;  %v1626_v8 = vpop.f32.mrb[30].mxu0  ;;  %v1741_v56 = vmul.f32 %v5089_v5, %v1739_v47 }
 0xdba   :  { %v1627_v33 = vpop.f32.mrb[31].mxu0  ;;  %v4561_v52 = vmul.f32 -1.442695, %v1629_v45 }
 0xdbb   :  { %5090 = vtanh.f32 %v1630_v41 }
 0xdbc   :  { %5092 = vpow2.f32 %v4561_v52 }
 0xdc5   :  { %v5091_v55 = vpop.eup %5090 }
 0xdc6   :  { %1699 = vrot.lane.b32.xlu1 %v5091_v55, %s5555_s24  ;;  %v5093_v29 = vpop.eup %5092 }
 0xdc7   :  { %v1686_v6 = vadd.f32 1.0, %v5093_v29 }
 0xdca   :  { %1694 = vrot.lane.b32.xlu1 %v6397_v57, %s5555_s24 }
 0xe29   :  { %v1749_v24 = vpop.permute.xlu1 %1748 }
 0xe2a   :  { %v1751_v30 = vadd.f32 %v1749_v24, %v1741_v56 }
 0xe2c   :  { %5094 = vtanh.f32 %v1751_v30  ;;  %v1758_v15 = vsub.f32 %v1751_v30, %v1739_v47 }
 0xe2d   :  { %5096 = vrcp.f32 %v1686_v6 }
 0xe2e   :  { %5098 = vpow2.f32 %v4564_v23 }
 0xe36   :  { %v5095_v1 = vpop.eup %5094 }
 0xe37   :  { %1754 = vrot.lane.b32.xlu0 %v5095_v1, %s5555_s24  ;;  %v5097_v16 = vpop.eup %5096 }
 0xe38   :  { %v1700_v37 = vpop.permute.xlu1 %1699  ;;  %v5099_v36 = vpop.eup %5098 }
 0xe39   :  { %v1702_v54 = vmul.f32 %v5097_v16, %v1700_v37  ;;  %v1731_v46 = vadd.f32 1.0, %v5099_v36 }
 0xe3b   :  { %1704 = vrot.lane.b32.xlu0 %v1702_v54, %s5555_s24  ;;  %5100 = vrcp.f32 %v1731_v46 }
 0xe3c   :  { %v1695_v5 = vpop.permute.xlu1 %1694 }
 0xe3d   :  { %v1697_v26 = vmul.f32 %v5097_v16, %v1695_v5 }
 0xe3f   :  { %1760 = vrot.lane.b32.xlu0 %v1758_v15, %s5555_s24 }
 0xe45   :  { %v5101_v22 = vpop.eup %5100 }
 0xea9   :  { %v1755_v49 = vpop.permute.xlu0 %1754 }
 0xeaa   :  { %v1757_v53 = vmul.f32 %v5101_v22, %v1755_v49 }
 0xeac   :  { %v1765_v45 = vsub.f32 %v1757_v53, %v6349_v12 }
 0xead   :  { %v1705_v48 = vpop.permute.xlu0 %1704 }
 0xeae   :  { %v1707_v8 = vadd.f32 %v1705_v48, %v1697_v26  ;;  %v1766_v33 = vmul.f32 %v6180_v34, %v1765_v45 }
 0xeb0   :  { %5102 = vtanh.f32 %v1707_v8  ;;  %v6407_v47 = vadd.f32 %v1766_v33, %v6349_v12  ;;  %v1714_v52 = vsub.f32 %v1707_v8, %v1695_v5 }
 0xeb1   :  { %v1761_v0 = vpop.permute.xlu0 %1760 }
 0xeb2   :  { %v1763_v42 = vmul.f32 %v6180_v34, %v1761_v0  ;;  %v1829_v27 = vpack.c.bf16 %v6407_v47, %v6407_v47 }
 0xeb4   :  { %4568 = vmatmul.mubr.msk.bf16.vlgmr.msra.gmra.mrb[48].mxu1 %vm291_vm0, %v1829_v27  ;;  %v6414_v55 = vadd.f32 %v1763_v42, %v6356_v32 }
 0xeb5   :  { %2030 = vmatpush1.bf16.msra.mxu1 %v6277_v11  ;;  %2061 = vmatprep.mubr.bf16.mxu1 %v7410_v38  ;;  %v4562_v11 = vmul.f32 -1.442695, %v1630_v41 }
 0xeb6   :  { %1934 = vrot.lane.b32.xlu0 %v6414_v55, %s5555_s24  ;;  %2031 = vmatprep.subr.bf16.mxu1 %v6283_v14 }
 0xeb7   :  { %5104 = vpow2.f32 %v4562_v11 }
 0xeb9   :  { %2032 = vmatpush1.bf16.msra.mxu1 %v6286_v35 }
 0xeba   :  { %v5103_v34 = vpop.eup %5102  ;;  %1716 = vrot.lane.b32.xlu0 %v1714_v52, %s5555_s24  ;;  %2033 = vmatprep.subr.bf16.mxu1 %v6290_v19 }
 0xebb   :  { %1710 = vrot.lane.b32.xlu1 %v5103_v34, %s5555_s24 }
 0xebd   :  { %2034 = vmatpush1.bf16.msra.mxu1 %v6294_v43 }
 0xebe   :  { %2035 = vmatprep.subr.bf16.mxu1 %v6297_v18 }
 0xec1   :  { %2036 = vmatpush1.bf16.msra.mxu1 %v6300_v20  ;;  %v5105_v32 = vpop.eup %5104 }
 0xec2   :  { %v1687_v14 = vadd.f32 1.0, %v5105_v32 }
 0xec4   :  { %5106 = vrcp.f32 %v1687_v14 }
 0xece   :  { %v5107_v29 = vpop.eup %5106 }
 0xf28   :  { %v1935_v36 = vpop.permute.xlu0 %1934 }
 0xf2c   :  { %v1717_v46 = vpop.permute.xlu0 %1716 }
 0xf2d   :  { %v1711_v35 = vpop.permute.xlu1 %1710  ;;  %v1719_v22 = vmul.f32 %v6146_v9, %v1717_v46 }
 0xf2e   :  { %v1713_v56 = vmul.f32 %v5107_v29, %v1711_v35 }
 0xf2f   :  { %v6453_v49 = vadd.f32 %v1719_v22, %v6397_v57 }
 0xf30   :  { %v1721_v24 = vsub.f32 %v1713_v56, %v6374_v2 }
 0xf32   :  { %v1722_v19 = vmul.f32 %v6146_v9, %v1721_v24 }
 0xf34   :  { %v6431_v6 = vadd.f32 %v1722_v19, %v6374_v2 }
 0xf36   :  { %v1780_v43 = vpack.c.bf16 %v6431_v6, %v6431_v6 }
 0xf38   :  { %4567 = vmatmul.mubr.msk.bf16.vlgmr.msra.gmra.mrb[32].mxu0 %vm291_vm0, %v1780_v43 }
 0xf39   :  { %1981 = vmatpush1.bf16.msra.mxu0 %v6195_v63  ;;  %2012 = vmatprep.mubr.bf16.mxu0 %v7410_v38 }
 0xf3a   :  { %1982 = vmatprep.subr.bf16.mxu0 %v6202_v28 }
 0xf3d   :  { %1983 = vmatpush1.bf16.msra.mxu0 %v6208_v40 }
 0xf3e   :  { %1984 = vmatprep.subr.bf16.mxu0 %v6214_v7 }
 0xf41   :  { %1985 = vmatpush1.bf16.msra.mxu0 %v6220_v61 }
 0xf42   :  { %1986 = vmatprep.subr.bf16.mxu0 %v6226_v17 }
 0xf45   :  { %1987 = vmatpush1.bf16.msra.mxu0 %v6232_v10 }
 0xf87   :  { %v1867_v18 = vpop.f32.mrb[48].mxu1 }
 0xf88   :  { %v1874_v20 = vadd.f32 %v1867_v18, %v5979_v44  ;;  %v1869_v41 = vpop.f32.mrb[49].mxu1 }
 0xf89   :  { %v1875_v63 = vadd.f32 %v1869_v41, %v5981_v51  ;;  %v1871_v30 = vpop.f32.mrb[50].mxu1 }
 0xf8a   :  { %v1872_v1 = vpop.f32.mrb[51].mxu1  ;;  %v4571_v40 = vmul.f32 -1.442695, %v1874_v20  ;;  %v5364_v20 = vld [vmem:[%s7381_s1 + $0x8] sm:$0xff] }
 0xf8b   :  { %5108 = vtanh.f32 %v1875_v63  ;;  %v4572_v42 = vmul.f32 -1.442695, %v1875_v63 }
 0xf8c   :  { %5110 = vpow2.f32 %v4571_v40 }
 0xf95   :  { %v5109_v28 = vpop.eup %5108 }
 0xf96   :  { %1939 = vrot.lane.b32.xlu1 %v5109_v28, %s5555_s24  ;;  %v5111_v7 = vpop.eup %5110 }
 0xf97   :  { %v1926_v61 = vadd.f32 1.0, %v5111_v7 }
 0xf99   :  { %5112 = vrcp.f32 %v1926_v61 }
 0xfa3   :  { %v5113_v17 = vpop.eup %5112 }
0x1008   :  { %v1940_v16 = vpop.permute.xlu1 %1939 }
0x1009   :  { %v1942_v10 = vmul.f32 %v5113_v17, %v1940_v16 }
0x100b   :  { %v1818_v37 = vpop.f32.mrb[32].mxu0  ;;  %1944 = vrot.lane.b32.xlu1 %v1942_v10, %s5555_s24  ;;  %v6480_v10 = vld [vmem:[%s7381_s1 + $0x30] sm:$0xff] }
0x100c   :  { %v1825_v44 = vadd.f32 %v1818_v37, %v5953_v59  ;;  %v1820_v51 = vpop.f32.mrb[33].mxu0 }
0x100d   :  { %v1826_v54 = vadd.f32 %v1820_v51, %v5956_v62  ;;  %v1822_v15 = vpop.f32.mrb[34].mxu0  ;;  %v1937_v62 = vmul.f32 %v5113_v17, %v1935_v36 }
0x100e   :  { %v1823_v23 = vpop.f32.mrb[35].mxu0  ;;  %v4569_v59 = vmul.f32 -1.442695, %v1825_v44 }
0x100f   :  { %5114 = vtanh.f32 %v1826_v54  ;;  %v4570_v28 = vmul.f32 -1.442695, %v1826_v54 }
0x1010   :  { %5116 = vpow2.f32 %v4569_v59 }
0x1019   :  { %v5115_v5 = vpop.eup %5114 }
0x101a   :  { %1895 = vrot.lane.b32.xlu1 %v5115_v5, %s5555_s24  ;;  %v5117_v53 = vpop.eup %5116 }
0x101b   :  { %v1882_v45 = vadd.f32 1.0, %v5117_v53 }
0x101e   :  { %1890 = vrot.lane.b32.xlu1 %v6453_v49, %s5555_s24 }
0x107d   :  { %v1945_v26 = vpop.permute.xlu1 %1944 }
0x107e   :  { %v1947_v48 = vadd.f32 %v1945_v26, %v1937_v62 }
0x1080   :  { %5118 = vtanh.f32 %v1947_v48  ;;  %v1954_v57 = vsub.f32 %v1947_v48, %v1935_v36 }
0x1081   :  { %5120 = vrcp.f32 %v1882_v45 }
0x1082   :  { %5122 = vpow2.f32 %v4572_v42 }
0x108a   :  { %v5119_v8 = vpop.eup %5118 }
0x108b   :  { %1950 = vrot.lane.b32.xlu0 %v5119_v8, %s5555_s24  ;;  %v5121_v9 = vpop.eup %5120 }
0x108c   :  { %v1896_v33 = vpop.permute.xlu1 %1895  ;;  %v5123_v27 = vpop.eup %5122 }
0x108d   :  { %v1898_v0 = vmul.f32 %v5121_v9, %v1896_v33  ;;  %v1927_v52 = vadd.f32 1.0, %v5123_v27 }
0x108f   :  { %1900 = vrot.lane.b32.xlu0 %v1898_v0, %s5555_s24  ;;  %5124 = vrcp.f32 %v1927_v52 }
0x1090   :  { %v1891_v11 = vpop.permute.xlu1 %1890 }
0x1091   :  { %v1893_v29 = vmul.f32 %v5121_v9, %v1891_v11  ;;  %v7411_v9 = vld [vmem:[#allocation20_spill] sm:$0xff] }
0x1093   :  { %1956 = vrot.lane.b32.xlu0 %v1954_v57, %s5555_s24 }
0x1099   :  { %v5125_v34 = vpop.eup %5124 }
0x10fd   :  { %v1951_v32 = vpop.permute.xlu0 %1950 }
0x10fe   :  { %v1953_v14 = vmul.f32 %v5125_v34, %v1951_v32  ;;  %v1574_v32 = vmul.f32 %v6309_v50, %v6349_v12 }
0x1100   :  { %v1961_v35 = vsub.f32 %v1953_v14, %v6407_v47 }
0x1101   :  { %v1901_v56 = vpop.permute.xlu0 %1900 }
0x1102   :  { %v1903_v24 = vadd.f32 %v1901_v56, %v1893_v29  ;;  %v1962_v19 = vmul.f32 %v6103_v13, %v1961_v35 }
0x1104   :  { %5126 = vtanh.f32 %v1903_v24  ;;  %v6463_v43 = vadd.f32 %v1962_v19, %v6407_v47  ;;  %v1910_v13 = vsub.f32 %v1903_v24, %v1891_v11 }
0x1105   :  { %v1957_v18 = vpop.permute.xlu0 %1956  ;;  %5128 = vpow2.f32 %v4570_v28 }
0x1106   :  { %v1959_v41 = vmul.f32 %v5364_v20, %v1957_v18  ;;  %v2025_v63 = vpack.c.bf16 %v6463_v43, %v6463_v43 }
0x1108   :  { %4575 = vmatmul.mubr.msk.bf16.vlgmr.msra.gmra.mrb[52].mxu1 %vm291_vm0, %v2025_v63  ;;  %v1960_v30 = vadd.f32 %v1959_v41, %v6414_v55 }
0x1109   :  { %2485 = vmatprep.mubr.bf16.mxu1 %v7410_v38 }
0x110a   :  { %2123 = vrot.lane.b32.xlu0 %v1960_v30, %s5555_s24  ;;  %v4869_v30 = vld [vmem:[%s7386_s6] ss:$16 sps:$4 sm:$0xff]  }
0x110e   :  { %v5127_v1 = vpop.eup %5126  ;;  %1912 = vrot.lane.b32.xlu0 %v1910_v13, %s5555_s24  ;;  %v4871_v13 = vld [vmem:[%s7386_s6 + $0x4] ss:$16 sps:$4 sm:$0xff]  }
0x110f   :  { %1906 = vrot.lane.b32.xlu1 %v5127_v1, %s5555_s24  ;;  %v5129_v40 = vpop.eup %5128  ;;  %v4872_v1 = vld [vmem:[%s7386_s6 + $0x8] ss:$16 sps:$4 sm:$0xff]   ;;  %2380 = vmatprep.subr.bf16.mxu0 %v4871_v13 }
0x1110   :  { %v1883_v7 = vadd.f32 1.0, %v5129_v40  ;;  %v4874_v40 = vld [vmem:[%s7386_s6 + $0xc] ss:$16 sps:$4 sm:$0xff]  }
0x1111   :  { %2453 = vmatprep.subr.bf16.mxu1 %v4874_v40 }
0x1112   :  { %5130 = vrcp.f32 %v1883_v7  ;;  %v4877_v7 = vld [vmem:[%s7386_s6 + $0x24] ss:$16 sps:$4 sm:$0xff]   ;;  %2454 = vmatpush1.bf16.msra.mxu1 %v4872_v1 }
0x1113   :  { %v6652_v1 = vld [vmem:[%s7387_s7 + $0x4] ss:$8 sps:$4 sm:$0xff]  }
0x111c   :  { %v5131_v61 = vpop.eup %5130 }
0x117c   :  { %v2124_v42 = vpop.permute.xlu0 %2123 }
0x1180   :  { %v1913_v27 = vpop.permute.xlu0 %1912 }
0x1181   :  { %v1907_v17 = vpop.permute.xlu1 %1906  ;;  %v1915_v52 = vmul.f32 %v6480_v10, %v1913_v27 }
0x1182   :  { %v1909_v16 = vmul.f32 %v5131_v61, %v1907_v17  ;;  %v4880_v61 = vld [vmem:[%s7386_s6 + $0x2c] ss:$16 sps:$4 sm:$0xff]   ;;  %v4875_v17 = vld [vmem:[%s7386_s6 + $0x20] ss:$16 sps:$4 sm:$0xff]  }
0x1183   :  { %v1916_v11 = vadd.f32 %v1915_v52, %v6453_v49  ;;  %2455 = vmatprep.subr.bf16.mxu1 %v4880_v61 }
0x1184   :  { %v1917_v55 = vsub.f32 %v1909_v16, %v6431_v6  ;;  %v4878_v16 = vld [vmem:[%s7386_s6 + $0x28] ss:$16 sps:$4 sm:$0xff]  }
0x1185   :  { %2456 = vmatpush1.bf16.msra.mxu1 %v4878_v16 }
0x1186   :  { %v1918_v37 = vmul.f32 %v6480_v10, %v1917_v55  ;;  %v4883_v55 = vld [vmem:[%s7386_s6 + $0x44] ss:$16 sps:$4 sm:$0xff]  }
0x1188   :  { %v6484_v44 = vadd.f32 %v1918_v37, %v6431_v6  ;;  %v4886_v37 = vld [vmem:[%s7386_s6 + $0x4c] ss:$16 sps:$4 sm:$0xff]  }
0x1189   :  { %2457 = vmatprep.subr.bf16.mxu1 %v4886_v37 }
0x118a   :  { %v1976_v51 = vpack.c.bf16 %v6484_v44, %v6484_v44 }
0x118c   :  { %4574 = vmatmul.mubr.msk.bf16.vlgmr.msra.gmra.mrb[36].mxu0 %vm291_vm0, %v1976_v51  ;;  %v4881_v51 = vld [vmem:[%s7386_s6 + $0x40] ss:$16 sps:$4 sm:$0xff]  }
0x118d   :  { %2412 = vmatprep.mubr.bf16.mxu0 %v7410_v38  ;;  %2381 = vmatpush1.bf16.msra.mxu0 %v4869_v30  ;;  %v5368_v30 = vld [vmem:[%s7381_s1 + $0x38] sm:$0xff] }
0x118e   :  { %2382 = vmatprep.subr.bf16.mxu0 %v4877_v7  ;;  %v758_v13 = vmul.f32 %v5368_v30, %v6022_v4  ;;  %v2567_v7 = vld [vmem:[#allocation8 + $0x8] sm:$0xff] }
0x1191   :  { %2383 = vmatpush1.bf16.msra.mxu0 %v4875_v17 }
0x1192   :  { %2384 = vmatprep.subr.bf16.mxu0 %v4883_v55 }
0x1195   :  { %2385 = vmatpush1.bf16.msra.mxu0 %v4881_v51 }
0x11db   :  { %v2063_v54 = vpop.f32.mrb[52].mxu1 }
0x11dc   :  { %v2070_v15 = vadd.f32 %v2063_v54, %v5975_v21  ;;  %v2065_v23 = vpop.f32.mrb[53].mxu1  ;;  %v4884_v54 = vld [vmem:[%s7386_s6 + $0x48] ss:$16 sps:$4 sm:$0xff]  }
0x11dd   :  { %v6492_v36 = vadd.f32 %v2065_v23, %v5977_v25  ;;  %v2067_v46 = vpop.f32.mrb[54].mxu1  ;;  %v4892_v23 = vld [vmem:[%s7386_s6 + $0x6c] ss:$16 sps:$4 sm:$0xff]   ;;  %2458 = vmatpush1.bf16.msra.mxu1 %v4884_v54 }
0x11de   :  { %v2068_v22 = vpop.f32.mrb[55].mxu1  ;;  %v4578_v59 = vmul.f32 -1.442695, %v2070_v15  ;;  %v4889_v15 = vld [vmem:[%s7386_s6 + $0x64] ss:$16 sps:$4 sm:$0xff]   ;;  %2459 = vmatprep.subr.bf16.mxu1 %v4892_v23 }
0x11df   :  { %5132 = vtanh.f32 %v6492_v36  ;;  %v4887_v46 = vld [vmem:[%s7386_s6 + $0x60] ss:$16 sps:$4 sm:$0xff]   ;;  %2386 = vmatprep.subr.bf16.mxu0 %v4889_v15  ;;  %v4890_v22 = vld [vmem:[%s7386_s6 + $0x68] ss:$16 sps:$4 sm:$0xff]  }
0x11e0   :  { %5134 = vpow2.f32 %v4578_v59  ;;  %v4898_v59 = vld [vmem:[%s7386_s6 + $0x8c] ss:$16 sps:$4 sm:$0xff]   ;;  %2387 = vmatpush1.bf16.msra.mxu0 %v4887_v46  ;;  %v6668_v46 = vld [vmem:[#allocation8 + $0x14] ss:$8 sps:$4 sm:$0xff]  }
0x11e1   :  { %2460 = vmatpush1.bf16.msra.mxu1 %v4890_v22  ;;  %v6665_v15 = vld [vmem:[%s7381_s1 + $0x38] sm:$0xff] }
0x11e2   :  { %2461 = vmatprep.subr.bf16.mxu1 %v4898_v59 }
0x11e9   :  { %v5133_v5 = vpop.eup %5132 }
0x11ea   :  { %2128 = vrot.lane.b32.xlu1 %v5133_v5, %s5555_s24  ;;  %v5135_v53 = vpop.eup %5134  ;;  %v4895_v5 = vld [vmem:[%s7386_s6 + $0x84] ss:$16 sps:$4 sm:$0xff]  }
0x11eb   :  { %v2115_v62 = vadd.f32 1.0, %v5135_v53  ;;  %v4893_v53 = vld [vmem:[%s7386_s6 + $0x80] ss:$16 sps:$4 sm:$0xff]   ;;  %2388 = vmatprep.subr.bf16.mxu0 %v4895_v5 }
0x11ec   :  { %2389 = vmatpush1.bf16.msra.mxu0 %v4893_v53  ;;  %v5369_v5 = vld [vmem:[%s7381_s1 + $0x20] sm:$0xff] }
0x11ed   :  { %5136 = vrcp.f32 %v2115_v62  ;;  %v4896_v62 = vld [vmem:[%s7386_s6 + $0x88] ss:$16 sps:$4 sm:$0xff]   ;;  %v1572_v59 = vmul.f32 %v5369_v5, %v6374_v2 }
0x11ee   :  { %2462 = vmatpush1.bf16.msra.mxu1 %v4896_v62  ;;  %v6684_v62 = vld [vmem:[%s7387_s7 + $0x14] ss:$8 sps:$4 sm:$0xff]   ;;  %v6696_v2 = vld [vmem:[#allocation8 + $0x24] ss:$8 sps:$4 sm:$0xff]  }
0x11f7   :  { %v5137_v26 = vpop.eup %5136 }
0x11f8   :  { %v2126_v35 = vmul.f32 %v5137_v26, %v2124_v42  ;;  %v4908_v42 = vld [vmem:[%s7386_s6 + $0xc8] ss:$16 sps:$4 sm:$0xff]  }
0x125c   :  { %v2129_v45 = vpop.permute.xlu1 %2128 }
0x125d   :  { %v2131_v48 = vmul.f32 %v5137_v26, %v2129_v45  ;;  %v4901_v26 = vld [vmem:[%s7386_s6 + $0xa4] ss:$16 sps:$4 sm:$0xff]   ;;  %v4904_v45 = vld [vmem:[%s7386_s6 + $0xac] ss:$16 sps:$4 sm:$0xff]  }
0x125e   :  { %2390 = vmatprep.subr.bf16.mxu0 %v4901_v26  ;;  %2463 = vmatprep.subr.bf16.mxu1 %v4904_v45 }
0x125f   :  { %v2014_v21 = vpop.f32.mrb[36].mxu0  ;;  %2133 = vrot.lane.b32.xlu1 %v2131_v48, %s5555_s24  ;;  %v4899_v48 = vld [vmem:[%s7386_s6 + $0xa0] ss:$16 sps:$4 sm:$0xff]  }
0x1260   :  { %v2021_v25 = vadd.f32 %v2014_v21, %v5959_v3  ;;  %v2016_v8 = vpop.f32.mrb[37].mxu0  ;;  %v1966_v3 = vmul.f32 %v5364_v20, %v6463_v43  ;;  %v4902_v21 = vld [vmem:[%s7386_s6 + $0xa8] ss:$16 sps:$4 sm:$0xff]   ;;  %2391 = vmatpush1.bf16.msra.mxu0 %v4899_v48  ;;  %v6690_v48 = vld [vmem:[#allocation8 + $0x10] ss:$8 sps:$4 sm:$0xff]  }
0x1261   :  { %v6499_v33 = vadd.f32 %v2016_v8, %v7411_v9  ;;  %v2018_v0 = vpop.f32.mrb[38].mxu0  ;;  %2464 = vmatpush1.bf16.msra.mxu1 %v4902_v21 }
0x1262   :  { %v2019_v57 = vpop.f32.mrb[39].mxu0  ;;  %v4576_v14 = vmul.f32 -1.442695, %v2021_v25  ;;  %v4579_v25 = vmul.f32 -1.442695, %v6492_v36 }
0x1263   :  { %5138 = vtanh.f32 %v6499_v33  ;;  %v4905_v0 = vld [vmem:[%s7386_s6 + $0xc0] ss:$16 sps:$4 sm:$0xff]   ;;  %v4907_v57 = vld [vmem:[%s7386_s6 + $0xc4] ss:$16 sps:$4 sm:$0xff]   ;;  %v4910_v36 = vld [vmem:[%s7386_s6 + $0xcc] ss:$16 sps:$4 sm:$0xff]  }
0x1264   :  { %5140 = vpow2.f32 %v4576_v14  ;;  %2392 = vmatprep.subr.bf16.mxu0 %v4907_v57  ;;  %2465 = vmatprep.subr.bf16.mxu1 %v4910_v36  ;;  %v4914_v14 = vld [vmem:[%s7386_s6 + $0xe8] ss:$16 sps:$4 sm:$0xff]  }
0x1265   :  { %2393 = vmatpush1.bf16.msra.mxu0 %v4905_v0  ;;  %2466 = vmatpush1.bf16.msra.mxu1 %v4908_v42 }
0x126d   :  { %v5139_v34 = vpop.eup %5138 }
0x126e   :  { %2091 = vrot.lane.b32.xlu1 %v5139_v34, %s5555_s24  ;;  %v5141_v29 = vpop.eup %5140 }
0x126f   :  { %v2078_v24 = vadd.f32 1.0, %v5141_v29 }
0x1272   :  { %2086 = vrot.lane.b32.xlu1 %v1916_v11, %s5555_s24  ;;  %v6605_v11 = vld [vmem:[%s7381_s1] sm:$0xff] }
0x1276   :  { %1968 = vrot.lane.b32.xlu1 %v1966_v3, %s5555_s24  ;;  %v4911_v3 = vld [vmem:[%s7386_s6 + $0xe0] ss:$16 sps:$4 sm:$0xff]  }
0x127a   :  { %1576 = vrot.lane.b32.xlu1 %v1574_v32, %s5555_s24  ;;  %v4913_v32 = vld [vmem:[%s7386_s6 + $0xe4] ss:$16 sps:$4 sm:$0xff]  }
0x127b   :  { %2394 = vmatprep.subr.bf16.mxu0 %v4913_v32 }
0x127c   :  { %2395 = vmatpush1.bf16.msra.mxu0 %v4911_v3  ;;  %v6738_v3 = vld [vmem:[#allocation8 + $0x30] ss:$8 sps:$4 sm:$0xff]  }
0x127d   :  { %2618 = vmatprep.subr.bf16.mxu0 %v6652_v1 }
0x12d1   :  { %v2134_v56 = vpop.permute.xlu1 %2133 }
0x12d2   :  { %v2136_v19 = vadd.f32 %v2134_v56, %v2126_v35  ;;  %v4916_v35 = vld [vmem:[%s7386_s6 + $0xec] ss:$16 sps:$4 sm:$0xff]  }
0x12d3   :  { %2467 = vmatprep.subr.bf16.mxu1 %v4916_v35 }
0x12d4   :  { %5142 = vtanh.f32 %v2136_v19  ;;  %2468 = vmatpush1.bf16.msra.mxu1 %v4914_v14  ;;  %v6745_v14 = vld [vmem:[%s7387_s7 + $0x30] ss:$8 sps:$4 sm:$0xff]  }
0x12d5   :  { %5144 = vrcp.f32 %v2078_v24 }
0x12d6   :  { %5146 = vpow2.f32 %v4579_v25 }
0x12de   :  { %v5143_v49 = vpop.eup %5142 }
0x12df   :  { %2139 = vrot.lane.b32.xlu0 %v5143_v49, %s5555_s24  ;;  %v5145_v18 = vpop.eup %5144 }
0x12e0   :  { %v2092_v20 = vpop.permute.xlu1 %2091  ;;  %v5147_v8 = vpop.eup %5146 }
0x12e1   :  { %v2094_v41 = vmul.f32 %v5145_v18, %v2092_v20  ;;  %v2116_v9 = vadd.f32 1.0, %v5147_v8  ;;  %v5366_v20 = vld [vmem:[%s7381_s1 + $0x10] sm:$0xff] }
0x12e2   :  { %v6703_v8 = vld [vmem:[%s7387_s7 + $0x10] ss:$8 sps:$4 sm:$0xff]  }
0x12e3   :  { %2096 = vrot.lane.b32.xlu0 %v2094_v41, %s5555_s24  ;;  %5148 = vrcp.f32 %v2116_v9  ;;  %v1770_v41 = vmul.f32 %v5366_v20, %v6407_v47  ;;  %v1377_v47 = vmul.f32 %v6263_v39, %v6268_v31  ;;  %v4577_v39 = vmul.f32 -1.442695, %v6499_v33 }
0x12e4   :  { %v2087_v50 = vpop.permute.xlu1 %2086  ;;  %v1964_v9 = vmul.f32 %v6480_v10, %v6484_v44 }
0x12e5   :  { %v6513_v12 = vmul.f32 %v5145_v18, %v2087_v50  ;;  %v6629_v50 = vld [vmem:[#allocation8 + $0x4] ss:$8 sps:$4 sm:$0xff]  }
0x12e6   :  { %2703 = vmatprep.subr.bf16.mxu1 %v6629_v50 }
0x12e8   :  { %v1969_v63 = vpop.permute.xlu1 %1968 }
0x12e9   :  { %1971 = vst.msk [vmem:[#allocation3 + $0x8] sm:$0xff] %vm764_vm1, %v1969_v63 }
0x12ec   :  { %v1577_v28 = vpop.permute.xlu1 %1576 }
0x12ed   :  { %1579 = vst.msk [vmem:[#allocation3 + $0x18] sm:$0xff] %vm764_vm1, %v1577_v28  ;;  %v5149_v27 = vpop.eup %5148 }
0x12f0   :  { %v2155_v33 = vld [vmem:[#allocation3 + $0x8] sm:$0xff] }
0x12f4   :  { %v2157_v42 = vld [vmem:[#allocation3 + $0x18] sm:$0xff] }
0x1351   :  { %v2140_v52 = vpop.permute.xlu0 %2139 }
0x1352   :  { %v2142_v34 = vmul.f32 %v5149_v27, %v2140_v52  ;;  %v6713_v27 = vld [vmem:[#allocation8 + $0x20] ss:$8 sps:$4 sm:$0xff]   ;;  %v6727_v52 = vld [vmem:[%s7387_s7 + $0x20] ss:$8 sps:$4 sm:$0xff]  }
0x1354   :  { %v2143_v29 = vsub.f32 %v2142_v34, %v6463_v43  ;;  %v6732_v34 = vld [vmem:[%s7387_s7 + $0x34] ss:$8 sps:$4 sm:$0xff]  }
0x1355   :  { %v2097_v56 = vpop.permute.xlu0 %2096 }
0x1356   :  { %v2099_v24 = vadd.f32 %v2097_v56, %v6513_v12  ;;  %v2144_v19 = vmul.f32 %v2143_v29, %v6605_v11 }
0x1358   :  { %5150 = vtanh.f32 %v2099_v24  ;;  %v2145_v49 = vadd.f32 %v2144_v19, %v6463_v43  ;;  %v5367_v43 = vld [vmem:[%s7381_s1 + $0x28] sm:$0xff] }
0x1359   :  { %v1171_v63 = vmul.f32 %v5367_v43, %v6151_v58  ;;  %v965_v58 = vmul.f32 %v6480_v10, %v6077_v60  ;;  %5152 = vpow2.f32 %v4577_v39  ;;  %v2566_v60 = vld [vmem:[#allocation8] sm:$0xff]  ;;  %v1768_v55 = vmul.f32 %v5367_v43, %v6431_v6 }
0x135a   :  { %v2148_v18 = vmul.f32 %v2145_v49, %v6605_v11  ;;  %v6660_v54 = vcombine.low %v2566_v60, %v2567_v7  ;;  %v6675_v6 = vld [vmem:[%s7387_s7] ss:$8 sps:$4 sm:$0xff]   ;;  %v6718_v10 = vld [vmem:[%s7387_s7 + $0x24] ss:$8 sps:$4 sm:$0xff]  }
0x135b   :  { %v2198_v49 = vld [vmem:[#allocation9] sm:$0xf] }
0x135c   :  { %2150 = vrot.lane.b32.xlu0 %v2148_v18, %s5555_s24  ;;  %v7412_v18 = vld [vmem:[#allocation19_spill] sm:$0xff] }
0x135d   :  { %v7413_v20 = vsub.s32 2, %v7412_v18  ;;  %v7415_v30 = vsub.s32 0, %v7412_v18 }
0x1360   :  { %1772 = vrot.lane.b32.xlu0 %v1770_v41, %s5555_s24  ;;  %v6778_v41 = vrot.slane %v2198_v49, %v7413_v20 }
0x1362   :  { %v5151_v12 = vpop.eup %5150 }
0x1363   :  { %2102 = vrot.lane.b32.xlu1 %v5151_v12, %s5555_s24  ;;  %v5153_v4 = vpop.eup %5152  ;;  %v7414_v12 = vsub.s32 3, %v7412_v18 }
0x1364   :  { %1173 = vrot.lane.b32.xlu0 %v1171_v63, %s5555_s24  ;;  %v2079_v31 = vadd.f32 1.0, %v5153_v4 }
0x1365   :  { %v6782_v43 = vrot.slane %v2198_v49, %v7414_v12 }
0x1366   :  { %5154 = vrcp.f32 %v2079_v31  ;;  %v7417_v31 = vsub.s32 1, %v7412_v18 }
0x1367   :  { %1379 = vrot.lane.b32.xlu1 %v1377_v47, %s5555_s24 }
0x1368   :  { %760 = vrot.lane.b32.xlu0 %v758_v13, %s5555_s24  ;;  %v2203_v13 = vrot.slane %v2198_v49, %v7415_v30 }
0x136b   :  { %967 = vrot.lane.b32.xlu1 %v965_v58, %s5555_s24 }
0x1370   :  { %v5155_v61 = vpop.eup %5154 }
0x13ce   :  { %v2151_v28 = vpop.permute.xlu0 %2150 }
0x13cf   :  { %2153 = vst.msk [vmem:[#allocation3] sm:$0xff] %vm764_vm1, %v2151_v28  ;;  %v2207_v28 = vrot.slane %v2198_v49, %v7417_v31 }
0x13d2   :  { %v1773_v40 = vpop.permute.xlu0 %1772 }
0x13d3   :  { %1775 = vst.msk [vmem:[#allocation3 + $0x10] sm:$0xff] %vm764_vm1, %v1773_v40 }
0x13d5   :  { %v2103_v17 = vpop.permute.xlu1 %2102 }
0x13d6   :  { %v2105_v16 = vmul.f32 %v5155_v61, %v2103_v17  ;;  %v1174_v37 = vpop.permute.xlu0 %1173  ;;  %v2154_v51 = vld [vmem:[#allocation3] sm:$0xff] }
0x13d7   :  { %1177 = vst.msk [vmem:[#allocation3 + $0x28] sm:$0xff] %vm764_vm1, %v1174_v37  ;;  %v2162_v23 = vpack.c.bf16 %v2155_v33, %v2154_v51 }
0x13d8   :  { %v2106_v22 = vsub.f32 %v2105_v16, %v6484_v44  ;;  %1769 = vst.msk [vmem:[#allocation3 + $0x28] sm:$0xff] %vm291_vm0, %v1768_v55 }
0x13d9   :  { %2413 = vmatmul.mubr.bf16.vlgmr.msra.gmra.mrb[40].mxu0 %v2162_v23  ;;  %2486 = vmatmul.mubr.bf16.vlgmr.msra.gmra.mrb[56].mxu1 %v2162_v23  ;;  %v1380_v53 = vpop.permute.xlu1 %1379 }
0x13da   :  { %v2107_v26 = vmul.f32 %v6665_v15, %v2106_v22  ;;  %1383 = vst.msk [vmem:[#allocation3 + $0x20] sm:$0xff] %vm764_vm1, %v1380_v53  ;;  %v761_v45 = vpop.permute.xlu0 %760  ;;  %2704 = vmatpush1.bf16.msra.mxu1 %v6660_v54  ;;  %2422 = vmatprep.mubr.bf16.mxu0 %v7410_v38  ;;  %v2156_v25 = vld [vmem:[#allocation3 + $0x10] sm:$0xff] }
0x13db   :  { %1573 = vst.msk [vmem:[#allocation3 + $0x20] sm:$0xff] %vm291_vm0, %v1572_v59  ;;  %2495 = vmatprep.mubr.bf16.mxu1 %v7410_v38  ;;  %2705 = vmatprep.subr.bf16.mxu1 %v6668_v46  ;;  %v2163_v36 = vpack.c.bf16 %v2157_v42, %v2156_v25 }
0x13dc   :  { %765 = vst.msk [vmem:[#allocation3 + $0x38] sm:$0xff] %vm764_vm1, %v761_v45  ;;  %v2108_v21 = vadd.f32 %v2107_v26, %v6484_v44  ;;  %2619 = vmatpush1.bf16.msra.mxu0 %v6675_v6  ;;  %v6722_v44 = vld [vmem:[#allocation8 + $0x34] ss:$8 sps:$4 sm:$0xff]  }
0x13dd   :  { %v968_v0 = vpop.permute.xlu1 %967  ;;  %2620 = vmatprep.subr.bf16.mxu0 %v6684_v62 }
0x13de   :  { %v2146_v57 = vmul.f32 %v6665_v15, %v2108_v21  ;;  %971 = vst.msk [vmem:[#allocation3 + $0x30] sm:$0xff] %vm764_vm1, %v968_v0  ;;  %2706 = vmatpush1.bf16.msra.mxu1 %v6690_v48 }
0x13df   :  { %1965 = vst.msk [vmem:[#allocation3 + $0x30] sm:$0xff] %vm291_vm0, %v1964_v9  ;;  %2707 = vmatprep.subr.bf16.mxu1 %v6696_v2  ;;  %v2159_v29 = vld [vmem:[#allocation3 + $0x28] sm:$0xff] }
0x13e0   :  { %2147 = vst.msk [vmem:[#allocation3 + $0x38] sm:$0xff] %vm291_vm0, %v2146_v57  ;;  %2621 = vmatpush1.bf16.msra.mxu0 %v6703_v8 }
0x13e1   :  { %2423 = vmatmul.mubr.bf16.gmra.mrb[44].mxu0 %v2163_v36  ;;  %2496 = vmatmul.mubr.bf16.gmra.mrb[60].mxu1 %v2163_v36 }
0x13e2   :  { %2432 = vmatprep.mubr.bf16.mxu0 %v7410_v38  ;;  %2505 = vmatprep.mubr.bf16.mxu1 %v7410_v38  ;;  %v2158_v32 = vld [vmem:[#allocation3 + $0x20] sm:$0xff] }
0x13e3   :  { %2708 = vmatpush1.bf16.msra.mxu1 %v6713_v27  ;;  %2622 = vmatprep.subr.bf16.mxu0 %v6718_v10  ;;  %v2164_v35 = vpack.c.bf16 %v2159_v29, %v2158_v32 }
0x13e4   :  { %2709 = vmatprep.subr.bf16.mxu1 %v6722_v44  ;;  %2623 = vmatpush1.bf16.msra.mxu0 %v6727_v52 }
0x13e5   :  { %2624 = vmatprep.subr.bf16.mxu0 %v6732_v34 }
0x13e6   :  { %v2160_v56 = vld [vmem:[#allocation3 + $0x30] sm:$0xff] }
0x13e7   :  { %2710 = vmatpush1.bf16.msra.mxu1 %v6738_v3  ;;  %v2161_v24 = vld [vmem:[#allocation3 + $0x38] sm:$0xff] }
0x13e8   :  { %2625 = vmatpush1.bf16.msra.mxu0 %v6745_v14  ;;  %2879 = vmatprep.subr.bf16.mxu1 %v6629_v50  ;;  %v2165_v19 = vpack.c.bf16 %v2161_v24, %v2160_v56 }
0x13e9   :  { %2433 = vmatmul.mubr.bf16.gmra.mrb[48].mxu0 %v2164_v35  ;;  %2506 = vmatmul.mubr.bf16.gmra.mrb[64].mxu1 %v2164_v35 }
0x13ea   :  { %2442 = vmatprep.mubr.bf16.mxu0 %v7410_v38  ;;  %2515 = vmatprep.mubr.bf16.mxu1 %v7410_v38 }
0x13eb   :  { %2830 = vmatprep.subr.bf16.mxu0 %v6652_v1 }
0x13f1   :  { %2443 = vmatmul.mubr.bf16.gmra.mrb[52].mxu0 %v2165_v19  ;;  %2516 = vmatmul.mubr.bf16.gmra.mrb[68].mxu1 %v2165_v19 }
0x13f2   :  { %2650 = vmatprep.mubr.bf16.mxu0 %v7410_v38  ;;  %2735 = vmatprep.mubr.bf16.mxu1 %v7410_v38 }
0x13f9   :  { %2651 = vmatmul.mubr.bf16.vlgmr.msra.gmra.mrb[56].mxu0 %v7410_v38  ;;  %2736 = vmatmul.mubr.bf16.vlgmr.msra.gmra.mrb[72].mxu1 %v7410_v38 }
0x13fa   :  { %2831 = vmatpush1.bf16.msra.mxu0 %v6675_v6  ;;  %2880 = vmatpush1.bf16.msra.mxu1 %v6660_v54 }
0x13fb   :  { %2832 = vmatprep.subr.bf16.mxu0 %v6684_v62  ;;  %2881 = vmatprep.subr.bf16.mxu1 %v6668_v46 }
0x13fc   :  { %2862 = vmatprep.mubr.bf16.mxu0 %v7410_v38  ;;  %2911 = vmatprep.mubr.bf16.mxu1 %v7410_v38 }
0x13fe   :  { %2833 = vmatpush1.bf16.msra.mxu0 %v6703_v8  ;;  %2882 = vmatpush1.bf16.msra.mxu1 %v6690_v48 }
0x13ff   :  { %2834 = vmatprep.subr.bf16.mxu0 %v6718_v10  ;;  %2883 = vmatprep.subr.bf16.mxu1 %v6696_v2 }
0x1402   :  { %2884 = vmatpush1.bf16.msra.mxu1 %v6713_v27  ;;  %2835 = vmatpush1.bf16.msra.mxu0 %v6727_v52 }
0x1403   :  { %2836 = vmatprep.subr.bf16.mxu0 %v6732_v34  ;;  %2885 = vmatprep.subr.bf16.mxu1 %v6722_v44 }
0x1406   :  { %2886 = vmatpush1.bf16.msra.mxu1 %v6738_v3  ;;  %2837 = vmatpush1.bf16.msra.mxu0 %v6745_v14 }
0x1407   :  { %3067 = vmatprep.subr.bf16.mxu1 %v6629_v50  ;;  %3018 = vmatprep.subr.bf16.mxu0 %v6652_v1 }
0x14ac   :  { %v2414_v63 = vpop.f32.mrb[40].mxu0  ;;  %v2487_v47 = vpop.f32.mrb[56].mxu1 }
0x14ad   :  { %v6787_v58 = vadd.f32 %v2487_v47, %v6778_v41  ;;  %v2416_v39 = vpop.f32.mrb[41].mxu0  ;;  %v2489_v4 = vpop.f32.mrb[57].mxu1 }
0x14ae   :  { %v6792_v40 = vadd.f32 %v2489_v4, %v6782_v43  ;;  %v2418_v60 = vpop.f32.mrb[42].mxu0  ;;  %v2491_v7 = vpop.f32.mrb[58].mxu1 }
0x14af   :  { %7416 = vst [vmem:[#allocation20_spill] sm:$0xff] %v6787_v58  ;;  %v6794_v61 = vadd.f32 %v2418_v60, %v2203_v13  ;;  %v6797_v17 = vadd.f32 %v2491_v7, %v6778_v41  ;;  %v2420_v16 = vpop.f32.mrb[43].mxu0  ;;  %v2493_v55 = vpop.f32.mrb[59].mxu1 }
0x14b0   :  { %7418 = vst [vmem:[#allocation19_spill] sm:$0xff] %v6792_v40  ;;  %v6799_v37 = vadd.f32 %v2420_v16, %v2207_v28  ;;  %v6802_v51 = vadd.f32 %v2493_v55, %v6782_v43 }
0x14b1   :  { %7419 = vst [vmem:[#allocation21_spill] sm:$0xff] %v6797_v17 }
0x14b2   :  { %7420 = vst [vmem:[#allocation22_spill] sm:$0xff] %v6802_v51 }
0x14b4   :  { %v2424_v33 = vpop.f32.mrb[44].mxu0  ;;  %v2497_v23 = vpop.f32.mrb[60].mxu1 }
0x14b5   :  { %v6804_v22 = vadd.f32 %v2424_v33, %v2203_v13  ;;  %v6807_v5 = vadd.f32 %v2497_v23, %v6778_v41  ;;  %v2426_v59 = vpop.f32.mrb[45].mxu0  ;;  %v2499_v53 = vpop.f32.mrb[61].mxu1 }
0x14b6   :  { %v6809_v26 = vadd.f32 %v2426_v59, %v2207_v28  ;;  %v6812_v45 = vadd.f32 %v2499_v53, %v6782_v43  ;;  %v2428_v21 = vpop.f32.mrb[46].mxu0  ;;  %v2501_v25 = vpop.f32.mrb[62].mxu1 }
0x14b7   :  { %v6814_v9 = vadd.f32 %v2428_v21, %v2203_v13  ;;  %v6817_v0 = vadd.f32 %v2501_v25, %v6778_v41  ;;  %v2430_v57 = vpop.f32.mrb[47].mxu0  ;;  %v2503_v42 = vpop.f32.mrb[63].mxu1 }
0x14b8   :  { %v6819_v36 = vadd.f32 %v2430_v57, %v2207_v28  ;;  %v6822_v32 = vadd.f32 %v2503_v42, %v6782_v43 }
0x14bc   :  { %v2434_v29 = vpop.f32.mrb[48].mxu0  ;;  %v2507_v35 = vpop.f32.mrb[64].mxu1 }
0x14bd   :  { %v6824_v56 = vadd.f32 %v2434_v29, %v2203_v13  ;;  %v6827_v24 = vadd.f32 %v2507_v35, %v6778_v41  ;;  %v2436_v19 = vpop.f32.mrb[49].mxu0  ;;  %v2509_v49 = vpop.f32.mrb[65].mxu1 }
0x14be   :  { %v6829_v18 = vadd.f32 %v2436_v19, %v2207_v28  ;;  %v6832_v20 = vadd.f32 %v2509_v49, %v6782_v43  ;;  %v2438_v12 = vpop.f32.mrb[50].mxu0  ;;  %v2511_v47 = vpop.f32.mrb[66].mxu1 }
0x14bf   :  { %v6834_v30 = vadd.f32 %v2438_v12, %v2203_v13  ;;  %v6837_v4 = vadd.f32 %v2511_v47, %v6778_v41  ;;  %v2440_v31 = vpop.f32.mrb[51].mxu0  ;;  %v2513_v60 = vpop.f32.mrb[67].mxu1  ;;  %v2415_v47 = vadd.f32 %v2414_v63, %v2203_v13 }
0x14c0   :  { %v6839_v7 = vadd.f32 %v2440_v31, %v2207_v28  ;;  %v6842_v16 = vadd.f32 %v2513_v60, %v6782_v43  ;;  %v2417_v60 = vadd.f32 %v2416_v39, %v2207_v28 }
0x14c2   :  { %7421 = vst [vmem:[#allocation23_spill] sm:$0xff] %v6839_v7 }
0x14c4   :  { %v2444_v55 = vpop.f32.mrb[52].mxu0  ;;  %v2517_v33 = vpop.f32.mrb[68].mxu1 }
0x14c5   :  { %v6844_v23 = vadd.f32 %v2444_v55, %v2203_v13  ;;  %v6847_v59 = vadd.f32 %v2517_v33, %v6778_v41  ;;  %v2446_v53 = vpop.f32.mrb[53].mxu0  ;;  %v2519_v21 = vpop.f32.mrb[69].mxu1 }
0x14c6   :  { %v6849_v25 = vadd.f32 %v2446_v53, %v2207_v28  ;;  %v6852_v57 = vadd.f32 %v2519_v21, %v6782_v43  ;;  %v2448_v42 = vpop.f32.mrb[54].mxu0  ;;  %v2521_v29 = vpop.f32.mrb[70].mxu1 }
0x14c7   :  { %7422 = vst [vmem:[#allocation24_spill] sm:$0xff] %v6844_v23  ;;  %v6854_v35 = vadd.f32 %v2448_v42, %v2203_v13  ;;  %v2450_v19 = vpop.f32.mrb[55].mxu0  ;;  %v2523_v49 = vpop.f32.mrb[71].mxu1  ;;  %v2522_v31 = vadd.f32 %v2521_v29, %v6778_v41 }
0x14c8   :  { %7423 = vst [vmem:[#allocation25_spill] sm:$0xff] %v6849_v25  ;;  %v6856_v12 = vadd.f32 %v2450_v19, %v2207_v28  ;;  %v2524_v55 = vadd.f32 %v2523_v49, %v6782_v43 }
0x14c9   :  { %7424 = vst [vmem:[#allocation26_spill] sm:$0xff] %v6854_v35 }
0x14cc   :  { %v2652_v33 = vpop.f32.mrb[56].mxu0  ;;  %v2737_v53 = vpop.f32.mrb[72].mxu1 }
0x14cd   :  { %v2659_v40 = vadd.f32 %v2652_v33, %v2415_v47  ;;  %v2744_v58 = vadd.f32 %v2737_v53, %v2522_v31  ;;  %v2654_v21 = vpop.f32.mrb[57].mxu0  ;;  %v2739_v25 = vpop.f32.mrb[73].mxu1 }
0x14ce   :  { %v2660_v23 = vadd.f32 %v2654_v21, %v2417_v60  ;;  %v2745_v51 = vadd.f32 %v2739_v25, %v2524_v55  ;;  %v2741_v42 = vpop.f32.mrb[74].mxu1  ;;  %v2656_v35 = vpop.f32.mrb[58].mxu0 }
0x14cf   :  { %v2742_v17 = vpop.f32.mrb[75].mxu1  ;;  %v2657_v7 = vpop.f32.mrb[59].mxu0  ;;  %v4629_v43 = vmul.f32 -1.442695, %v2659_v40  ;;  %v4631_v13 = vmul.f32 -1.442695, %v2744_v58 }
0x14d0   :  { %5156 = vtanh.f32 %v2660_v23  ;;  %v4630_v42 = vmul.f32 -1.442695, %v2660_v23 }
0x14d1   :  { %5158 = vtanh.f32 %v2745_v51 }
0x14d2   :  { %5160 = vpow2.f32 %v4629_v43 }
0x14d3   :  { %5162 = vpow2.f32 %v4631_v13 }
0x14da   :  { %v5157_v63 = vpop.eup %5156 }
0x14db   :  { %2761 = vrot.lane.b32.xlu1 %v5157_v63, %s5555_s24  ;;  %v5159_v41 = vpop.eup %5158  ;;  %v4632_v63 = vmul.f32 -1.442695, %v2745_v51 }
0x14dc   :  { %2799 = vrot.lane.b32.xlu0 %v5159_v41, %s5555_s24  ;;  %v5161_v39 = vpop.eup %5160 }
0x14dd   :  { %v2752_v28 = vadd.f32 1.0, %v5161_v39  ;;  %v5163_v29 = vpop.eup %5162 }
0x14de   :  { %v2790_v25 = vadd.f32 1.0, %v5163_v29 }
0x14df   :  { %5164 = vrcp.f32 %v2752_v28 }
0x14e0   :  { %5166 = vrcp.f32 %v2790_v25 }
0x14e9   :  { %v5165_v17 = vpop.eup %5164 }
0x14ea   :  { %v5167_v19 = vpop.eup %5166  ;;  %v2759_v40 = vmul.f32 0.0, %v5165_v17 }
0x14eb   :  { %v2797_v60 = vmul.f32 0.0, %v5167_v19 }
0x154d   :  { %v2762_v7 = vpop.permute.xlu1 %2761 }
0x154e   :  { %v2764_v35 = vmul.f32 %v5165_v17, %v2762_v7  ;;  %v2800_v49 = vpop.permute.xlu0 %2799 }
0x154f   :  { %v2802_v47 = vmul.f32 %v5167_v19, %v2800_v49 }
0x1550   :  { %2766 = vrot.lane.b32.xlu1 %v2764_v35, %s5555_s24 }
0x1551   :  { %2804 = vrot.lane.b32.xlu0 %v2802_v47, %s5555_s24 }
0x15c2   :  { %v2767_v31 = vpop.permute.xlu1 %2766 }
0x15c3   :  { %v2769_v58 = vadd.f32 %v2767_v31, %v2759_v40  ;;  %v2805_v55 = vpop.permute.xlu0 %2804 }
0x15c4   :  { %v2807_v33 = vadd.f32 %v2805_v55, %v2797_v60 }
0x15c5   :  { %5168 = vtanh.f32 %v2769_v58 }
0x15c6   :  { %5170 = vtanh.f32 %v2807_v33 }
0x15c7   :  { %5172 = vpow2.f32 %v4630_v42 }
0x15c8   :  { %5174 = vpow2.f32 %v4632_v63 }
0x15cf   :  { %v5169_v53 = vpop.eup %5168 }
0x15d0   :  { %2772 = vrot.lane.b32.xlu1 %v5169_v53, %s5555_s24  ;;  %v5171_v21 = vpop.eup %5170 }
0x15d1   :  { %2810 = vrot.lane.b32.xlu0 %v5171_v21, %s5555_s24  ;;  %v5173_v41 = vpop.eup %5172 }
0x15d2   :  { %v2753_v43 = vadd.f32 1.0, %v5173_v41  ;;  %v5175_v13 = vpop.eup %5174 }
0x15d3   :  { %v2791_v39 = vadd.f32 1.0, %v5175_v13 }
0x15d4   :  { %5176 = vrcp.f32 %v2753_v43 }
0x15d5   :  { %2815 = vrot.lane.b32.xlu0 %v2807_v33, %s5555_s24  ;;  %5178 = vrcp.f32 %v2791_v39 }
0x15d9   :  { %2777 = vrot.lane.b32.xlu0 %v2769_v58, %s5555_s24 }
0x15de   :  { %v5177_v28 = vpop.eup %5176 }
0x15df   :  { %v5179_v7 = vpop.eup %5178 }
0x1642   :  { %v2773_v29 = vpop.permute.xlu1 %2772 }
0x1643   :  { %v2775_v25 = vmul.f32 %v5177_v28, %v2773_v29  ;;  %v2811_v35 = vpop.permute.xlu0 %2810 }
0x1644   :  { %v2813_v19 = vmul.f32 %v5179_v7, %v2811_v35 }
0x1645   :  { %v6869_v17 = vmul.f32 %v2775_v25, %v6605_v11 }
0x1646   :  { %v6875_v51 = vmul.f32 %v6665_v15, %v2813_v19 }
0x1647   :  { %v2826_v23 = vpack.c.bf16 %v6869_v17, %v6869_v17  ;;  %v2816_v49 = vpop.permute.xlu0 %2815 }
0x1648   :  { %v2875_v47 = vpack.c.bf16 %v6875_v51, %v6875_v51  ;;  %v6883_v40 = vmul.f32 %v6665_v15, %v2816_v49 }
0x1649   :  { %4635 = vmatmul.mubr.msk.bf16.vlgmr.msra.gmra.mrb[60].mxu0 %vm291_vm0, %v2826_v23 }
0x164a   :  { %3019 = vmatpush1.bf16.msra.mxu0 %v6675_v6  ;;  %3050 = vmatprep.mubr.bf16.mxu0 %v7410_v38 }
0x164b   :  { %3020 = vmatprep.subr.bf16.mxu0 %v6684_v62  ;;  %4636 = vmatmul.mubr.msk.bf16.vlgmr.msra.gmra.mrb[76].mxu1 %vm291_vm0, %v2875_v47  ;;  %v2778_v31 = vpop.permute.xlu0 %2777 }
0x164c   :  { %2980 = vrot.lane.b32.xlu0 %v6883_v40, %s5555_s24  ;;  %3068 = vmatpush1.bf16.msra.mxu1 %v6660_v54  ;;  %v6891_v58 = vmul.f32 %v2778_v31, %v6605_v11 }
0x164d   :  { %3069 = vmatprep.subr.bf16.mxu1 %v6668_v46  ;;  %3099 = vmatprep.mubr.bf16.mxu1 %v7410_v38 }
0x164e   :  { %3021 = vmatpush1.bf16.msra.mxu0 %v6703_v8 }
0x164f   :  { %3022 = vmatprep.subr.bf16.mxu0 %v6718_v10 }
0x1650   :  { %2936 = vrot.lane.b32.xlu0 %v6891_v58, %s5555_s24  ;;  %3070 = vmatpush1.bf16.msra.mxu1 %v6690_v48 }
0x1651   :  { %3071 = vmatprep.subr.bf16.mxu1 %v6696_v2 }
0x1652   :  { %3023 = vmatpush1.bf16.msra.mxu0 %v6727_v52 }
0x1653   :  { %3024 = vmatprep.subr.bf16.mxu0 %v6732_v34 }
0x1654   :  { %3072 = vmatpush1.bf16.msra.mxu1 %v6713_v27 }
0x1655   :  { %3073 = vmatprep.subr.bf16.mxu1 %v6722_v44 }
0x1656   :  { %3025 = vmatpush1.bf16.msra.mxu0 %v6745_v14 }
0x1657   :  { %3206 = vmatprep.subr.bf16.mxu0 %v6652_v1 }
0x1658   :  { %3074 = vmatpush1.bf16.msra.mxu1 %v6738_v3 }
0x1659   :  { %3255 = vmatprep.subr.bf16.mxu1 %v6629_v50 }
0x16be   :  { %v2981_v31 = vpop.permute.xlu0 %2980 }
0x171c   :  { %v2864_v11 = vpop.f32.mrb[60].mxu0 }
0x171d   :  { %v2871_v15 = vadd.f32 %v2864_v11, %v6794_v61  ;;  %v2866_v60 = vpop.f32.mrb[61].mxu0 }
0x171e   :  { %v2872_v55 = vadd.f32 %v2866_v60, %v6799_v37  ;;  %v2868_v33 = vpop.f32.mrb[62].mxu0  ;;  %v2913_v21 = vpop.f32.mrb[76].mxu1 }
0x171f   :  { %v2869_v53 = vpop.f32.mrb[63].mxu0  ;;  %v2920_v42 = vadd.f32 %v2913_v21, %v6847_v59  ;;  %v2915_v63 = vpop.f32.mrb[77].mxu1  ;;  %v4637_v37 = vmul.f32 -1.442695, %v2871_v15 }
0x1720   :  { %v2921_v41 = vadd.f32 %v2915_v63, %v6852_v57  ;;  %v2917_v43 = vpop.f32.mrb[78].mxu1  ;;  %v2937_v33 = vpop.permute.xlu0 %2936 }
0x1721   :  { %v2918_v13 = vpop.f32.mrb[79].mxu1  ;;  %v4639_v61 = vmul.f32 -1.442695, %v2920_v42 }
0x1722   :  { %5180 = vtanh.f32 %v2921_v41 }
0x1723   :  { %5182 = vtanh.f32 %v2872_v55 }
0x1724   :  { %5184 = vpow2.f32 %v4639_v61  ;;  %v4638_v61 = vmul.f32 -1.442695, %v2872_v55 }
0x1725   :  { %5186 = vpow2.f32 %v4637_v37 }
0x172c   :  { %v5181_v39 = vpop.eup %5180 }
0x172d   :  { %2985 = vrot.lane.b32.xlu1 %v5181_v39, %s5555_s24  ;;  %v5183_v28 = vpop.eup %5182 }
0x172e   :  { %v5185_v29 = vpop.eup %5184 }
0x172f   :  { %v2972_v25 = vadd.f32 1.0, %v5185_v29  ;;  %v5187_v59 = vpop.eup %5186 }
0x1730   :  { %v2928_v7 = vadd.f32 1.0, %v5187_v59 }
0x1731   :  { %2941 = vrot.lane.b32.xlu1 %v5183_v28, %s5555_s24  ;;  %5188 = vrcp.f32 %v2972_v25  ;;  %v4640_v28 = vmul.f32 -1.442695, %v2921_v41 }
0x1732   :  { %5190 = vrcp.f32 %v2928_v7 }
0x173b   :  { %v5189_v57 = vpop.eup %5188 }
0x173c   :  { %v5191_v19 = vpop.eup %5190  ;;  %v2983_v11 = vmul.f32 %v5189_v57, %v2981_v31 }
0x173d   :  { %v2939_v53 = vmul.f32 %v5191_v19, %v2937_v33 }
0x179f   :  { %v2986_v35 = vpop.permute.xlu1 %2985 }
0x17a0   :  { %v2988_v23 = vmul.f32 %v5189_v57, %v2986_v35 }
0x17a2   :  { %2990 = vrot.lane.b32.xlu1 %v2988_v23, %s5555_s24  ;;  %v4634_v23 = vld [vmem:[%s7381_s1 + $0x30] sm:$0xff] }
0x17a3   :  { %v2942_v49 = vpop.permute.xlu1 %2941 }
0x17a4   :  { %v2944_v47 = vmul.f32 %v5191_v19, %v2942_v49 }
0x17a6   :  { %2946 = vrot.lane.b32.xlu1 %v2944_v47, %s5555_s24 }
0x1814   :  { %v2991_v15 = vpop.permute.xlu1 %2990 }
0x1815   :  { %v2993_v60 = vadd.f32 %v2991_v15, %v2983_v11  ;;  %v4633_v15 = vld [vmem:[%s7381_s1 + $0x8] sm:$0xff] }
0x1817   :  { %5192 = vtanh.f32 %v2993_v60  ;;  %v3000_v43 = vsub.f32 %v2993_v60, %v2981_v31 }
0x1818   :  { %v2947_v21 = vpop.permute.xlu1 %2946 }
0x1819   :  { %v2949_v42 = vadd.f32 %v2947_v21, %v2939_v53 }
0x181b   :  { %5194 = vtanh.f32 %v2949_v42  ;;  %v2956_v39 = vsub.f32 %v2949_v42, %v2937_v33 }
0x181c   :  { %5196 = vpow2.f32 %v4640_v28 }
0x181d   :  { %5198 = vpow2.f32 %v4638_v61 }
0x1821   :  { %v5193_v63 = vpop.eup %5192 }
0x1822   :  { %2996 = vrot.lane.b32.xlu0 %v5193_v63, %s5555_s24 }
0x1825   :  { %v5195_v13 = vpop.eup %5194 }
0x1826   :  { %3002 = vrot.lane.b32.xlu0 %v3000_v43, %s5555_s24  ;;  %2952 = vrot.lane.b32.xlu1 %v5195_v13, %s5555_s24  ;;  %v5197_v37 = vpop.eup %5196 }
0x1827   :  { %v2973_v29 = vadd.f32 1.0, %v5197_v37  ;;  %v5199_v25 = vpop.eup %5198 }
0x1828   :  { %v2929_v59 = vadd.f32 1.0, %v5199_v25 }
0x1829   :  { %5200 = vrcp.f32 %v2973_v29 }
0x182a   :  { %2958 = vrot.lane.b32.xlu0 %v2956_v39, %s5555_s24  ;;  %5202 = vrcp.f32 %v2929_v59 }
0x1833   :  { %v5201_v7 = vpop.eup %5200 }
0x1834   :  { %v5203_v49 = vpop.eup %5202 }
0x1894   :  { %v2997_v57 = vpop.permute.xlu0 %2996 }
0x1895   :  { %v2999_v35 = vmul.f32 %v5201_v7, %v2997_v57 }
0x1897   :  { %v3007_v19 = vsub.f32 %v2999_v35, %v6875_v51 }
0x1898   :  { %v3003_v41 = vpop.permute.xlu0 %3002  ;;  %v2953_v55 = vpop.permute.xlu1 %2952 }
0x1899   :  { %v3008_v47 = vmul.f32 %v4634_v23, %v3007_v19  ;;  %v3005_v31 = vmul.f32 %v4634_v23, %v3003_v41  ;;  %v2955_v11 = vmul.f32 %v5203_v49, %v2953_v55 }
0x189b   :  { %v6928_v60 = vadd.f32 %v3008_v47, %v6875_v51  ;;  %v6931_v33 = vadd.f32 %v3005_v31, %v6883_v40  ;;  %v2963_v53 = vsub.f32 %v2955_v11, %v6869_v17 }
0x189c   :  { %v2959_v21 = vpop.permute.xlu0 %2958 }
0x189d   :  { %v3063_v42 = vpack.c.bf16 %v6928_v60, %v6928_v60  ;;  %v2964_v63 = vmul.f32 %v4633_v15, %v2963_v53  ;;  %v2961_v43 = vmul.f32 %v4633_v15, %v2959_v21  ;;  %3168 = vrot.lane.b32.xlu0 %v6931_v33, %s5555_s24 }
0x189f   :  { %v6939_v13 = vadd.f32 %v2964_v63, %v6869_v17  ;;  %v6942_v51 = vadd.f32 %v2961_v43, %v6891_v58  ;;  %4644 = vmatmul.mubr.msk.bf16.vlgmr.msra.gmra.mrb[80].mxu1 %vm291_vm0, %v3063_v42 }
0x18a0   :  { %3256 = vmatpush1.bf16.msra.mxu1 %v6660_v54  ;;  %3287 = vmatprep.mubr.bf16.mxu1 %v7410_v38 }
0x18a1   :  { %v3014_v40 = vpack.c.bf16 %v6939_v13, %v6939_v13  ;;  %3124 = vrot.lane.b32.xlu0 %v6942_v51, %s5555_s24  ;;  %3257 = vmatprep.subr.bf16.mxu1 %v6668_v46 }
0x18a3   :  { %4643 = vmatmul.mubr.msk.bf16.vlgmr.msra.gmra.mrb[64].mxu0 %vm291_vm0, %v3014_v40 }
0x18a4   :  { %3207 = vmatpush1.bf16.msra.mxu0 %v6675_v6  ;;  %3258 = vmatpush1.bf16.msra.mxu1 %v6690_v48 }
0x18a5   :  { %3208 = vmatprep.subr.bf16.mxu0 %v6684_v62  ;;  %3259 = vmatprep.subr.bf16.mxu1 %v6696_v2 }
0x18a6   :  { %3238 = vmatprep.mubr.bf16.mxu0 %v7410_v38 }
0x18a8   :  { %3209 = vmatpush1.bf16.msra.mxu0 %v6703_v8  ;;  %3260 = vmatpush1.bf16.msra.mxu1 %v6713_v27 }
0x18a9   :  { %3210 = vmatprep.subr.bf16.mxu0 %v6718_v10  ;;  %3261 = vmatprep.subr.bf16.mxu1 %v6722_v44 }
0x18ac   :  { %3211 = vmatpush1.bf16.msra.mxu0 %v6727_v52  ;;  %3262 = vmatpush1.bf16.msra.mxu1 %v6738_v3 }
0x18ad   :  { %3212 = vmatprep.subr.bf16.mxu0 %v6732_v34  ;;  %3441 = vmatprep.subr.bf16.mxu1 %v6629_v50 }
0x18b0   :  { %3213 = vmatpush1.bf16.msra.mxu0 %v6745_v14 }
0x18b1   :  { %3392 = vmatprep.subr.bf16.mxu0 %v6652_v1 }
0x190f   :  { %v3169_v21 = vpop.permute.xlu0 %3168 }
0x1913   :  { %v3125_v40 = vpop.permute.xlu0 %3124 }
0x1972   :  { %v3101_v17 = vpop.f32.mrb[80].mxu1 }
0x1973   :  { %v3108_v58 = vadd.f32 %v3101_v17, %v6837_v4  ;;  %v3103_v39 = vpop.f32.mrb[81].mxu1 }
0x1974   :  { %v3109_v28 = vadd.f32 %v3103_v39, %v6842_v16  ;;  %v3105_v61 = vpop.f32.mrb[82].mxu1 }
0x1975   :  { %v3106_v37 = vpop.f32.mrb[83].mxu1  ;;  %v4647_v4 = vmul.f32 -1.442695, %v3108_v58 }
0x1976   :  { %5204 = vtanh.f32 %v3109_v28  ;;  %v3052_v29 = vpop.f32.mrb[64].mxu0 }
0x1977   :  { %v3059_v25 = vadd.f32 %v3052_v29, %v6804_v22  ;;  %v3054_v59 = vpop.f32.mrb[65].mxu0 }
0x1978   :  { %v3060_v7 = vadd.f32 %v3054_v59, %v6809_v26  ;;  %v3056_v57 = vpop.f32.mrb[66].mxu0  ;;  %v4648_v59 = vmul.f32 -1.442695, %v3109_v28 }
0x1979   :  { %v3057_v35 = vpop.f32.mrb[67].mxu0  ;;  %v4645_v16 = vmul.f32 -1.442695, %v3059_v25 }
0x197a   :  { %5206 = vtanh.f32 %v3060_v7  ;;  %v4646_v57 = vmul.f32 -1.442695, %v3060_v7 }
0x197b   :  { %5208 = vpow2.f32 %v4647_v4 }
0x197c   :  { %5210 = vpow2.f32 %v4645_v16 }
0x1980   :  { %v5205_v23 = vpop.eup %5204 }
0x1981   :  { %3173 = vrot.lane.b32.xlu1 %v5205_v23, %s5555_s24 }
0x1984   :  { %v5207_v19 = vpop.eup %5206 }
0x1985   :  { %3129 = vrot.lane.b32.xlu1 %v5207_v19, %s5555_s24  ;;  %v5209_v49 = vpop.eup %5208 }
0x1986   :  { %v3160_v41 = vadd.f32 1.0, %v5209_v49  ;;  %v5211_v55 = vpop.eup %5210 }
0x1987   :  { %v3116_v22 = vadd.f32 1.0, %v5211_v55  ;;  %v6983_v55 = vld [vmem:[%s7381_s1 + $0x28] sm:$0xff] }
0x1988   :  { %5212 = vrcp.f32 %v3160_v41 }
0x1989   :  { %5214 = vrcp.f32 %v3116_v22 }
0x1992   :  { %v5213_v26 = vpop.eup %5212 }
0x1993   :  { %v5215_v11 = vpop.eup %5214  ;;  %v3171_v42 = vmul.f32 %v5213_v26, %v3169_v21 }
0x1994   :  { %v3127_v17 = vmul.f32 %v5215_v11, %v3125_v40 }
0x19f3   :  { %v3174_v47 = vpop.permute.xlu1 %3173 }
0x19f4   :  { %v3176_v31 = vmul.f32 %v5213_v26, %v3174_v47 }
0x19f6   :  { %3178 = vrot.lane.b32.xlu1 %v3176_v31, %s5555_s24 }
0x19f7   :  { %v3130_v15 = vpop.permute.xlu1 %3129 }
0x19f8   :  { %v3132_v53 = vmul.f32 %v5215_v11, %v3130_v15  ;;  %v6991_v15 = vld [vmem:[%s7381_s1 + $0x10] sm:$0xff] }
0x19fa   :  { %3134 = vrot.lane.b32.xlu1 %v3132_v53, %s5555_s24 }
0x1a68   :  { %v3179_v63 = vpop.permute.xlu1 %3178 }
0x1a69   :  { %v3181_v43 = vadd.f32 %v3179_v63, %v3171_v42 }
0x1a6b   :  { %5216 = vtanh.f32 %v3181_v43  ;;  %v3188_v37 = vsub.f32 %v3181_v43, %v3169_v21 }
0x1a6c   :  { %v3135_v58 = vpop.permute.xlu1 %3134 }
0x1a6d   :  { %v3137_v39 = vadd.f32 %v3135_v58, %v3127_v17 }
0x1a6f   :  { %5218 = vtanh.f32 %v3137_v39  ;;  %v3144_v25 = vsub.f32 %v3137_v39, %v3125_v40 }
0x1a70   :  { %5220 = vpow2.f32 %v4648_v59 }
0x1a71   :  { %5222 = vpow2.f32 %v4646_v57 }
0x1a75   :  { %v5217_v61 = vpop.eup %5216 }
0x1a76   :  { %3184 = vrot.lane.b32.xlu0 %v5217_v61, %s5555_s24 }
0x1a79   :  { %v5219_v29 = vpop.eup %5218 }
0x1a7a   :  { %3190 = vrot.lane.b32.xlu0 %v3188_v37, %s5555_s24  ;;  %3140 = vrot.lane.b32.xlu1 %v5219_v29, %s5555_s24  ;;  %v5221_v35 = vpop.eup %5220 }
0x1a7b   :  { %v3161_v23 = vadd.f32 1.0, %v5221_v35  ;;  %v5223_v19 = vpop.eup %5222 }
0x1a7c   :  { %v3117_v4 = vadd.f32 1.0, %v5223_v19 }
0x1a7d   :  { %5224 = vrcp.f32 %v3161_v23 }
0x1a7e   :  { %3146 = vrot.lane.b32.xlu0 %v3144_v25, %s5555_s24  ;;  %5226 = vrcp.f32 %v3117_v4 }
0x1a87   :  { %v5225_v16 = vpop.eup %5224 }
0x1a88   :  { %v5227_v28 = vpop.eup %5226 }
0x1ae8   :  { %v3185_v49 = vpop.permute.xlu0 %3184 }
0x1ae9   :  { %v3187_v41 = vmul.f32 %v5225_v16, %v3185_v49 }
0x1aeb   :  { %v3195_v22 = vsub.f32 %v3187_v41, %v6928_v60 }
0x1aec   :  { %v3191_v26 = vpop.permute.xlu0 %3190  ;;  %v3141_v7 = vpop.permute.xlu1 %3140 }
0x1aed   :  { %v3196_v47 = vmul.f32 %v6983_v55, %v3195_v22  ;;  %v3193_v31 = vmul.f32 %v6983_v55, %v3191_v26  ;;  %v3143_v11 = vmul.f32 %v5227_v28, %v3141_v7 }
0x1aef   :  { %v6994_v53 = vadd.f32 %v3196_v47, %v6928_v60  ;;  %v6997_v21 = vadd.f32 %v3193_v31, %v6931_v33  ;;  %v3151_v42 = vsub.f32 %v3143_v11, %v6939_v13 }
0x1af0   :  { %v3147_v63 = vpop.permute.xlu0 %3146 }
0x1af1   :  { %v3251_v43 = vpack.c.bf16 %v6994_v53, %v6994_v53  ;;  %v3152_v40 = vmul.f32 %v6991_v15, %v3151_v42  ;;  %v3149_v17 = vmul.f32 %v6991_v15, %v3147_v63  ;;  %3356 = vrot.lane.b32.xlu0 %v6997_v21, %s5555_s24 }
0x1af3   :  { %v7007_v58 = vadd.f32 %v3152_v40, %v6939_v13  ;;  %v7010_v60 = vadd.f32 %v3149_v17, %v6942_v51  ;;  %4652 = vmatmul.mubr.msk.bf16.vlgmr.msra.gmra.mrb[84].mxu1 %vm291_vm0, %v3251_v43 }
0x1af4   :  { %3442 = vmatpush1.bf16.msra.mxu1 %v6660_v54  ;;  %3473 = vmatprep.mubr.bf16.mxu1 %v7410_v38 }
0x1af5   :  { %v3202_v33 = vpack.c.bf16 %v7007_v58, %v7007_v58  ;;  %3312 = vrot.lane.b32.xlu0 %v7010_v60, %s5555_s24  ;;  %3443 = vmatprep.subr.bf16.mxu1 %v6668_v46 }
0x1af7   :  { %4651 = vmatmul.mubr.msk.bf16.vlgmr.msra.gmra.mrb[68].mxu0 %vm291_vm0, %v3202_v33  ;;  %v7051_v33 = vld [vmem:[%s7381_s1 + $0x20] sm:$0xff] }
0x1af8   :  { %3393 = vmatpush1.bf16.msra.mxu0 %v6675_v6  ;;  %3444 = vmatpush1.bf16.msra.mxu1 %v6690_v48 }
0x1af9   :  { %3394 = vmatprep.subr.bf16.mxu0 %v6684_v62  ;;  %3445 = vmatprep.subr.bf16.mxu1 %v6696_v2 }
0x1afa   :  { %3424 = vmatprep.mubr.bf16.mxu0 %v7410_v38 }
0x1afc   :  { %3395 = vmatpush1.bf16.msra.mxu0 %v6703_v8  ;;  %3446 = vmatpush1.bf16.msra.mxu1 %v6713_v27 }
0x1afd   :  { %3396 = vmatprep.subr.bf16.mxu0 %v6718_v10  ;;  %3447 = vmatprep.subr.bf16.mxu1 %v6722_v44 }
0x1b00   :  { %3397 = vmatpush1.bf16.msra.mxu0 %v6727_v52  ;;  %3448 = vmatpush1.bf16.msra.mxu1 %v6738_v3 }
0x1b01   :  { %3398 = vmatprep.subr.bf16.mxu0 %v6732_v34  ;;  %3627 = vmatprep.subr.bf16.mxu1 %v6629_v50 }
0x1b04   :  { %3399 = vmatpush1.bf16.msra.mxu0 %v6745_v14 }
0x1b05   :  { %3578 = vmatprep.subr.bf16.mxu0 %v6652_v1 }
0x1b63   :  { %v3357_v59 = vpop.permute.xlu0 %3356 }
0x1b67   :  { %v3313_v19 = vpop.permute.xlu0 %3312 }
0x1bc6   :  { %v3289_v46 = vpop.f32.mrb[84].mxu1 }
0x1bc7   :  { %v3296_v6 = vadd.f32 %v3289_v46, %v6827_v24  ;;  %v3291_v62 = vpop.f32.mrb[85].mxu1 }
0x1bc8   :  { %v3297_v48 = vadd.f32 %v3291_v62, %v6832_v20  ;;  %v3293_v2 = vpop.f32.mrb[86].mxu1 }
0x1bc9   :  { %v3294_v8 = vpop.f32.mrb[87].mxu1  ;;  %v4655_v14 = vmul.f32 -1.442695, %v3296_v6 }
0x1bca   :  { %5228 = vtanh.f32 %v3297_v48  ;;  %v3240_v27 = vpop.f32.mrb[68].mxu0  ;;  %v4656_v7 = vmul.f32 -1.442695, %v3297_v48 }
0x1bcb   :  { %v3247_v10 = vadd.f32 %v3240_v27, %v6814_v9  ;;  %v3242_v44 = vpop.f32.mrb[69].mxu0 }
0x1bcc   :  { %v3248_v52 = vadd.f32 %v3242_v44, %v6819_v36  ;;  %v3244_v50 = vpop.f32.mrb[70].mxu0 }
0x1bcd   :  { %v3245_v34 = vpop.f32.mrb[71].mxu0  ;;  %v4653_v24 = vmul.f32 -1.442695, %v3247_v10  ;;  %v7059_v10 = vld [vmem:[%s7381_s1 + $0x18] sm:$0xff] }
0x1bce   :  { %5230 = vtanh.f32 %v3248_v52  ;;  %v4654_v47 = vmul.f32 -1.442695, %v3248_v52 }
0x1bcf   :  { %5232 = vpow2.f32 %v4655_v14 }
0x1bd0   :  { %5234 = vpow2.f32 %v4653_v24 }
0x1bd4   :  { %v5229_v3 = vpop.eup %5228 }
0x1bd5   :  { %3361 = vrot.lane.b32.xlu1 %v5229_v3, %s5555_s24 }
0x1bd8   :  { %v5231_v1 = vpop.eup %5230 }
0x1bd9   :  { %3317 = vrot.lane.b32.xlu1 %v5231_v1, %s5555_s24  ;;  %v5233_v20 = vpop.eup %5232 }
0x1bda   :  { %v3348_v13 = vadd.f32 1.0, %v5233_v20  ;;  %v5235_v51 = vpop.eup %5234  ;;  %v7087_v20 = vld [vmem:[#allocation8 + $0x14] ss:$8 sps:$4 sm:$0xff]  }
0x1bdb   :  { %v3304_v9 = vadd.f32 1.0, %v5235_v51  ;;  %v7106_v51 = vld [vmem:[#allocation8 + $0x24] ss:$8 sps:$4 sm:$0xff]  }
0x1bdc   :  { %5236 = vrcp.f32 %v3348_v13  ;;  %v7103_v13 = vld [vmem:[%s7387_s7 + $0x14] ss:$8 sps:$4 sm:$0xff]  }
0x1bdd   :  { %5238 = vrcp.f32 %v3304_v9  ;;  %v7113_v9 = vld [vmem:[%s7387_s7 + $0x10] ss:$8 sps:$4 sm:$0xff]  }
0x1be6   :  { %v5237_v36 = vpop.eup %5236 }
0x1be7   :  { %v5239_v37 = vpop.eup %5238  ;;  %v3359_v57 = vmul.f32 %v5237_v36, %v3357_v59 }
0x1be8   :  { %v3315_v4 = vmul.f32 %v5239_v37, %v3313_v19 }
0x1c47   :  { %v3362_v39 = vpop.permute.xlu1 %3361 }
0x1c48   :  { %v3364_v61 = vmul.f32 %v5237_v36, %v3362_v39  ;;  %v7116_v36 = vld [vmem:[#allocation8 + $0x20] ss:$8 sps:$4 sm:$0xff]  }
0x1c49   :  { %v7122_v39 = vld [vmem:[%s7387_s7 + $0x24] ss:$8 sps:$4 sm:$0xff]  }
0x1c4a   :  { %3366 = vrot.lane.b32.xlu1 %v3364_v61, %s5555_s24  ;;  %v7125_v61 = vld [vmem:[#allocation8 + $0x34] ss:$8 sps:$4 sm:$0xff]  }
0x1c4b   :  { %v3318_v29 = vpop.permute.xlu1 %3317 }
0x1c4c   :  { %v3320_v25 = vmul.f32 %v5239_v37, %v3318_v29  ;;  %v7131_v37 = vld [vmem:[%s7387_s7 + $0x20] ss:$8 sps:$4 sm:$0xff]   ;;  %v7134_v29 = vld [vmem:[#allocation8 + $0x30] ss:$8 sps:$4 sm:$0xff]  }
0x1c4e   :  { %3322 = vrot.lane.b32.xlu1 %v3320_v25, %s5555_s24  ;;  %v7140_v25 = vld [vmem:[%s7387_s7 + $0x34] ss:$8 sps:$4 sm:$0xff]  }
0x1cbc   :  { %v3367_v35 = vpop.permute.xlu1 %3366 }
0x1cbd   :  { %v3369_v23 = vadd.f32 %v3367_v35, %v3359_v57  ;;  %v7149_v57 = vld [vmem:[%s7387_s7 + $0x30] ss:$8 sps:$4 sm:$0xff]   ;;  %v7155_v35 = vld [vmem:[%s7387_s7 + $0x4] ss:$8 sps:$4 sm:$0xff]  }
0x1cbf   :  { %5240 = vtanh.f32 %v3369_v23  ;;  %v3376_v22 = vsub.f32 %v3369_v23, %v3357_v59  ;;  %v7143_v59 = vld [vmem:[#allocation8 + $0x4] ss:$8 sps:$4 sm:$0xff]  }
0x1cc0   :  { %v3323_v16 = vpop.permute.xlu1 %3322 }
0x1cc1   :  { %v3325_v49 = vadd.f32 %v3323_v16, %v3315_v4 }
0x1cc3   :  { %5242 = vtanh.f32 %v3325_v49  ;;  %v3332_v26 = vsub.f32 %v3325_v49, %v3313_v19 }
0x1cc4   :  { %5244 = vpow2.f32 %v4656_v7 }
0x1cc5   :  { %5246 = vpow2.f32 %v4654_v47 }
0x1cc9   :  { %v5241_v41 = vpop.eup %5240 }
0x1cca   :  { %3372 = vrot.lane.b32.xlu0 %v5241_v41, %s5555_s24 }
0x1ccd   :  { %v5243_v28 = vpop.eup %5242 }
0x1cce   :  { %3378 = vrot.lane.b32.xlu0 %v3376_v22, %s5555_s24  ;;  %3328 = vrot.lane.b32.xlu1 %v5243_v28, %s5555_s24  ;;  %v5245_v31 = vpop.eup %5244 }
0x1ccf   :  { %v3349_v11 = vadd.f32 1.0, %v5245_v31  ;;  %v5247_v42 = vpop.eup %5246 }
0x1cd0   :  { %v3305_v63 = vadd.f32 1.0, %v5247_v42 }
0x1cd1   :  { %5248 = vrcp.f32 %v3349_v11 }
0x1cd2   :  { %3334 = vrot.lane.b32.xlu0 %v3332_v26, %s5555_s24  ;;  %5250 = vrcp.f32 %v3305_v63 }
0x1cdb   :  { %v5249_v43 = vpop.eup %5248 }
0x1cdc   :  { %v5251_v6 = vpop.eup %5250 }
0x1d3c   :  { %v3373_v40 = vpop.permute.xlu0 %3372 }
0x1d3d   :  { %v3375_v17 = vmul.f32 %v5249_v43, %v3373_v40 }
0x1d3f   :  { %v3383_v46 = vsub.f32 %v3375_v17, %v6994_v53 }
0x1d40   :  { %v3379_v62 = vpop.permute.xlu0 %3378  ;;  %v3329_v48 = vpop.permute.xlu1 %3328 }
0x1d41   :  { %v3384_v2 = vmul.f32 %v7051_v33, %v3383_v46  ;;  %v3381_v8 = vmul.f32 %v7051_v33, %v3379_v62  ;;  %v3331_v27 = vmul.f32 %v5251_v6, %v3329_v48 }
0x1d43   :  { %v7062_v44 = vadd.f32 %v3384_v2, %v6994_v53  ;;  %v7065_v52 = vadd.f32 %v3381_v8, %v6997_v21  ;;  %v3339_v50 = vsub.f32 %v3331_v27, %v7007_v58 }
0x1d44   :  { %v3335_v34 = vpop.permute.xlu0 %3334 }
0x1d45   :  { %v3437_v3 = vpack.c.bf16 %v7062_v44, %v7062_v44  ;;  %v3340_v1 = vmul.f32 %v7059_v10, %v3339_v50  ;;  %v3337_v14 = vmul.f32 %v7059_v10, %v3335_v34  ;;  %3542 = vrot.lane.b32.xlu0 %v7065_v52, %s5555_s24 }
0x1d47   :  { %v7075_v24 = vadd.f32 %v3340_v1, %v7007_v58  ;;  %v7078_v53 = vadd.f32 %v3337_v14, %v7010_v60  ;;  %4658 = vmatmul.mubr.msk.bf16.vlgmr.msra.gmra.mrb[88].mxu1 %vm291_vm0, %v3437_v3  ;;  %v7094_v58 = vld [vmem:[%s7387_s7] ss:$8 sps:$4 sm:$0xff]   ;;  %v7097_v60 = vld [vmem:[#allocation8 + $0x10] ss:$8 sps:$4 sm:$0xff]  }
0x1d48   :  { %3628 = vmatpush1.bf16.msra.mxu1 %v6660_v54  ;;  %3659 = vmatprep.mubr.bf16.mxu1 %v7410_v38 }
0x1d49   :  { %v3388_v21 = vpack.c.bf16 %v7075_v24, %v7075_v24  ;;  %3498 = vrot.lane.b32.xlu0 %v7078_v53, %s5555_s24  ;;  %3629 = vmatprep.subr.bf16.mxu1 %v7087_v20 }
0x1d4b   :  { %4657 = vmatmul.mubr.msk.bf16.vlgmr.msra.gmra.mrb[72].mxu0 %vm291_vm0, %v3388_v21 }
0x1d4c   :  { %3579 = vmatpush1.bf16.msra.mxu0 %v7094_v58  ;;  %3630 = vmatpush1.bf16.msra.mxu1 %v7097_v60 }
0x1d4d   :  { %3580 = vmatprep.subr.bf16.mxu0 %v7103_v13  ;;  %3631 = vmatprep.subr.bf16.mxu1 %v7106_v51 }
0x1d4e   :  { %3610 = vmatprep.mubr.bf16.mxu0 %v7410_v38 }
0x1d50   :  { %3581 = vmatpush1.bf16.msra.mxu0 %v7113_v9  ;;  %3632 = vmatpush1.bf16.msra.mxu1 %v7116_v36 }
0x1d51   :  { %3582 = vmatprep.subr.bf16.mxu0 %v7122_v39  ;;  %3633 = vmatprep.subr.bf16.mxu1 %v7125_v61 }
0x1d54   :  { %3583 = vmatpush1.bf16.msra.mxu0 %v7131_v37  ;;  %3634 = vmatpush1.bf16.msra.mxu1 %v7134_v29 }
0x1d55   :  { %3584 = vmatprep.subr.bf16.mxu0 %v7140_v25  ;;  %3813 = vmatprep.subr.bf16.mxu1 %v7143_v59 }
0x1d58   :  { %3585 = vmatpush1.bf16.msra.mxu0 %v7149_v57 }
0x1d59   :  { %3764 = vmatprep.subr.bf16.mxu0 %v7155_v35 }
0x1db7   :  { %v3543_v2 = vpop.permute.xlu0 %3542 }
0x1dbb   :  { %v3499_v34 = vpop.permute.xlu0 %3498 }
0x1e1a   :  { %v3475_v23 = vpop.f32.mrb[88].mxu1 }
0x1e1b   :  { %v3482_v19 = vadd.f32 %v3475_v23, %v6817_v0  ;;  %v3477_v4 = vpop.f32.mrb[89].mxu1 }
0x1e1c   :  { %v3483_v16 = vadd.f32 %v3477_v4, %v6822_v32  ;;  %v3479_v49 = vpop.f32.mrb[90].mxu1 }
0x1e1d   :  { %v3480_v41 = vpop.f32.mrb[91].mxu1  ;;  %v4661_v0 = vmul.f32 -1.442695, %v3482_v19 }
0x1e1e   :  { %5252 = vtanh.f32 %v3483_v16  ;;  %v3426_v22 = vpop.f32.mrb[72].mxu0  ;;  %v4662_v49 = vmul.f32 -1.442695, %v3483_v16 }
0x1e1f   :  { %v3433_v28 = vadd.f32 %v3426_v22, %v6824_v56  ;;  %v3428_v26 = vpop.f32.mrb[73].mxu0 }
0x1e20   :  { %v3434_v7 = vadd.f32 %v3428_v26, %v6829_v18  ;;  %v3430_v47 = vpop.f32.mrb[74].mxu0 }
0x1e21   :  { %v3431_v31 = vpop.f32.mrb[75].mxu0  ;;  %v4659_v32 = vmul.f32 -1.442695, %v3433_v28 }
0x1e22   :  { %5254 = vtanh.f32 %v3434_v7  ;;  %v4660_v41 = vmul.f32 -1.442695, %v3434_v7 }
0x1e23   :  { %5256 = vpow2.f32 %v4661_v0 }
0x1e24   :  { %5258 = vpow2.f32 %v4659_v32 }
0x1e28   :  { %v5253_v11 = vpop.eup %5252 }
0x1e29   :  { %3547 = vrot.lane.b32.xlu1 %v5253_v11, %s5555_s24 }
0x1e2c   :  { %v5255_v42 = vpop.eup %5254 }
0x1e2d   :  { %3503 = vrot.lane.b32.xlu1 %v5255_v42, %s5555_s24  ;;  %v5257_v63 = vpop.eup %5256 }
0x1e2e   :  { %v3534_v43 = vadd.f32 1.0, %v5257_v63  ;;  %v5259_v40 = vpop.eup %5258 }
0x1e2f   :  { %v3490_v56 = vadd.f32 1.0, %v5259_v40 }
0x1e30   :  { %5260 = vrcp.f32 %v3534_v43 }
0x1e31   :  { %5262 = vrcp.f32 %v3490_v56 }
0x1e3a   :  { %v5261_v18 = vpop.eup %5260 }
0x1e3b   :  { %v5263_v6 = vpop.eup %5262  ;;  %v3545_v8 = vmul.f32 %v5261_v18, %v3543_v2 }
0x1e3c   :  { %v3501_v3 = vmul.f32 %v5263_v6, %v3499_v34 }
0x1e9b   :  { %v3548_v17 = vpop.permute.xlu1 %3547 }
0x1e9c   :  { %v3550_v46 = vmul.f32 %v5261_v18, %v3548_v17 }
0x1e9e   :  { %3552 = vrot.lane.b32.xlu1 %v3550_v46, %s5555_s24 }
0x1e9f   :  { %v3504_v62 = vpop.permute.xlu1 %3503 }
0x1ea0   :  { %v3506_v48 = vmul.f32 %v5263_v6, %v3504_v62 }
0x1ea2   :  { %3508 = vrot.lane.b32.xlu1 %v3506_v48, %s5555_s24 }
0x1f10   :  { %v3553_v27 = vpop.permute.xlu1 %3552 }
0x1f11   :  { %v3555_v50 = vadd.f32 %v3553_v27, %v3545_v8 }
0x1f13   :  { %5264 = vtanh.f32 %v3555_v50  ;;  %v3562_v23 = vsub.f32 %v3555_v50, %v3543_v2 }
0x1f14   :  { %v3509_v1 = vpop.permute.xlu1 %3508 }
0x1f15   :  { %v3511_v14 = vadd.f32 %v3509_v1, %v3501_v3  ;;  %v7425_v1 = vld [vmem:[#allocation23_spill] sm:$0xff] }
0x1f17   :  { %5266 = vtanh.f32 %v3511_v14  ;;  %v3518_v4 = vsub.f32 %v3511_v14, %v3499_v34 }
0x1f18   :  { %5268 = vpow2.f32 %v4662_v49 }
0x1f19   :  { %5270 = vpow2.f32 %v4660_v41 }
0x1f1d   :  { %v5265_v21 = vpop.eup %5264 }
0x1f1e   :  { %3558 = vrot.lane.b32.xlu0 %v5265_v21, %s5555_s24 }
0x1f21   :  { %v5267_v19 = vpop.eup %5266 }
0x1f22   :  { %3564 = vrot.lane.b32.xlu0 %v3562_v23, %s5555_s24  ;;  %3514 = vrot.lane.b32.xlu1 %v5267_v19, %s5555_s24  ;;  %v5269_v22 = vpop.eup %5268 }
0x1f23   :  { %v3535_v28 = vadd.f32 1.0, %v5269_v22  ;;  %v5271_v26 = vpop.eup %5270 }
0x1f24   :  { %v3491_v47 = vadd.f32 1.0, %v5271_v26 }
0x1f25   :  { %5272 = vrcp.f32 %v3535_v28 }
0x1f26   :  { %3520 = vrot.lane.b32.xlu0 %v3518_v4, %s5555_s24  ;;  %5274 = vrcp.f32 %v3491_v47 }
0x1f2f   :  { %v5273_v31 = vpop.eup %5272 }
0x1f30   :  { %v5275_v32 = vpop.eup %5274 }
0x1f90   :  { %v3559_v11 = vpop.permute.xlu0 %3558 }
0x1f91   :  { %v3561_v42 = vmul.f32 %v5273_v31, %v3559_v11 }
0x1f93   :  { %v3569_v0 = vsub.f32 %v3561_v42, %v7062_v44 }
0x1f94   :  { %v3565_v63 = vpop.permute.xlu0 %3564  ;;  %v3515_v43 = vpop.permute.xlu1 %3514 }
0x1f95   :  { %v3570_v40 = vmul.f32 %v7059_v10, %v3569_v0  ;;  %v3567_v16 = vmul.f32 %v7059_v10, %v3565_v63  ;;  %v3517_v7 = vmul.f32 %v5275_v32, %v3515_v43 }
0x1f97   :  { %v7174_v56 = vadd.f32 %v3570_v40, %v7062_v44  ;;  %v7177_v18 = vadd.f32 %v3567_v16, %v7065_v52  ;;  %v3525_v17 = vsub.f32 %v3517_v7, %v7075_v24 }
0x1f98   :  { %v3521_v46 = vpop.permute.xlu0 %3520 }
0x1f99   :  { %v3623_v6 = vpack.c.bf16 %v7174_v56, %v7174_v56  ;;  %v3526_v62 = vmul.f32 %v7051_v33, %v3525_v17  ;;  %v3523_v48 = vmul.f32 %v7051_v33, %v3521_v46  ;;  %3728 = vrot.lane.b32.xlu0 %v7177_v18, %s5555_s24 }
0x1f9b   :  { %v7187_v10 = vadd.f32 %v3526_v62, %v7075_v24  ;;  %v7190_v44 = vadd.f32 %v3523_v48, %v7078_v53  ;;  %4664 = vmatmul.mubr.msk.bf16.vlgmr.msra.gmra.mrb[92].mxu1 %vm291_vm0, %v3623_v6 }
0x1f9c   :  { %3814 = vmatpush1.bf16.msra.mxu1 %v6660_v54  ;;  %3845 = vmatprep.mubr.bf16.mxu1 %v7410_v38 }
0x1f9d   :  { %v3574_v52 = vpack.c.bf16 %v7187_v10, %v7187_v10  ;;  %3684 = vrot.lane.b32.xlu0 %v7190_v44, %s5555_s24  ;;  %3815 = vmatprep.subr.bf16.mxu1 %v7087_v20 }
0x1f9f   :  { %4663 = vmatmul.mubr.msk.bf16.vlgmr.msra.gmra.mrb[76].mxu0 %vm291_vm0, %v3574_v52 }
0x1fa0   :  { %3765 = vmatpush1.bf16.msra.mxu0 %v7094_v58  ;;  %3816 = vmatpush1.bf16.msra.mxu1 %v7097_v60 }
0x1fa1   :  { %3766 = vmatprep.subr.bf16.mxu0 %v7103_v13  ;;  %3817 = vmatprep.subr.bf16.mxu1 %v7106_v51 }
0x1fa2   :  { %3796 = vmatprep.mubr.bf16.mxu0 %v7410_v38 }
0x1fa4   :  { %3767 = vmatpush1.bf16.msra.mxu0 %v7113_v9  ;;  %3818 = vmatpush1.bf16.msra.mxu1 %v7116_v36 }
0x1fa5   :  { %3768 = vmatprep.subr.bf16.mxu0 %v7122_v39  ;;  %3819 = vmatprep.subr.bf16.mxu1 %v7125_v61 }
0x1fa8   :  { %3769 = vmatpush1.bf16.msra.mxu0 %v7131_v37  ;;  %3820 = vmatpush1.bf16.msra.mxu1 %v7134_v29 }
0x1fa9   :  { %3770 = vmatprep.subr.bf16.mxu0 %v7140_v25  ;;  %3999 = vmatprep.subr.bf16.mxu1 %v7143_v59 }
0x1fac   :  { %3771 = vmatpush1.bf16.msra.mxu0 %v7149_v57 }
0x1fad   :  { %3950 = vmatprep.subr.bf16.mxu0 %v7155_v35 }
0x200b   :  { %v3729_v11 = vpop.permute.xlu0 %3728 }
0x200f   :  { %v3685_v63 = vpop.permute.xlu0 %3684 }
0x206e   :  { %v3661_v33 = vpop.f32.mrb[92].mxu1 }
0x206f   :  { %v3668_v24 = vadd.f32 %v3661_v33, %v6807_v5  ;;  %v3663_v53 = vpop.f32.mrb[93].mxu1 }
0x2070   :  { %v3669_v2 = vadd.f32 %v3663_v53, %v6812_v45  ;;  %v3665_v8 = vpop.f32.mrb[94].mxu1 }
0x2071   :  { %v3666_v27 = vpop.f32.mrb[95].mxu1  ;;  %v4667_v5 = vmul.f32 -1.442695, %v3668_v24 }
0x2072   :  { %5276 = vtanh.f32 %v3669_v2  ;;  %v3612_v50 = vpop.f32.mrb[76].mxu0  ;;  %v4668_v62 = vmul.f32 -1.442695, %v3669_v2 }
0x2073   :  { %v3619_v34 = vadd.f32 %v3612_v50, %v6834_v30  ;;  %v3614_v3 = vpop.f32.mrb[77].mxu0 }
0x2074   :  { %v3620_v14 = vadd.f32 %v3614_v3, %v7425_v1  ;;  %v3616_v59 = vpop.f32.mrb[78].mxu0 }
0x2075   :  { %v3617_v21 = vpop.f32.mrb[79].mxu0  ;;  %v4665_v45 = vmul.f32 -1.442695, %v3619_v34 }
0x2076   :  { %5278 = vtanh.f32 %v3620_v14  ;;  %v4666_v48 = vmul.f32 -1.442695, %v3620_v14 }
0x2077   :  { %5280 = vpow2.f32 %v4667_v5 }
0x2078   :  { %5282 = vpow2.f32 %v4665_v45 }
0x207c   :  { %v5277_v23 = vpop.eup %5276 }
0x207d   :  { %3733 = vrot.lane.b32.xlu1 %v5277_v23, %s5555_s24 }
0x2080   :  { %v5279_v35 = vpop.eup %5278 }
0x2081   :  { %3689 = vrot.lane.b32.xlu1 %v5279_v35, %s5555_s24  ;;  %v5281_v19 = vpop.eup %5280 }
0x2082   :  { %v3720_v4 = vadd.f32 1.0, %v5281_v19  ;;  %v5283_v49 = vpop.eup %5282 }
0x2083   :  { %v3676_v30 = vadd.f32 1.0, %v5283_v49 }
0x2084   :  { %5284 = vrcp.f32 %v3720_v4 }
0x2085   :  { %5286 = vrcp.f32 %v3676_v30 }
0x208e   :  { %v5285_v41 = vpop.eup %5284 }
0x208f   :  { %v5287_v26 = vpop.eup %5286  ;;  %v3731_v42 = vmul.f32 %v5285_v41, %v3729_v11 }
0x2090   :  { %v3687_v43 = vmul.f32 %v5287_v26, %v3685_v63 }
0x20ef   :  { %v3734_v22 = vpop.permute.xlu1 %3733 }
0x20f0   :  { %v3736_v28 = vmul.f32 %v5285_v41, %v3734_v22 }
0x20f2   :  { %3738 = vrot.lane.b32.xlu1 %v3736_v28, %s5555_s24 }
0x20f3   :  { %v3690_v47 = vpop.permute.xlu1 %3689 }
0x20f4   :  { %v3692_v31 = vmul.f32 %v5287_v26, %v3690_v47 }
0x20f6   :  { %3694 = vrot.lane.b32.xlu1 %v3692_v31, %s5555_s24 }
0x2164   :  { %v3739_v0 = vpop.permute.xlu1 %3738 }
0x2165   :  { %v3741_v32 = vadd.f32 %v3739_v0, %v3731_v42 }
0x2167   :  { %5288 = vtanh.f32 %v3741_v32  ;;  %v3748_v17 = vsub.f32 %v3741_v32, %v3729_v11 }
0x2168   :  { %v3695_v40 = vpop.permute.xlu1 %3694 }
0x2169   :  { %v3697_v16 = vadd.f32 %v3695_v40, %v3687_v43 }
0x216b   :  { %5290 = vtanh.f32 %v3697_v16  ;;  %v3704_v6 = vsub.f32 %v3697_v16, %v3685_v63 }
0x216c   :  { %5292 = vpow2.f32 %v4668_v62 }
0x216d   :  { %5294 = vpow2.f32 %v4666_v48 }
0x2171   :  { %v5289_v7 = vpop.eup %5288 }
0x2172   :  { %3744 = vrot.lane.b32.xlu0 %v5289_v7, %s5555_s24 }
0x2175   :  { %v5291_v46 = vpop.eup %5290 }
0x2176   :  { %3750 = vrot.lane.b32.xlu0 %v3748_v17, %s5555_s24  ;;  %3700 = vrot.lane.b32.xlu1 %v5291_v46, %s5555_s24  ;;  %v5293_v52 = vpop.eup %5292 }
0x2177   :  { %v3721_v33 = vadd.f32 1.0, %v5293_v52  ;;  %v5295_v24 = vpop.eup %5294 }
0x2178   :  { %v3677_v53 = vadd.f32 1.0, %v5295_v24 }
0x2179   :  { %5296 = vrcp.f32 %v3721_v33 }
0x217a   :  { %3706 = vrot.lane.b32.xlu0 %v3704_v6, %s5555_s24  ;;  %5298 = vrcp.f32 %v3677_v53 }
0x2183   :  { %v5297_v8 = vpop.eup %5296 }
0x2184   :  { %v5299_v3 = vpop.eup %5298 }
0x21e4   :  { %v3745_v27 = vpop.permute.xlu0 %3744 }
0x21e5   :  { %v3747_v50 = vmul.f32 %v5297_v8, %v3745_v27 }
0x21e7   :  { %v3755_v34 = vsub.f32 %v3747_v50, %v7174_v56 }
0x21e8   :  { %v3751_v1 = vpop.permute.xlu0 %3750  ;;  %v3701_v59 = vpop.permute.xlu1 %3700 }
0x21e9   :  { %v3756_v21 = vmul.f32 %v6991_v15, %v3755_v34  ;;  %v3753_v2 = vmul.f32 %v6991_v15, %v3751_v1  ;;  %v3703_v14 = vmul.f32 %v5299_v3, %v3701_v59 }
0x21eb   :  { %v7232_v23 = vadd.f32 %v3756_v21, %v7174_v56  ;;  %v7235_v35 = vadd.f32 %v3753_v2, %v7177_v18  ;;  %v3711_v5 = vsub.f32 %v3703_v14, %v7187_v10 }
0x21ec   :  { %v3707_v45 = vpop.permute.xlu0 %3706 }
0x21ed   :  { %v3809_v19 = vpack.c.bf16 %v7232_v23, %v7232_v23  ;;  %v3712_v4 = vmul.f32 %v6983_v55, %v3711_v5  ;;  %v3709_v49 = vmul.f32 %v6983_v55, %v3707_v45  ;;  %3914 = vrot.lane.b32.xlu0 %v7235_v35, %s5555_s24  ;;  %v7426_v55 = vld [vmem:[#allocation21_spill] sm:$0xff] }
0x21ef   :  { %v7245_v15 = vadd.f32 %v3712_v4, %v7187_v10  ;;  %v7248_v56 = vadd.f32 %v3709_v49, %v7190_v44  ;;  %4670 = vmatmul.mubr.msk.bf16.vlgmr.msra.gmra.mrb[96].mxu1 %vm291_vm0, %v3809_v19  ;;  %v5385_v19 = vld [vmem:[%s7381_s1 + $0x8] sm:$0xff] }
0x21f0   :  { %4000 = vmatpush1.bf16.msra.mxu1 %v6660_v54  ;;  %4031 = vmatprep.mubr.bf16.mxu1 %v7410_v38 }
0x21f1   :  { %v3760_v18 = vpack.c.bf16 %v7245_v15, %v7245_v15  ;;  %3870 = vrot.lane.b32.xlu0 %v7248_v56, %s5555_s24  ;;  %4001 = vmatprep.subr.bf16.mxu1 %v7087_v20 }
0x21f3   :  { %4669 = vmatmul.mubr.msk.bf16.vlgmr.msra.gmra.mrb[80].mxu0 %vm291_vm0, %v3760_v18 }
0x21f4   :  { %3951 = vmatpush1.bf16.msra.mxu0 %v7094_v58  ;;  %4002 = vmatpush1.bf16.msra.mxu1 %v7097_v60  ;;  %v7427_v58 = vld [vmem:[#allocation22_spill] sm:$0xff] }
0x21f5   :  { %3952 = vmatprep.subr.bf16.mxu0 %v7103_v13  ;;  %4003 = vmatprep.subr.bf16.mxu1 %v7106_v51 }
0x21f6   :  { %3982 = vmatprep.mubr.bf16.mxu0 %v7410_v38 }
0x21f8   :  { %3953 = vmatpush1.bf16.msra.mxu0 %v7113_v9  ;;  %4004 = vmatpush1.bf16.msra.mxu1 %v7116_v36  ;;  %v7428_v36 = vld [vmem:[#allocation24_spill] sm:$0xff] }
0x21f9   :  { %3954 = vmatprep.subr.bf16.mxu0 %v7122_v39  ;;  %4005 = vmatprep.subr.bf16.mxu1 %v7125_v61 }
0x21fc   :  { %3955 = vmatpush1.bf16.msra.mxu0 %v7131_v37  ;;  %4006 = vmatpush1.bf16.msra.mxu1 %v7134_v29  ;;  %v7429_v37 = vld [vmem:[#allocation25_spill] sm:$0xff] }
0x21fd   :  { %3956 = vmatprep.subr.bf16.mxu0 %v7140_v25 }
0x2200   :  { %3957 = vmatpush1.bf16.msra.mxu0 %v7149_v57 }
0x225f   :  { %v3915_v43 = vpop.permute.xlu0 %3914 }
0x2263   :  { %v3871_v17 = vpop.permute.xlu0 %3870 }
0x22c2   :  { %v3847_v54 = vpop.f32.mrb[96].mxu1 }
0x22c3   :  { %v3854_v20 = vadd.f32 %v3847_v54, %v7426_v55  ;;  %v3849_v38 = vpop.f32.mrb[97].mxu1 }
0x22c4   :  { %v3855_v60 = vadd.f32 %v3849_v38, %v7427_v58  ;;  %v3851_v13 = vpop.f32.mrb[98].mxu1 }
0x22c5   :  { %v3852_v51 = vpop.f32.mrb[99].mxu1  ;;  %v4673_v30 = vmul.f32 -1.442695, %v3854_v20 }
0x22c6   :  { %5300 = vtanh.f32 %v3855_v60  ;;  %v3798_v9 = vpop.f32.mrb[80].mxu0  ;;  %v4674_v53 = vmul.f32 -1.442695, %v3855_v60  ;;  %v5386_v60 = vld [vmem:[%s7381_s1 + $0x30] sm:$0xff] }
0x22c7   :  { %v3805_v39 = vadd.f32 %v3798_v9, %v7428_v36  ;;  %v3800_v61 = vpop.f32.mrb[81].mxu0 }
0x22c8   :  { %v3806_v10 = vadd.f32 %v3800_v61, %v7429_v37  ;;  %v3802_v29 = vpop.f32.mrb[82].mxu0 }
0x22c9   :  { %v3803_v44 = vpop.f32.mrb[83].mxu0  ;;  %v4671_v41 = vmul.f32 -1.442695, %v3805_v39  ;;  %v7430_v39 = vld [vmem:[#allocation20_spill] sm:$0xff] }
0x22ca   :  { %5302 = vtanh.f32 %v3806_v10  ;;  %v4672_v8 = vmul.f32 -1.442695, %v3806_v10  ;;  %v7431_v10 = vld [vmem:[#allocation19_spill] sm:$0xff] }
0x22cb   :  { %5304 = vpow2.f32 %v4673_v30 }
0x22cc   :  { %5306 = vpow2.f32 %v4671_v41 }
0x22d0   :  { %v5301_v25 = vpop.eup %5300 }
0x22d1   :  { %3919 = vrot.lane.b32.xlu1 %v5301_v25, %s5555_s24  ;;  %v7432_v25 = vld [vmem:[#allocation26_spill] sm:$0xff] }
0x22d4   :  { %v5303_v57 = vpop.eup %5302 }
0x22d5   :  { %3875 = vrot.lane.b32.xlu1 %v5303_v57, %s5555_s24  ;;  %v5305_v22 = vpop.eup %5304 }
0x22d6   :  { %v3906_v28 = vadd.f32 1.0, %v5305_v22  ;;  %v5307_v26 = vpop.eup %5306 }
0x22d7   :  { %v3862_v47 = vadd.f32 1.0, %v5307_v26 }
0x22d8   :  { %5308 = vrcp.f32 %v3906_v28 }
0x22d9   :  { %5310 = vrcp.f32 %v3862_v47 }
0x22e2   :  { %v5309_v31 = vpop.eup %5308 }
0x22e3   :  { %v5311_v0 = vpop.eup %5310  ;;  %v3917_v40 = vmul.f32 %v5309_v31, %v3915_v43 }
0x22e4   :  { %v3873_v46 = vmul.f32 %v5311_v0, %v3871_v17 }
0x2343   :  { %v3920_v11 = vpop.permute.xlu1 %3919 }
0x2344   :  { %v3922_v42 = vmul.f32 %v5309_v31, %v3920_v11 }
0x2346   :  { %3924 = vrot.lane.b32.xlu1 %v3922_v42, %s5555_s24 }
0x2347   :  { %v3876_v32 = vpop.permute.xlu1 %3875 }
0x2348   :  { %v3878_v63 = vmul.f32 %v5311_v0, %v3876_v32 }
0x234a   :  { %3880 = vrot.lane.b32.xlu1 %v3878_v63, %s5555_s24 }
0x23b8   :  { %v3925_v16 = vpop.permute.xlu1 %3924 }
0x23b9   :  { %v3927_v7 = vadd.f32 %v3925_v16, %v3917_v40 }
0x23bb   :  { %5312 = vtanh.f32 %v3927_v7  ;;  %v3934_v52 = vsub.f32 %v3927_v7, %v3915_v43 }
0x23bc   :  { %v3881_v6 = vpop.permute.xlu1 %3880 }
0x23bd   :  { %v3883_v62 = vadd.f32 %v3881_v6, %v3873_v46 }
0x23bf   :  { %5314 = vtanh.f32 %v3883_v62  ;;  %v3890_v24 = vsub.f32 %v3883_v62, %v3871_v17 }
0x23c0   :  { %5316 = vpow2.f32 %v4674_v53 }
0x23c1   :  { %5318 = vpow2.f32 %v4672_v8  ;;  %v4940_v8 = vld [vmem:[#allocation11] sm:$0xff]  }
0x23c5   :  { %v5313_v48 = vpop.eup %5312 }
0x23c6   :  { %3930 = vrot.lane.b32.xlu0 %v5313_v48, %s5555_s24 }
0x23c9   :  { %v5315_v33 = vpop.eup %5314 }
0x23ca   :  { %3936 = vrot.lane.b32.xlu0 %v3934_v52, %s5555_s24  ;;  %3886 = vrot.lane.b32.xlu1 %v5315_v33, %s5555_s24  ;;  %v5317_v27 = vpop.eup %5316 }
0x23cb   :  { %v3907_v50 = vadd.f32 1.0, %v5317_v27  ;;  %v5319_v34 = vpop.eup %5318  ;;  %v5563_v27 = vmov 0.0  }
0x23cc   :  { %v3863_v3 = vadd.f32 1.0, %v5319_v34  ;;  %4735 = vmatprep.subr.bf16.mxu0 %v5563_v27  ;;  %4755 = vmatprep.subr.bf16.mxu1 %v5563_v27 }
0x23cd   :  { %5320 = vrcp.f32 %v3907_v50  ;;  %v4941_v50 = vld [vmem:[#allocation11 + $0x8] sm:$0xff]  }
0x23ce   :  { %3892 = vrot.lane.b32.xlu0 %v3890_v24, %s5555_s24  ;;  %5322 = vrcp.f32 %v3863_v3  ;;  %v4942_v3 = vld [vmem:[#allocation11 + $0x10] sm:$0xff]  }
0x23d7   :  { %v5321_v1 = vpop.eup %5320 }
0x23d8   :  { %v5323_v14 = vpop.eup %5322 }
0x2438   :  { %v3931_v59 = vpop.permute.xlu0 %3930 }
0x2439   :  { %v3933_v21 = vmul.f32 %v5321_v1, %v3931_v59  ;;  %v4943_v59 = vld [vmem:[#allocation11 + $0x18] sm:$0xff]  }
0x243b   :  { %v3941_v2 = vsub.f32 %v3933_v21, %v7232_v23  ;;  %v4944_v21 = vld [vmem:[#allocation11 + $0x20] sm:$0xff]  }
0x243c   :  { %v3937_v5 = vpop.permute.xlu0 %3936  ;;  %v3887_v45 = vpop.permute.xlu1 %3886 }
0x243d   :  { %v3942_v4 = vmul.f32 %v5385_v19, %v3941_v2  ;;  %v3939_v49 = vmul.f32 %v5385_v19, %v3937_v5  ;;  %v3889_v18 = vmul.f32 %v5323_v14, %v3887_v45  ;;  %v4945_v2 = vld [vmem:[#allocation11 + $0x28] sm:$0xff]   ;;  %v4946_v14 = vld [vmem:[#allocation11 + $0x30] sm:$0xff]  }
0x243f   :  { %v7289_v54 = vadd.f32 %v3942_v4, %v7232_v23  ;;  %v3940_v55 = vadd.f32 %v3939_v49, %v7235_v35  ;;  %v3897_v20 = vsub.f32 %v3889_v18, %v7245_v15  ;;  %v4947_v4 = vld [vmem:[#allocation11 + $0x38] sm:$0xff]   ;;  %v4948_v49 = vld [vmem:[#allocation12] sm:$0xff]  }
0x2440   :  { %v3893_v38 = vpop.permute.xlu0 %3892 }
0x2441   :  { %v3995_v58 = vpack.c.bf16 %v7289_v54, %v7289_v54  ;;  %v3898_v13 = vmul.f32 %v5386_v60, %v3897_v20  ;;  %v3895_v51 = vmul.f32 %v5386_v60, %v3893_v38  ;;  %4093 = vrot.lane.b32.xlu0 %v3940_v55, %s5555_s24  ;;  %v4949_v38 = vld [vmem:[#allocation12 + $0x8] sm:$0xff]   ;;  %v5387_v60 = vld [vmem:[%s7381_s1] sm:$0xff] }
0x2443   :  { %v7300_v9 = vadd.f32 %v3898_v13, %v7245_v15  ;;  %v3896_v23 = vadd.f32 %v3895_v51, %v7248_v56  ;;  %4676 = vmatmul.mubr.msk.bf16.vlgmr.msra.gmra.mrb[100].mxu1 %vm291_vm0, %v3995_v58  ;;  %v4950_v51 = vld [vmem:[#allocation12 + $0x10] sm:$0xff]  }
0x2444   :  { %4771 = vmatprep.mubr.msk.bf16.mxu1 %vm5564_vm2, %v5563_v27  ;;  %4756 = vmatpush3.bf16.msra.mxu1 %v4948_v49 }
0x2445   :  { %v3946_v35 = vpack.c.bf16 %v7300_v9, %v7300_v9  ;;  %4056 = vrot.lane.b32.xlu0 %v3896_v23, %s5555_s24  ;;  %4757 = vmatprep.subr.bf16.mxu1 %v5563_v27 }
0x2447   :  { %4675 = vmatmul.mubr.msk.bf16.vlgmr.msra.gmra.mrb[84].mxu0 %vm291_vm0, %v3946_v35  ;;  %v4951_v35 = vld [vmem:[#allocation12 + $0x18] sm:$0xff]  }
0x2448   :  { %4736 = vmatpush3.bf16.msra.mxu0 %v4940_v8  ;;  %4751 = vmatprep.mubr.msk.bf16.mxu0 %vm5564_vm2, %v5563_v27 }
0x2449   :  { %4737 = vmatprep.subr.bf16.mxu0 %v5563_v27  ;;  %4758 = vmatpush3.bf16.msra.mxu1 %v4949_v38 }
0x244a   :  { %4759 = vmatprep.subr.bf16.mxu1 %v5563_v27 }
0x244c   :  { %4738 = vmatpush3.bf16.msra.mxu0 %v4941_v50 }
0x244d   :  { %4739 = vmatprep.subr.bf16.mxu0 %v5563_v27  ;;  %4760 = vmatpush3.bf16.msra.mxu1 %v4950_v51 }
0x244e   :  { %4761 = vmatprep.subr.bf16.mxu1 %v5563_v27 }
0x2450   :  { %4740 = vmatpush3.bf16.msra.mxu0 %v4942_v3 }
0x2451   :  { %4741 = vmatprep.subr.bf16.mxu0 %v5563_v27  ;;  %4762 = vmatpush3.bf16.msra.mxu1 %v4951_v35 }
0x2452   :  { %4763 = vmatprep.subr.bf16.mxu1 %v5563_v27 }
0x2454   :  { %4742 = vmatpush3.bf16.msra.mxu0 %v4943_v59 }
0x2455   :  { %4743 = vmatprep.subr.bf16.mxu0 %v5563_v27 }
0x2458   :  { %4744 = vmatpush3.bf16.msra.mxu0 %v4944_v21 }
0x2459   :  { %4745 = vmatprep.subr.bf16.mxu0 %v5563_v27 }
0x245c   :  { %4746 = vmatpush3.bf16.msra.mxu0 %v4945_v2 }
0x245d   :  { %4747 = vmatprep.subr.bf16.mxu0 %v5563_v27 }
0x2460   :  { %4748 = vmatpush3.bf16.msra.mxu0 %v4946_v14 }
0x2461   :  { %4749 = vmatprep.subr.bf16.mxu0 %v5563_v27 }
0x2464   :  { %4750 = vmatpush3.bf16.msra.mxu0 %v4947_v4 }
0x2465   :  { %4775 = vmatprep.subr.bf16.mxu0 %v5563_v27 }
0x24b3   :  { %v4094_v46 = vpop.permute.xlu0 %4093 }
0x24b7   :  { %v4057_v52 = vpop.permute.xlu0 %4056 }
0x2516   :  { %v4033_v36 = vpop.f32.mrb[100].mxu1 }
0x2517   :  { %v4040_v61 = vadd.f32 %v4033_v36, %v7430_v39  ;;  %v4035_v37 = vpop.f32.mrb[101].mxu1  ;;  %v4952_v36 = vld [vmem:[#allocation12 + $0x20] sm:$0xff]   ;;  %v4953_v39 = vld [vmem:[#allocation12 + $0x28] sm:$0xff]  }
0x2518   :  { %v7310_v29 = vadd.f32 %v4035_v37, %v7431_v10  ;;  %v4037_v15 = vpop.f32.mrb[102].mxu1  ;;  %4764 = vmatpush3.bf16.msra.mxu1 %v4952_v36 }
0x2519   :  { %v4038_v44 = vpop.f32.mrb[103].mxu1  ;;  %v4679_v31 = vmul.f32 -1.442695, %v4040_v61  ;;  %4765 = vmatprep.subr.bf16.mxu1 %v5563_v27 }
0x251a   :  { %5324 = vtanh.f32 %v7310_v29  ;;  %v3984_v56 = vpop.f32.mrb[84].mxu0  ;;  %v4680_v5 = vmul.f32 -1.442695, %v7310_v29 }
0x251b   :  { %v3991_v57 = vadd.f32 %v3984_v56, %v7432_v25  ;;  %v3986_v30 = vpop.f32.mrb[85].mxu0  ;;  %v5388_v56 = vld [vmem:[%s7381_s1 + $0x38] sm:$0xff] }
0x251c   :  { %v7315_v41 = vadd.f32 %v3986_v30, %v6856_v12  ;;  %v3988_v22 = vpop.f32.mrb[86].mxu0  ;;  %4766 = vmatpush3.bf16.msra.mxu1 %v4953_v39 }
0x251d   :  { %v3989_v28 = vpop.f32.mrb[87].mxu0  ;;  %v4677_v11 = vmul.f32 -1.442695, %v3991_v57  ;;  %4767 = vmatprep.subr.bf16.mxu1 %v5563_v27 }
0x251e   :  { %5326 = vtanh.f32 %v7315_v41  ;;  %v4678_v61 = vmul.f32 -1.442695, %v7315_v41  ;;  %v4954_v28 = vld [vmem:[#allocation12 + $0x30] sm:$0xff]  }
0x251f   :  { %5328 = vpow2.f32 %v4679_v31  ;;  %v4957_v31 = vld [vmem:[#allocation14 + $0x8] sm:$0xff]  }
0x2520   :  { %5330 = vpow2.f32 %v4677_v11  ;;  %4768 = vmatpush3.bf16.msra.mxu1 %v4954_v28  ;;  %v4959_v11 = vld [vmem:[#allocation14 + $0x18] sm:$0xff]  }
0x2521   :  { %4769 = vmatprep.subr.bf16.mxu1 %v5563_v27 }
0x2524   :  { %v5325_v26 = vpop.eup %5324 }
0x2525   :  { %4098 = vrot.lane.b32.xlu1 %v5325_v26, %s5555_s24  ;;  %v4955_v26 = vld [vmem:[#allocation12 + $0x38] sm:$0xff]  }
0x2526   :  { %4770 = vmatpush3.bf16.msra.mxu1 %v4955_v26 }
0x2528   :  { %v5327_v47 = vpop.eup %5326 }
0x2529   :  { %4061 = vrot.lane.b32.xlu1 %v5327_v47, %s5555_s24  ;;  %v5329_v42 = vpop.eup %5328  ;;  %v4956_v47 = vld [vmem:[#allocation14] sm:$0xff]  }
0x252a   :  { %v4085_v0 = vadd.f32 1.0, %v5329_v42  ;;  %v5331_v32 = vpop.eup %5330  ;;  %v4960_v42 = vld [vmem:[#allocation14 + $0x20] sm:$0xff]  }
0x252b   :  { %v4048_v12 = vadd.f32 1.0, %v5331_v32  ;;  %v4681_v32 = vld [vmem:[%s7391_s11] ss:$0 sm:$0xff] }
0x252c   :  { %5332 = vrcp.f32 %v4085_v0  ;;  %v4961_v0 = vld [vmem:[#allocation14 + $0x28] sm:$0xff]  }
0x252d   :  { %5334 = vrcp.f32 %v4048_v12 }
0x2536   :  { %v5333_v63 = vpop.eup %5332 }
0x2537   :  { %v5335_v16 = vpop.eup %5334  ;;  %v4096_v6 = vmul.f32 %v5333_v63, %v4094_v46  ;;  %v4962_v46 = vld [vmem:[#allocation14 + $0x30] sm:$0xff]  }
0x2538   :  { %v4059_v33 = vmul.f32 %v5335_v16, %v4057_v52 }
0x2597   :  { %v4099_v43 = vpop.permute.xlu1 %4098 }
0x2598   :  { %v4101_v40 = vmul.f32 %v5333_v63, %v4099_v43 }
0x259a   :  { %4103 = vrot.lane.b32.xlu1 %v4101_v40, %s5555_s24 }
0x259b   :  { %v4062_v7 = vpop.permute.xlu1 %4061 }
0x259c   :  { %v4064_v17 = vmul.f32 %v5335_v16, %v4062_v7 }
0x259e   :  { %4066 = vrot.lane.b32.xlu1 %v4064_v17, %s5555_s24 }
0x260c   :  { %v4104_v62 = vpop.permute.xlu1 %4103 }
0x260d   :  { %v4106_v48 = vadd.f32 %v4104_v62, %v4096_v6  ;;  %v4963_v6 = vld [vmem:[#allocation14 + $0x38] sm:$0xff]  }
0x260e   :  { %v4690_v62 = vld [vmem:[%s7393_s13] ss:$0 sm:$0xff] }
0x260f   :  { %5336 = vtanh.f32 %v4106_v48 }
0x2610   :  { %v4067_v24 = vpop.permute.xlu1 %4066 }
0x2611   :  { %v4069_v53 = vadd.f32 %v4067_v24, %v4059_v33 }
0x2613   :  { %5338 = vtanh.f32 %v4069_v53 }
0x2614   :  { %5340 = vpow2.f32 %v4680_v5 }
0x2619   :  { %v5337_v34 = vpop.eup %5336 }
0x261a   :  { %4109 = vrot.lane.b32.xlu0 %v5337_v34, %s5555_s24  ;;  %v4699_v34 = vld [vmem:[%s7395_s15] ss:$0 sm:$0xff] }
0x261d   :  { %v5339_v1 = vpop.eup %5338 }
0x261e   :  { %4072 = vrot.lane.b32.xlu1 %v5339_v1, %s5555_s24  ;;  %v5341_v45 = vpop.eup %5340 }
0x261f   :  { %v4086_v19 = vadd.f32 1.0, %v5341_v45 }
0x2621   :  { %5342 = vrcp.f32 %v4086_v19 }
0x2622   :  { %5344 = vpow2.f32 %v4678_v61 }
0x262b   :  { %v5343_v18 = vpop.eup %5342 }
0x268c   :  { %v4110_v55 = vpop.permute.xlu0 %4109 }
0x268d   :  { %v4112_v20 = vmul.f32 %v5343_v18, %v4110_v55 }
0x268f   :  { %v4113_v58 = vsub.f32 %v4112_v20, %v7289_v54 }
0x2690   :  { %v4073_v10 = vpop.permute.xlu1 %4072 }
0x2691   :  { %v4114_v13 = vmul.f32 %v5387_v60, %v4113_v58 }
0x2693   :  { %v4115_v23 = vadd.f32 %v4114_v13, %v7289_v54  ;;  %v5345_v54 = vpop.eup %5344 }
0x2694   :  { %v4049_v37 = vadd.f32 1.0, %v5345_v54 }
0x2695   :  { %4117 = vrot.lane.b32.xlu0 %v4115_v23, %s5555_s24 }
0x2696   :  { %5346 = vrcp.f32 %v4049_v37 }
0x26a0   :  { %v5347_v29 = vpop.eup %5346 }
0x26a1   :  { %v4075_v15 = vmul.f32 %v5347_v29, %v4073_v10 }
0x26a3   :  { %v4076_v44 = vsub.f32 %v4075_v15, %v7300_v9 }
0x26a5   :  { %v4077_v25 = vmul.f32 %v5388_v56, %v4076_v44 }
0x26a7   :  { %v4078_v57 = vadd.f32 %v4077_v25, %v7300_v9  ;;  %v4958_v9 = vld [vmem:[#allocation14 + $0x10] sm:$0xff]  }
0x2707   :  { %v4118_v30 = vpop.permute.xlu0 %4117 }
0x2708   :  { %v4120_v22 = vsel %vm291_vm0, %v4078_v57, %v4118_v30 }
0x2709   :  { %v4121_v41 = vpack.c.bf16 %v4120_v22, %v4120_v22 }
0x270b   :  { %4752 = vmatmul.mubr.bf16.vlgmr.msra.gmra.mrb[88].mxu0 %v4121_v41 }
0x270c   :  { %4791 = vmatprep.mubr.msk.bf16.mxu0 %vm5564_vm2, %v5563_v27  ;;  %4776 = vmatpush3.bf16.msra.mxu0 %v4956_v47 }
0x270d   :  { %4777 = vmatprep.subr.bf16.mxu0 %v5563_v27 }
0x2710   :  { %4778 = vmatpush3.bf16.msra.mxu0 %v4957_v31 }
0x2711   :  { %4779 = vmatprep.subr.bf16.mxu0 %v5563_v27 }
0x2714   :  { %4780 = vmatpush3.bf16.msra.mxu0 %v4958_v9 }
0x2715   :  { %4781 = vmatprep.subr.bf16.mxu0 %v5563_v27 }
0x2718   :  { %4782 = vmatpush3.bf16.msra.mxu0 %v4959_v11 }
0x2719   :  { %4783 = vmatprep.subr.bf16.mxu0 %v5563_v27 }
0x271c   :  { %4784 = vmatpush3.bf16.msra.mxu0 %v4960_v42 }
0x271d   :  { %4785 = vmatprep.subr.bf16.mxu0 %v5563_v27 }
0x2720   :  { %4786 = vmatpush3.bf16.msra.mxu0 %v4961_v0 }
0x2721   :  { %4787 = vmatprep.subr.bf16.mxu0 %v5563_v27 }
0x2724   :  { %4788 = vmatpush3.bf16.msra.mxu0 %v4962_v46 }
0x2725   :  { %4789 = vmatprep.subr.bf16.mxu0 %v5563_v27 }
0x2728   :  { %4790 = vmatpush3.bf16.msra.mxu0 %v4963_v6 }
0x27de   :  { %v4227_v12 = vpop.f32.mrb[88].mxu0 }
0x27df   :  { %v4228_v63 = vadd.f32 %v4681_v32, %v4227_v12  ;;  %v4753_v43 = vpop.f32.mrb[89].mxu0 }
0x27e0   :  { %v4230_v40 = vpop.f32.mrb[90].mxu0 }
0x27e1   :  { %v4233_v16 = vmax.f32 %v4228_v63, 0.0  ;;  %v4754_v7 = vpop.f32.mrb[91].mxu0 }
0x27e3   :  { %v4234_v17 = vpack.c.bf16 %v4233_v16, %v4233_v16 }
0x27e5   :  { %4772 = vmatmul.mubr.bf16.vlgmr.msra.gmra.mrb[104].mxu1 %v4234_v17 }
0x28b8   :  { %v4340_v48 = vpop.f32.mrb[104].mxu1 }
0x28b9   :  { %v4341_v52 = vadd.f32 %v4690_v62, %v4340_v48  ;;  %v4773_v33 = vpop.f32.mrb[105].mxu1 }
0x28ba   :  { %v4343_v24 = vpop.f32.mrb[106].mxu1 }
0x28bb   :  { %v4346_v53 = vmax.f32 %v4341_v52, 0.0  ;;  %v4774_v8 = vpop.f32.mrb[107].mxu1 }
0x28bd   :  { %v4347_v50 = vpack.c.bf16 %v4346_v53, %v4346_v53 }
0x28bf   :  { %4792 = vmatmul.mubr.bf16.vlgmr.msra.gmra.mrb[92].mxu0 %v4347_v50 }
0x2992   :  { %v4453_v3 = vpop.f32.mrb[92].mxu0 }
0x2993   :  { %v4454_v27 = vadd.f32 %v4699_v34, %v4453_v3  ;;  %v4793_v1 = vpop.f32.mrb[93].mxu0 }
0x2994   :  { %v4456_v59 = vpop.f32.mrb[94].mxu0 }
0x2995   :  { %v4459_v21 = vmax.f32 %v4454_v27, 0.0  ;;  %v4794_v2 = vpop.f32.mrb[95].mxu0 }
0x2997   :  { %4460 = vst [vmem:[%s7396_s16] sm:$0xff] %v4459_v21 }
0x2998   :  { %4465 = vsyncpa [#allocation5], 1 }
0x2999   :  { %4466 = vsyncpa [#allocation7], 1 }
0x299a   :  { %4467 = vsyncpa [#allocation10], 1 }
0x299b   :  { %4468 = vsyncpa [#allocation13], 1 }

</bundles_post_ra>
